<compile_context>
chip_gen: v5e
topology: v5e:2x2
jax: 0.10.0
libtpu: 0.0.40
codegen_flags: <defaults>
</compile_context>

<pallas_src>
import functools
import math

import jax
import jax.numpy as jnp
from jax.experimental import pallas as pl
from jax.experimental.pallas import tpu as pltpu

VMEM_LIMIT = 48 * 1024 * 1024  # below v7x physical 64 MiB, above v5e/v6e scoped defaults


def _round_up(x, m):
    return (x + m - 1) // m * m


# ----------------------------------------------------------------------------------
# Kernel 1 (rarely used): pointwise (1x1) conv, mask-free.   y = x @ W + b
# Only needed for the expanded-flow channel projector.
# ----------------------------------------------------------------------------------
def _pw_kernel(x_ref, w_ref, b_ref, o_ref):
    y = jnp.dot(x_ref[...].astype(jnp.bfloat16), w_ref[...],
                preferred_element_type=jnp.float32)
    o_ref[...] = (y + b_ref[...]).astype(o_ref.dtype)


def _pointwise(x, w, b, out_dtype=jnp.float32, tm_cap=1024):
    """x: (B, T, Cin); w: (Cin, Cout) bf16; b: (Cout,). Returns (B, T, Cout)."""
    B, T, Cin = x.shape
    Cout = w.shape[1]
    M = B * T
    xm = x.reshape(M, Cin)
    TM = min(tm_cap, _round_up(M, 8))
    Mp = _round_up(M, TM)
    if Mp != M:
        xm = jnp.pad(xm, ((0, Mp - M), (0, 0)))
    nm = Mp // TM
    out = pl.pallas_call(
        _pw_kernel,
        out_shape=jax.ShapeDtypeStruct((Mp, Cout), out_dtype),
        grid_spec=pltpu.PrefetchScalarGridSpec(
            num_scalar_prefetch=0,
            grid=(nm,),
            in_specs=[
                pl.BlockSpec((TM, Cin), lambda i: (i, 0)),
                pl.BlockSpec((Cin, Cout), lambda i: (0, 0)),
                pl.BlockSpec((1, Cout), lambda i: (0, 0)),
            ],
            out_specs=pl.BlockSpec((TM, Cout), lambda i: (i, 0)),
        ),
        compiler_params=pltpu.CompilerParams(
            dimension_semantics=("parallel",), vmem_limit_bytes=VMEM_LIMIT),
    )(xm, w, b.reshape(1, Cout).astype(jnp.float32))
    return out[:M].reshape(B, T, Cout)


# ----------------------------------------------------------------------------------
# Kernel 2: ONE fused coupling block.
#   pre conv -> L WaveNet layers (VMEM-resident residual + skip) -> post conv -> coupling.
#   mean_only=True  =>  log_scale == 0, logdet == 0.
#     forward: x1' = stats + x1 * x_mask        reverse: x1' = (x1 - stats) * x_mask
#   Zero-padded pre/post weights keep every ref load/store full-C-width and lane-dense.
# ----------------------------------------------------------------------------------
def _coupling_kernel(x_ref, m_ref, gt_ref, gs_ref,
                     prew_ref, preb_ref, inwt_ref, inws_ref, inbt_ref, inbs_ref,
                     resw_ref, resb_ref, skpw_ref, skpb_ref, postw_ref, postb_ref,
                     out_ref, xres_ref, skip_ref,
                     *, T, K, L, dil_rate, H, half, C, halo, reverse):
    mask = m_ref[0]                                   # (T, 1) f32
    xf = x_ref[0]                                     # (T, C) f32, full width

    # pre 1x1 conv + mask.  prew is (C, H) with zero rows for the x1 lanes.
    h = jnp.dot(xf.astype(jnp.bfloat16), prew_ref[...],
                preferred_element_type=jnp.float32)
    h = (h + preb_ref[...]) * mask                    # (T, H)

    # residual state with a sublane-aligned zero halo for the dilated convs
    xres_ref[...] = jnp.zeros_like(xres_ref)
    xres_ref[pl.ds(halo, T), :] = h
    skip_ref[...] = jnp.zeros_like(skip_ref)

    dil = 1
    for li in range(L):                               # static unroll over WN layers
        pad = dil * (K - 1) // 2
        base = halo - pad
        acc_t = jnp.zeros((T, H), jnp.float32)
        acc_s = jnp.zeros((T, H), jnp.float32)
        for k in range(K):                            # dilated conv as K tap matmuls
            tap = xres_ref[pl.ds(base + k * dil, T), :].astype(jnp.bfloat16)
            acc_t = acc_t + jnp.dot(tap, inwt_ref[li * K + k],
                                    preferred_element_type=jnp.float32)
            acc_s = acc_s + jnp.dot(tap, inws_ref[li * K + k],
                                    preferred_element_type=jnp.float32)

        # conditioning add + gated activation (fused_add_tanh_sigmoid_multiply), f32
        z_t = acc_t + inbt_ref[li] + gt_ref[0, li]
        z_s = acc_s + inbs_ref[li] + gs_ref[0, li]
        acts = (jnp.tanh(z_t) * jax.nn.sigmoid(z_s)).astype(jnp.bfloat16)

        # skip contribution (f32 accumulator stays in VMEM scratch)
        skip_ref[...] = skip_ref[...] + (
            jnp.dot(acts, skpw_ref[li], preferred_element_type=jnp.float32)
            + skpb_ref[li])

        if li < L - 1:                                # residual update (not on last layer)
            res = (jnp.dot(acts, resw_ref[li], preferred_element_type=jnp.float32)
                   + resb_ref[li])
            xres_ref[pl.ds(halo, T), :] = (xres_ref[pl.ds(halo, T), :] + res) * mask
        dil *= dil_rate

    # post 1x1 conv + mask.  postw is (H, C) with zero columns for the x0 lanes,
    # so `stats` is already placed in the x1 lanes of a full-width value.
    wn_out = skip_ref[...] * mask                     # WN output * x_mask
    stats = jnp.dot(wn_out.astype(jnp.bfloat16), postw_ref[...],
                    preferred_element_type=jnp.float32)
    stats = (stats + postb_ref[...]) * mask

    # coupling: pass x0 through untouched, apply mask to x1, add/sub stats.
    lane = jax.lax.broadcasted_iota(jnp.int32, (T, C), 1)
    keep = jnp.where(lane < half, jnp.float32(1.0), mask)
    if reverse:
        out_ref[0] = xf * keep - stats
    else:
        out_ref[0] = xf * keep + stats


def _coupling_block_forward(p, cfg, xl, mask_l, g_flat, reverse):
    B, T, C = xl.shape
    half, H, K, L, dr = (cfg["half"], cfg["hidden"], cfg["kernel"],
                         cfg["layers"], cfg["dil_rate"])

    if cfg["has_proj"] and not reverse:
        xl = _pointwise(xl, p["proj_w"], p["proj_b"], out_dtype=jnp.float32)
        C = xl.shape[-1]

    # cond_layer: tiny (B, Cg) @ (Cg, 2*H*L) GEMM -- kept in plain JAX since a
    # pallas_call's per-step overhead would dominate at this size.
    if cfg["has_cond"] and g_flat is not None:
        g_all = g_flat @ p["cond_w"] + p["cond_b"]        # (B, 2*H*L)
    else:
        g_all = jnp.zeros((B, 2 * H * L), jnp.float32)
    g4 = g_all.reshape(B, L, 2, H)
    g_t = g4[:, :, 0:1, :]                                # (B, L, 1, H) tanh halves
    g_s = g4[:, :, 1:2, :]                                # (B, L, 1, H) sigmoid halves

    max_pad = (dr ** (L - 1)) * (K - 1) // 2
    halo = _round_up(max_pad, 8)                          # sublane-aligned halo
    Tpad = T + 2 * halo
    Lr = max(L - 1, 1)

    kern = functools.partial(_coupling_kernel, T=T, K=K, L=L, dil_rate=dr,
                             H=H, half=half, C=C, halo=halo, reverse=reverse)
    out = pl.pallas_call(
        kern,
        out_shape=jax.ShapeDtypeStruct((B, T, C), jnp.float32),
        grid_spec=pltpu.PrefetchScalarGridSpec(
            num_scalar_prefetch=0,
            grid=(B,),
            in_specs=[
                pl.BlockSpec((1, T, C), lambda b: (b, 0, 0)),         # x
                pl.BlockSpec((1, T, 1), lambda b: (b, 0, 0)),         # mask
                pl.BlockSpec((1, L, 1, H), lambda b: (b, 0, 0, 0)),   # g tanh
                pl.BlockSpec((1, L, 1, H), lambda b: (b, 0, 0, 0)),   # g sigmoid
                pl.BlockSpec((C, H), lambda b: (0, 0)),               # pre_w (padded)
                pl.BlockSpec((1, H), lambda b: (0, 0)),               # pre_b
                pl.BlockSpec((L * K, H, H), lambda b: (0, 0, 0)),     # in_w tanh
                pl.BlockSpec((L * K, H, H), lambda b: (0, 0, 0)),     # in_w sigmoid
                pl.BlockSpec((L, 1, H), lambda b: (0, 0, 0)),         # in_b tanh
                pl.BlockSpec((L, 1, H), lambda b: (0, 0, 0)),         # in_b sigmoid
                pl.BlockSpec((Lr, H, H), lambda b: (0, 0, 0)),        # res_w
                pl.BlockSpec((Lr, 1, H), lambda b: (0, 0, 0)),        # res_b
                pl.BlockSpec((L, H, H), lambda b: (0, 0, 0)),         # skip_w
                pl.BlockSpec((L, 1, H), lambda b: (0, 0, 0)),         # skip_b
                pl.BlockSpec((H, C), lambda b: (0, 0)),               # post_w (padded)
                pl.BlockSpec((1, C), lambda b: (0, 0)),               # post_b (padded)
            ],
            out_specs=pl.BlockSpec((1, T, C), lambda b: (b, 0, 0)),
            scratch_shapes=[pltpu.VMEM((Tpad, H), jnp.float32),       # residual + halo
                            pltpu.VMEM((T, H), jnp.float32)],         # skip accumulator
        ),
        compiler_params=pltpu.CompilerParams(
            dimension_semantics=("parallel",), vmem_limit_bytes=VMEM_LIMIT),
    )(xl, mask_l, g_t, g_s,
      p["pre_w"], p["pre_b"], p["in_w_t"], p["in_w_s"], p["in_b_t"], p["in_b_s"],
      p["res_w"], p["res_b"], p["skip_w"], p["skip_b"], p["post_w"], p["post_b"])
    return out


# ----------------------------------------------------------------------------------
# ResidualCouplingBlocks forward (plain-JAX glue: transposes at the boundary + flips).
# ----------------------------------------------------------------------------------
def residual_coupling_blocks_forward(params, x, x_mask, g=None, *,
                                     configs, reverse=False):
    """x: (B, C, T); x_mask: (B, 1, T); g: (B, Cg, 1) or None. Returns (B, C', T)."""
    xl = jnp.transpose(x, (0, 2, 1)).astype(jnp.float32)          # channels-last
    mask_l = jnp.transpose(x_mask, (0, 2, 1)).astype(jnp.float32)
    g_flat = None if g is None else g[:, :, 0].astype(jnp.float32)

    if not reverse:
        for p, cfg in zip(params["flows"], configs):
            xl = _coupling_block_forward(p, cfg, xl, mask_l, g_flat, reverse=False)
            xl = jnp.flip(xl, axis=-1)                             # torch.flip(x, [1])
        return jnp.transpose(xl, (0, 2, 1))
    for p, cfg in zip(reversed(params["flows"]), tuple(reversed(configs))):
        xl = jnp.flip(xl, axis=-1)
        xl = _coupling_block_forward(p, cfg, xl, mask_l, g_flat, reverse=True)
    return jnp.transpose(xl, (0, 2, 1))


# ----------------------------------------------------------------------------------
# Parameter init (PyTorch Conv1d default init; weight_norm is identity at init).
# ----------------------------------------------------------------------------------
def _uconv(key, shape, fan_in, dtype=jnp.float32):
    bound = 1.0 / math.sqrt(fan_in)
    return jax.random.uniform(key, shape, jnp.float32, -bound, bound).astype(dtype)


def _init_coupling_block(key, channels, hidden, kernel_size, num_layers,
                         cond_channels, proj_in=None, proj_out=None):
    half = channels // 2
    H, K, L = hidden, kernel_size, num_layers
    keys = iter(jax.random.split(key, 16))
    p = {}

    # pre 1x1 conv, zero-padded to read the full C-wide input (x1 lanes inert)
    pre_w = _uconv(next(keys), (half, H), half)
    p["pre_w"] = jnp.pad(pre_w, ((0, channels - half), (0, 0))).astype(jnp.bfloat16)
    p["pre_b"] = _uconv(next(keys), (1, H), half)

    fan_in = H * K
    p["in_w_t"] = _uconv(next(keys), (L * K, H, H), fan_in, jnp.bfloat16)
    p["in_w_s"] = _uconv(next(keys), (L * K, H, H), fan_in, jnp.bfloat16)
    p["in_b_t"] = _uconv(next(keys), (L, 1, H), fan_in)
    p["in_b_s"] = _uconv(next(keys), (L, 1, H), fan_in)

    Lr = max(L - 1, 1)
    p["res_w"] = _uconv(next(keys), (Lr, H, H), H, jnp.bfloat16)
    p["res_b"] = _uconv(next(keys), (Lr, 1, H), H)
    p["skip_w"] = _uconv(next(keys), (L, H, H), H, jnp.bfloat16)
    p["skip_b"] = _uconv(next(keys), (L, 1, H), H)

    if cond_channels and cond_channels > 0:
        p["cond_w"] = _uconv(next(keys), (cond_channels, 2 * H * L), cond_channels)
        p["cond_b"] = _uconv(next(keys), (2 * H * L,), cond_channels)

    # post 1x1 conv, zero-padded so its output lands directly in the x1 lanes
    post_w = _uconv(next(keys), (H, half), H)
    p["post_w"] = jnp.pad(post_w, ((0, 0), (half, 0))).astype(jnp.bfloat16)
    post_b = _uconv(next(keys), (1, half), H)
    p["post_b"] = jnp.pad(post_b, ((0, 0), (half, 0)))

    if proj_out is not None:
        p["proj_w"] = _uconv(next(keys), (proj_in, proj_out), proj_in, jnp.bfloat16)
        p["proj_b"] = _uconv(next(keys), (proj_out,), proj_in)
    return p


def init_residual_coupling_blocks(key, channels, hidden_channels, kernel_size,
                                  dilation_rate, num_layers, num_flows=4,
                                  cond_channels=0, expanded_flow=False,
                                  expanded_flow_dim=0):
    assert channels % 2 == 0, "channels should be divisible by 2"
    assert kernel_size % 2 == 1, "odd kernel_size assumed (as in VITS)"
    keys = jax.random.split(key, num_flows)
    flows, configs = [], []
    for fi in range(num_flows):
        expand = expanded_flow and fi == num_flows - 1
        ch = channels + 2 * expanded_flow_dim if expand else channels
        hid = channels + 2 * expanded_flow_dim if expand else hidden_channels
        proj_out = ch if expand else None
        # TODO(synk): the torch module hard-codes the projector input width to 192;
        # we use `channels` (identical whenever channels == 192).
        flows.append(_init_coupling_block(keys[fi], ch, hid, kernel_size,
                                          num_layers, cond_channels,
                                          proj_in=channels, proj_out=proj_out))
        configs.append(dict(half=ch // 2, hidden=hid, kernel=kernel_size,
                            dil_rate=dilation_rate, layers=num_layers,
                            has_cond=cond_channels > 0,
                            has_proj=proj_out is not None))
    return {"flows": flows}, tuple(configs)


# ----------------------------------------------------------------------------------
if __name__ == "__main__":
    B, C, T = 2, 8, 64
    HIDDEN, KSIZE, DIL_RATE, N_LAYERS, N_FLOWS, COND = 16, 5, 2, 3, 2, 8

    params, configs = init_residual_coupling_blocks(
        jax.random.PRNGKey(42), C, HIDDEN, KSIZE, DIL_RATE, N_LAYERS,
        num_flows=N_FLOWS, cond_channels=COND,
        expanded_flow=False, expanded_flow_dim=0)

    kx, kg = jax.random.split(jax.random.PRNGKey(0))
    x = jax.random.normal(kx, (B, C, T), jnp.float32)
    g = jax.random.normal(kg, (B, COND, 1), jnp.float32)
    lengths = jnp.array([T, T - 16])
    x_mask = (jnp.arange(T)[None, None, :] < lengths[:, None, None]).astype(jnp.float32)

    fwd = jax.jit(functools.partial(residual_coupling_blocks_forward,
                                    configs=configs, reverse=False))
    rev = jax.jit(functools.partial(residual_coupling_blocks_forward,
                                    configs=configs, reverse=True))

    y = fwd(params, x, x_mask, g)
    z = rev(params, y, x_mask, g)
    jax.block_until_ready((y, z))
    print("KERNEL_OK")
</pallas_src>

<mosaic_0001>
module attributes {stable_mosaic.version = 11 : i64} {
  func.func @_coupling_kernel(%arg0: i32, %arg1: memref<1x64x8xf32, #tpu.memory_space<vmem>>, %arg2: memref<1x64x1xf32, #tpu.memory_space<vmem>>, %arg3: memref<1x3x1x16xf32, #tpu.memory_space<vmem>>, %arg4: memref<1x3x1x16xf32, #tpu.memory_space<vmem>>, %arg5: memref<8x16xbf16, #tpu.memory_space<vmem>>, %arg6: memref<1x16xf32, #tpu.memory_space<vmem>>, %arg7: memref<15x16x16xbf16, #tpu.memory_space<vmem>>, %arg8: memref<15x16x16xbf16, #tpu.memory_space<vmem>>, %arg9: memref<3x1x16xf32, #tpu.memory_space<vmem>>, %arg10: memref<3x1x16xf32, #tpu.memory_space<vmem>>, %arg11: memref<2x16x16xbf16, #tpu.memory_space<vmem>>, %arg12: memref<2x1x16xf32, #tpu.memory_space<vmem>>, %arg13: memref<3x16x16xbf16, #tpu.memory_space<vmem>>, %arg14: memref<3x1x16xf32, #tpu.memory_space<vmem>>, %arg15: memref<16x8xbf16, #tpu.memory_space<vmem>>, %arg16: memref<1x8xf32, #tpu.memory_space<vmem>>, %arg17: memref<1x64x8xf32, #tpu.memory_space<vmem>>, %arg18: memref<80x16xf32, #tpu.memory_space<vmem>>, %arg19: memref<64x16xf32, #tpu.memory_space<vmem>>) attributes {dimension_semantics = [#tpu.dimension_semantics<parallel>], iteration_bounds = array<i64: 2>, scalar_prefetch = 0 : i64, scratch_operands = 2 : i64, tpu.core_type = #tpu.core_type<tc>, window_params = [{transform_indices = @transform_0, window_bounds = array<i64: 1, 64, 8>}, {transform_indices = @transform_1, window_bounds = array<i64: 1, 64, 1>}, {transform_indices = @transform_2, window_bounds = array<i64: 1, 3, 1, 16>}, {transform_indices = @transform_3, window_bounds = array<i64: 1, 3, 1, 16>}, {pipeline_mode = #tpu.pipeline_mode<synchronous>, transform_indices = @transform_4, window_bounds = array<i64: 8, 16>}, {pipeline_mode = #tpu.pipeline_mode<synchronous>, transform_indices = @transform_5, window_bounds = array<i64: 1, 16>}, {pipeline_mode = #tpu.pipeline_mode<synchronous>, transform_indices = @transform_6, window_bounds = array<i64: 15, 16, 16>}, {pipeline_mode = #tpu.pipeline_mode<synchronous>, transform_indices = @transform_7, window_bounds = array<i64: 15, 16, 16>}, {pipeline_mode = #tpu.pipeline_mode<synchronous>, transform_indices = @transform_8, window_bounds = array<i64: 3, 1, 16>}, {pipeline_mode = #tpu.pipeline_mode<synchronous>, transform_indices = @transform_9, window_bounds = array<i64: 3, 1, 16>}, {pipeline_mode = #tpu.pipeline_mode<synchronous>, transform_indices = @transform_10, window_bounds = array<i64: 2, 16, 16>}, {pipeline_mode = #tpu.pipeline_mode<synchronous>, transform_indices = @transform_11, window_bounds = array<i64: 2, 1, 16>}, {pipeline_mode = #tpu.pipeline_mode<synchronous>, transform_indices = @transform_12, window_bounds = array<i64: 3, 16, 16>}, {pipeline_mode = #tpu.pipeline_mode<synchronous>, transform_indices = @transform_13, window_bounds = array<i64: 3, 1, 16>}, {pipeline_mode = #tpu.pipeline_mode<synchronous>, transform_indices = @transform_14, window_bounds = array<i64: 16, 8>}, {pipeline_mode = #tpu.pipeline_mode<synchronous>, transform_indices = @transform_15, window_bounds = array<i64: 1, 8>}, {transform_indices = @transform_16, window_bounds = array<i64: 1, 64, 8>}]} {
    %c0 = arith.constant 0 : index
    %c0_0 = arith.constant 0 : index
    %c0_1 = arith.constant 0 : index
    %0 = vector.load %arg2[%c0, %c0_0, %c0_1] : memref<1x64x1xf32, #tpu.memory_space<vmem>>, vector<1x64x1xf32>
    %1 = vector.shape_cast %0 : vector<1x64x1xf32> to vector<64x1xf32>
    %c0_2 = arith.constant 0 : index
    %c0_3 = arith.constant 0 : index
    %c0_4 = arith.constant 0 : index
    %2 = vector.load %arg1[%c0_2, %c0_3, %c0_4] : memref<1x64x8xf32, #tpu.memory_space<vmem>>, vector<1x64x8xf32>
    %3 = vector.shape_cast %2 : vector<1x64x8xf32> to vector<64x8xf32>
    %4 = arith.truncf %3 : vector<64x8xf32> to vector<64x8xbf16>
    %c0_5 = arith.constant 0 : index
    %c0_6 = arith.constant 0 : index
    %5 = vector.load %arg5[%c0_5, %c0_6] : memref<8x16xbf16, #tpu.memory_space<vmem>>, vector<8x16xbf16>
    %cst = arith.constant dense<0.000000e+00> : vector<64x16xf32>
    %6 = tpu.matmul %4, %5, %cst {dimension_numbers = #tpu.dot_dimension_numbers<[1], [0], [0], [1], [0, 0, 1, 1], [], []>} : vector<64x8xbf16>, vector<8x16xbf16>, vector<64x16xf32> -> vector<64x16xf32>
    %c0_7 = arith.constant 0 : index
    %c0_8 = arith.constant 0 : index
    %7 = vector.load %arg6[%c0_7, %c0_8] : memref<1x16xf32, #tpu.memory_space<vmem>>, vector<1x16xf32>
    %8 = vector.broadcast %7 : vector<1x16xf32> to vector<64x16xf32>
    %9 = arith.addf %6, %8 : vector<64x16xf32>
    %10 = vector.broadcast %1 : vector<64x1xf32> to vector<64x16xf32>
    %11 = arith.mulf %9, %10 : vector<64x16xf32>
    %cst_9 = arith.constant 0.000000e+00 : f32
    %12 = vector.broadcast %cst_9 : f32 to vector<80x16xf32>
    %c0_10 = arith.constant 0 : index
    %c0_11 = arith.constant 0 : index
    %13 = vector.load %arg18[%c0_10, %c0_11] : memref<80x16xf32, #tpu.memory_space<vmem>>, vector<80x16xf32>
    tpu.vector_store %arg18[%c0_10, %c0_11], %12 {strides = array<i32>} : memref<80x16xf32, #tpu.memory_space<vmem>>, vector<80x16xf32>,
    %c8 = arith.constant 8 : index
    %c0_12 = arith.constant 0 : index
    %14 = vector.load %arg18[%c8, %c0_12] : memref<80x16xf32, #tpu.memory_space<vmem>>, vector<64x16xf32>
    tpu.vector_store %arg18[%c8, %c0_12], %11 {strides = array<i32>} : memref<80x16xf32, #tpu.memory_space<vmem>>, vector<64x16xf32>,
    %cst_13 = arith.constant 0.000000e+00 : f32
    %15 = vector.broadcast %cst_13 : f32 to vector<64x16xf32>
    %c0_14 = arith.constant 0 : index
    %c0_15 = arith.constant 0 : index
    %16 = vector.load %arg19[%c0_14, %c0_15] : memref<64x16xf32, #tpu.memory_space<vmem>>, vector<64x16xf32>
    tpu.vector_store %arg19[%c0_14, %c0_15], %15 {strides = array<i32>} : memref<64x16xf32, #tpu.memory_space<vmem>>, vector<64x16xf32>,
    %cst_16 = arith.constant 0.000000e+00 : f32
    %17 = vector.broadcast %cst_16 : f32 to vector<64x16xf32>
    %cst_17 = arith.constant 0.000000e+00 : f32
    %18 = vector.broadcast %cst_17 : f32 to vector<64x16xf32>
    %c6 = arith.constant 6 : index
    %c0_18 = arith.constant 0 : index
    %19 = vector.load %arg18[%c6, %c0_18] : memref<80x16xf32, #tpu.memory_space<vmem>>, vector<64x16xf32>
    %20 = arith.truncf %19 : vector<64x16xf32> to vector<64x16xbf16>
    %c0_19 = arith.constant 0 : index
    %c0_20 = arith.constant 0 : index
    %c0_21 = arith.constant 0 : index
    %21 = vector.load %arg7[%c0_19, %c0_20, %c0_21] : memref<15x16x16xbf16, #tpu.memory_space<vmem>>, vector<1x16x16xbf16>
    %22 = vector.shape_cast %21 : vector<1x16x16xbf16> to vector<16x16xbf16>
    %cst_22 = arith.constant dense<0.000000e+00> : vector<64x16xf32>
    %23 = tpu.matmul %20, %22, %cst_22 {dimension_numbers = #tpu.dot_dimension_numbers<[1], [0], [0], [1], [0, 0, 1, 1], [], []>} : vector<64x16xbf16>, vector<16x16xbf16>, vector<64x16xf32> -> vector<64x16xf32>
    %24 = arith.addf %17, %23 : vector<64x16xf32>
    %c0_23 = arith.constant 0 : index
    %c0_24 = arith.constant 0 : index
    %c0_25 = arith.constant 0 : index
    %25 = vector.load %arg8[%c0_23, %c0_24, %c0_25] : memref<15x16x16xbf16, #tpu.memory_space<vmem>>, vector<1x16x16xbf16>
    %26 = vector.shape_cast %25 : vector<1x16x16xbf16> to vector<16x16xbf16>
    %cst_26 = arith.constant dense<0.000000e+00> : vector<64x16xf32>
    %27 = tpu.matmul %20, %26, %cst_26 {dimension_numbers = #tpu.dot_dimension_numbers<[1], [0], [0], [1], [0, 0, 1, 1], [], []>} : vector<64x16xbf16>, vector<16x16xbf16>, vector<64x16xf32> -> vector<64x16xf32>
    %28 = arith.addf %18, %27 : vector<64x16xf32>
    %c7 = arith.constant 7 : index
    %c0_27 = arith.constant 0 : index
    %29 = vector.load %arg18[%c7, %c0_27] : memref<80x16xf32, #tpu.memory_space<vmem>>, vector<64x16xf32>
    %30 = arith.truncf %29 : vector<64x16xf32> to vector<64x16xbf16>
    %c1 = arith.constant 1 : index
    %c0_28 = arith.constant 0 : index
    %c0_29 = arith.constant 0 : index
    %31 = vector.load %arg7[%c1, %c0_28, %c0_29] : memref<15x16x16xbf16, #tpu.memory_space<vmem>>, vector<1x16x16xbf16>
    %32 = vector.shape_cast %31 : vector<1x16x16xbf16> to vector<16x16xbf16>
    %cst_30 = arith.constant dense<0.000000e+00> : vector<64x16xf32>
    %33 = tpu.matmul %30, %32, %cst_30 {dimension_numbers = #tpu.dot_dimension_numbers<[1], [0], [0], [1], [0, 0, 1, 1], [], []>} : vector<64x16xbf16>, vector<16x16xbf16>, vector<64x16xf32> -> vector<64x16xf32>
    %34 = arith.addf %24, %33 : vector<64x16xf32>
    %c1_31 = arith.constant 1 : index
    %c0_32 = arith.constant 0 : index
    %c0_33 = arith.constant 0 : index
    %35 = vector.load %arg8[%c1_31, %c0_32, %c0_33] : memref<15x16x16xbf16, #tpu.memory_space<vmem>>, vector<1x16x16xbf16>
    %36 = vector.shape_cast %35 : vector<1x16x16xbf16> to vector<16x16xbf16>
    %cst_34 = arith.constant dense<0.000000e+00> : vector<64x16xf32>
    %37 = tpu.matmul %30, %36, %cst_34 {dimension_numbers = #tpu.dot_dimension_numbers<[1], [0], [0], [1], [0, 0, 1, 1], [], []>} : vector<64x16xbf16>, vector<16x16xbf16>, vector<64x16xf32> -> vector<64x16xf32>
    %38 = arith.addf %28, %37 : vector<64x16xf32>
    %c8_35 = arith.constant 8 : index
    %c0_36 = arith.constant 0 : index
    %39 = vector.load %arg18[%c8_35, %c0_36] : memref<80x16xf32, #tpu.memory_space<vmem>>, vector<64x16xf32>
    %40 = arith.truncf %39 : vector<64x16xf32> to vector<64x16xbf16>
    %c2 = arith.constant 2 : index
    %c0_37 = arith.constant 0 : index
    %c0_38 = arith.constant 0 : index
    %41 = vector.load %arg7[%c2, %c0_37, %c0_38] : memref<15x16x16xbf16, #tpu.memory_space<vmem>>, vector<1x16x16xbf16>
    %42 = vector.shape_cast %41 : vector<1x16x16xbf16> to vector<16x16xbf16>
    %cst_39 = arith.constant dense<0.000000e+00> : vector<64x16xf32>
    %43 = tpu.matmul %40, %42, %cst_39 {dimension_numbers = #tpu.dot_dimension_numbers<[1], [0], [0], [1], [0, 0, 1, 1], [], []>} : vector<64x16xbf16>, vector<16x16xbf16>, vector<64x16xf32> -> vector<64x16xf32>
    %44 = arith.addf %34, %43 : vector<64x16xf32>
    %c2_40 = arith.constant 2 : index
    %c0_41 = arith.constant 0 : index
    %c0_42 = arith.constant 0 : index
    %45 = vector.load %arg8[%c2_40, %c0_41, %c0_42] : memref<15x16x16xbf16, #tpu.memory_space<vmem>>, vector<1x16x16xbf16>
    %46 = vector.shape_cast %45 : vector<1x16x16xbf16> to vector<16x16xbf16>
    %cst_43 = arith.constant dense<0.000000e+00> : vector<64x16xf32>
    %47 = tpu.matmul %40, %46, %cst_43 {dimension_numbers = #tpu.dot_dimension_numbers<[1], [0], [0], [1], [0, 0, 1, 1], [], []>} : vector<64x16xbf16>, vector<16x16xbf16>, vector<64x16xf32> -> vector<64x16xf32>
    %48 = arith.addf %38, %47 : vector<64x16xf32>
    %c9 = arith.constant 9 : index
    %c0_44 = arith.constant 0 : index
    %49 = vector.load %arg18[%c9, %c0_44] : memref<80x16xf32, #tpu.memory_space<vmem>>, vector<64x16xf32>
    %50 = arith.truncf %49 : vector<64x16xf32> to vector<64x16xbf16>
    %c3 = arith.constant 3 : index
    %c0_45 = arith.constant 0 : index
    %c0_46 = arith.constant 0 : index
    %51 = vector.load %arg7[%c3, %c0_45, %c0_46] : memref<15x16x16xbf16, #tpu.memory_space<vmem>>, vector<1x16x16xbf16>
    %52 = vector.shape_cast %51 : vector<1x16x16xbf16> to vector<16x16xbf16>
    %cst_47 = arith.constant dense<0.000000e+00> : vector<64x16xf32>
    %53 = tpu.matmul %50, %52, %cst_47 {dimension_numbers = #tpu.dot_dimension_numbers<[1], [0], [0], [1], [0, 0, 1, 1], [], []>} : vector<64x16xbf16>, vector<16x16xbf16>, vector<64x16xf32> -> vector<64x16xf32>
    %54 = arith.addf %44, %53 : vector<64x16xf32>
    %c3_48 = arith.constant 3 : index
    %c0_49 = arith.constant 0 : index
    %c0_50 = arith.constant 0 : index
    %55 = vector.load %arg8[%c3_48, %c0_49, %c0_50] : memref<15x16x16xbf16, #tpu.memory_space<vmem>>, vector<1x16x16xbf16>
    %56 = vector.shape_cast %55 : vector<1x16x16xbf16> to vector<16x16xbf16>
    %cst_51 = arith.constant dense<0.000000e+00> : vector<64x16xf32>
    %57 = tpu.matmul %50, %56, %cst_51 {dimension_numbers = #tpu.dot_dimension_numbers<[1], [0], [0], [1], [0, 0, 1, 1], [], []>} : vector<64x16xbf16>, vector<16x16xbf16>, vector<64x16xf32> -> vector<64x16xf32>
    %58 = arith.addf %48, %57 : vector<64x16xf32>
    %c10 = arith.constant 10 : index
    %c0_52 = arith.constant 0 : index
    %59 = vector.load %arg18[%c10, %c0_52] : memref<80x16xf32, #tpu.memory_space<vmem>>, vector<64x16xf32>
    %60 = arith.truncf %59 : vector<64x16xf32> to vector<64x16xbf16>
    %c4 = arith.constant 4 : index
    %c0_53 = arith.constant 0 : index
    %c0_54 = arith.constant 0 : index
    %61 = vector.load %arg7[%c4, %c0_53, %c0_54] : memref<15x16x16xbf16, #tpu.memory_space<vmem>>, vector<1x16x16xbf16>
    %62 = vector.shape_cast %61 : vector<1x16x16xbf16> to vector<16x16xbf16>
    %cst_55 = arith.constant dense<0.000000e+00> : vector<64x16xf32>
    %63 = tpu.matmul %60, %62, %cst_55 {dimension_numbers = #tpu.dot_dimension_numbers<[1], [0], [0], [1], [0, 0, 1, 1], [], []>} : vector<64x16xbf16>, vector<16x16xbf16>, vector<64x16xf32> -> vector<64x16xf32>
    %64 = arith.addf %54, %63 : vector<64x16xf32>
    %c4_56 = arith.constant 4 : index
    %c0_57 = arith.constant 0 : index
    %c0_58 = arith.constant 0 : index
    %65 = vector.load %arg8[%c4_56, %c0_57, %c0_58] : memref<15x16x16xbf16, #tpu.memory_space<vmem>>, vector<1x16x16xbf16>
    %66 = vector.shape_cast %65 : vector<1x16x16xbf16> to vector<16x16xbf16>
    %cst_59 = arith.constant dense<0.000000e+00> : vector<64x16xf32>
    %67 = tpu.matmul %60, %66, %cst_59 {dimension_numbers = #tpu.dot_dimension_numbers<[1], [0], [0], [1], [0, 0, 1, 1], [], []>} : vector<64x16xbf16>, vector<16x16xbf16>, vector<64x16xf32> -> vector<64x16xf32>
    %68 = arith.addf %58, %67 : vector<64x16xf32>
    %c0_60 = arith.constant 0 : index
    %c0_61 = arith.constant 0 : index
    %c0_62 = arith.constant 0 : index
    %69 = vector.load %arg9[%c0_60, %c0_61, %c0_62] : memref<3x1x16xf32, #tpu.memory_space<vmem>>, vector<1x1x16xf32>
    %70 = vector.shape_cast %69 : vector<1x1x16xf32> to vector<1x16xf32>
    %71 = vector.broadcast %70 : vector<1x16xf32> to vector<64x16xf32>
    %72 = arith.addf %64, %71 : vector<64x16xf32>
    %c0_63 = arith.constant 0 : index
    %c0_64 = arith.constant 0 : index
    %c0_65 = arith.constant 0 : index
    %c0_66 = arith.constant 0 : index
    %73 = vector.load %arg3[%c0_63, %c0_64, %c0_65, %c0_66] : memref<1x3x1x16xf32, #tpu.memory_space<vmem>>, vector<1x1x1x16xf32>
    %74 = vector.shape_cast %73 : vector<1x1x1x16xf32> to vector<1x16xf32>
    %75 = vector.broadcast %74 : vector<1x16xf32> to vector<64x16xf32>
    %76 = arith.addf %72, %75 : vector<64x16xf32>
    %c0_67 = arith.constant 0 : index
    %c0_68 = arith.constant 0 : index
    %c0_69 = arith.constant 0 : index
    %77 = vector.load %arg10[%c0_67, %c0_68, %c0_69] : memref<3x1x16xf32, #tpu.memory_space<vmem>>, vector<1x1x16xf32>
    %78 = vector.shape_cast %77 : vector<1x1x16xf32> to vector<1x16xf32>
    %79 = vector.broadcast %78 : vector<1x16xf32> to vector<64x16xf32>
    %80 = arith.addf %68, %79 : vector<64x16xf32>
    %c0_70 = arith.constant 0 : index
    %c0_71 = arith.constant 0 : index
    %c0_72 = arith.constant 0 : index
    %c0_73 = arith.constant 0 : index
    %81 = vector.load %arg4[%c0_70, %c0_71, %c0_72, %c0_73] : memref<1x3x1x16xf32, #tpu.memory_space<vmem>>, vector<1x1x1x16xf32>
    %82 = vector.shape_cast %81 : vector<1x1x1x16xf32> to vector<1x16xf32>
    %83 = vector.broadcast %82 : vector<1x16xf32> to vector<64x16xf32>
    %84 = arith.addf %80, %83 : vector<64x16xf32>
    %85 = math.tanh %76 : vector<64x16xf32>
    %86 = arith.negf %84 : vector<64x16xf32>
    %87 = math.exp %86 : vector<64x16xf32>
    %cst_74 = arith.constant 1.000000e+00 : f32
    %88 = vector.broadcast %cst_74 : f32 to vector<64x16xf32>
    %89 = arith.addf %88, %87 : vector<64x16xf32>
    %90 = arith.divf %88, %89 : vector<64x16xf32>
    %91 = arith.mulf %85, %90 : vector<64x16xf32>
    %92 = arith.truncf %91 : vector<64x16xf32> to vector<64x16xbf16>
    %c0_75 = arith.constant 0 : index
    %c0_76 = arith.constant 0 : index
    %93 = vector.load %arg19[%c0_75, %c0_76] : memref<64x16xf32, #tpu.memory_space<vmem>>, vector<64x16xf32>
    %c0_77 = arith.constant 0 : index
    %c0_78 = arith.constant 0 : index
    %c0_79 = arith.constant 0 : index
    %94 = vector.load %arg13[%c0_77, %c0_78, %c0_79] : memref<3x16x16xbf16, #tpu.memory_space<vmem>>, vector<1x16x16xbf16>
    %95 = vector.shape_cast %94 : vector<1x16x16xbf16> to vector<16x16xbf16>
    %cst_80 = arith.constant dense<0.000000e+00> : vector<64x16xf32>
    %96 = tpu.matmul %92, %95, %cst_80 {dimension_numbers = #tpu.dot_dimension_numbers<[1], [0], [0], [1], [0, 0, 1, 1], [], []>} : vector<64x16xbf16>, vector<16x16xbf16>, vector<64x16xf32> -> vector<64x16xf32>
    %c0_81 = arith.constant 0 : index
    %c0_82 = arith.constant 0 : index
    %c0_83 = arith.constant 0 : index
    %97 = vector.load %arg14[%c0_81, %c0_82, %c0_83] : memref<3x1x16xf32, #tpu.memory_space<vmem>>, vector<1x1x16xf32>
    %98 = vector.shape_cast %97 : vector<1x1x16xf32> to vector<1x16xf32>
    %99 = vector.broadcast %98 : vector<1x16xf32> to vector<64x16xf32>
    %100 = arith.addf %96, %99 : vector<64x16xf32>
    %101 = arith.addf %93, %100 : vector<64x16xf32>
    %c0_84 = arith.constant 0 : index
    %c0_85 = arith.constant 0 : index
    %102 = vector.load %arg19[%c0_84, %c0_85] : memref<64x16xf32, #tpu.memory_space<vmem>>, vector<64x16xf32>
    tpu.vector_store %arg19[%c0_84, %c0_85], %101 {strides = array<i32>} : memref<64x16xf32, #tpu.memory_space<vmem>>, vector<64x16xf32>,
    %c0_86 = arith.constant 0 : index
    %c0_87 = arith.constant 0 : index
    %c0_88 = arith.constant 0 : index
    %103 = vector.load %arg11[%c0_86, %c0_87, %c0_88] : memref<2x16x16xbf16, #tpu.memory_space<vmem>>, vector<1x16x16xbf16>
    %104 = vector.shape_cast %103 : vector<1x16x16xbf16> to vector<16x16xbf16>
    %cst_89 = arith.constant dense<0.000000e+00> : vector<64x16xf32>
    %105 = tpu.matmul %92, %104, %cst_89 {dimension_numbers = #tpu.dot_dimension_numbers<[1], [0], [0], [1], [0, 0, 1, 1], [], []>} : vector<64x16xbf16>, vector<16x16xbf16>, vector<64x16xf32> -> vector<64x16xf32>
    %c0_90 = arith.constant 0 : index
    %c0_91 = arith.constant 0 : index
    %c0_92 = arith.constant 0 : index
    %106 = vector.load %arg12[%c0_90, %c0_91, %c0_92] : memref<2x1x16xf32, #tpu.memory_space<vmem>>, vector<1x1x16xf32>
    %107 = vector.shape_cast %106 : vector<1x1x16xf32> to vector<1x16xf32>
    %108 = vector.broadcast %107 : vector<1x16xf32> to vector<64x16xf32>
    %109 = arith.addf %105, %108 : vector<64x16xf32>
    %c8_93 = arith.constant 8 : index
    %c0_94 = arith.constant 0 : index
    %110 = vector.load %arg18[%c8_93, %c0_94] : memref<80x16xf32, #tpu.memory_space<vmem>>, vector<64x16xf32>
    %111 = arith.addf %110, %109 : vector<64x16xf32>
    %112 = vector.broadcast %1 : vector<64x1xf32> to vector<64x16xf32>
    %113 = arith.mulf %111, %112 : vector<64x16xf32>
    %c8_95 = arith.constant 8 : index
    %c0_96 = arith.constant 0 : index
    %114 = vector.load %arg18[%c8_95, %c0_96] : memref<80x16xf32, #tpu.memory_space<vmem>>, vector<64x16xf32>
    tpu.vector_store %arg18[%c8_95, %c0_96], %113 {strides = array<i32>} : memref<80x16xf32, #tpu.memory_space<vmem>>, vector<64x16xf32>,
    %cst_97 = arith.constant 0.000000e+00 : f32
    %115 = vector.broadcast %cst_97 : f32 to vector<64x16xf32>
    %cst_98 = arith.constant 0.000000e+00 : f32
    %116 = vector.broadcast %cst_98 : f32 to vector<64x16xf32>
    %c4_99 = arith.constant 4 : index
    %c0_100 = arith.constant 0 : index
    %117 = vector.load %arg18[%c4_99, %c0_100] : memref<80x16xf32, #tpu.memory_space<vmem>>, vector<64x16xf32>
    %118 = arith.truncf %117 : vector<64x16xf32> to vector<64x16xbf16>
    %c5 = arith.constant 5 : index
    %c0_101 = arith.constant 0 : index
    %c0_102 = arith.constant 0 : index
    %119 = vector.load %arg7[%c5, %c0_101, %c0_102] : memref<15x16x16xbf16, #tpu.memory_space<vmem>>, vector<1x16x16xbf16>
    %120 = vector.shape_cast %119 : vector<1x16x16xbf16> to vector<16x16xbf16>
    %cst_103 = arith.constant dense<0.000000e+00> : vector<64x16xf32>
    %121 = tpu.matmul %118, %120, %cst_103 {dimension_numbers = #tpu.dot_dimension_numbers<[1], [0], [0], [1], [0, 0, 1, 1], [], []>} : vector<64x16xbf16>, vector<16x16xbf16>, vector<64x16xf32> -> vector<64x16xf32>
    %122 = arith.addf %115, %121 : vector<64x16xf32>
    %c5_104 = arith.constant 5 : index
    %c0_105 = arith.constant 0 : index
    %c0_106 = arith.constant 0 : index
    %123 = vector.load %arg8[%c5_104, %c0_105, %c0_106] : memref<15x16x16xbf16, #tpu.memory_space<vmem>>, vector<1x16x16xbf16>
    %124 = vector.shape_cast %123 : vector<1x16x16xbf16> to vector<16x16xbf16>
    %cst_107 = arith.constant dense<0.000000e+00> : vector<64x16xf32>
    %125 = tpu.matmul %118, %124, %cst_107 {dimension_numbers = #tpu.dot_dimension_numbers<[1], [0], [0], [1], [0, 0, 1, 1], [], []>} : vector<64x16xbf16>, vector<16x16xbf16>, vector<64x16xf32> -> vector<64x16xf32>
    %126 = arith.addf %116, %125 : vector<64x16xf32>
    %c6_108 = arith.constant 6 : index
    %c0_109 = arith.constant 0 : index
    %127 = vector.load %arg18[%c6_108, %c0_109] : memref<80x16xf32, #tpu.memory_space<vmem>>, vector<64x16xf32>
    %128 = arith.truncf %127 : vector<64x16xf32> to vector<64x16xbf16>
    %c6_110 = arith.constant 6 : index
    %c0_111 = arith.constant 0 : index
    %c0_112 = arith.constant 0 : index
    %129 = vector.load %arg7[%c6_110, %c0_111, %c0_112] : memref<15x16x16xbf16, #tpu.memory_space<vmem>>, vector<1x16x16xbf16>
    %130 = vector.shape_cast %129 : vector<1x16x16xbf16> to vector<16x16xbf16>
    %cst_113 = arith.constant dense<0.000000e+00> : vector<64x16xf32>
    %131 = tpu.matmul %128, %130, %cst_113 {dimension_numbers = #tpu.dot_dimension_numbers<[1], [0], [0], [1], [0, 0, 1, 1], [], []>} : vector<64x16xbf16>, vector<16x16xbf16>, vector<64x16xf32> -> vector<64x16xf32>
    %132 = arith.addf %122, %131 : vector<64x16xf32>
    %c6_114 = arith.constant 6 : index
    %c0_115 = arith.constant 0 : index
    %c0_116 = arith.constant 0 : index
    %133 = vector.load %arg8[%c6_114, %c0_115, %c0_116] : memref<15x16x16xbf16, #tpu.memory_space<vmem>>, vector<1x16x16xbf16>
    %134 = vector.shape_cast %133 : vector<1x16x16xbf16> to vector<16x16xbf16>
    %cst_117 = arith.constant dense<0.000000e+00> : vector<64x16xf32>
    %135 = tpu.matmul %128, %134, %cst_117 {dimension_numbers = #tpu.dot_dimension_numbers<[1], [0], [0], [1], [0, 0, 1, 1], [], []>} : vector<64x16xbf16>, vector<16x16xbf16>, vector<64x16xf32> -> vector<64x16xf32>
    %136 = arith.addf %126, %135 : vector<64x16xf32>
    %c8_118 = arith.constant 8 : index
    %c0_119 = arith.constant 0 : index
    %137 = vector.load %arg18[%c8_118, %c0_119] : memref<80x16xf32, #tpu.memory_space<vmem>>, vector<64x16xf32>
    %138 = arith.truncf %137 : vector<64x16xf32> to vector<64x16xbf16>
    %c7_120 = arith.constant 7 : index
    %c0_121 = arith.constant 0 : index
    %c0_122 = arith.constant 0 : index
    %139 = vector.load %arg7[%c7_120, %c0_121, %c0_122] : memref<15x16x16xbf16, #tpu.memory_space<vmem>>, vector<1x16x16xbf16>
    %140 = vector.shape_cast %139 : vector<1x16x16xbf16> to vector<16x16xbf16>
    %cst_123 = arith.constant dense<0.000000e+00> : vector<64x16xf32>
    %141 = tpu.matmul %138, %140, %cst_123 {dimension_numbers = #tpu.dot_dimension_numbers<[1], [0], [0], [1], [0, 0, 1, 1], [], []>} : vector<64x16xbf16>, vector<16x16xbf16>, vector<64x16xf32> -> vector<64x16xf32>
    %142 = arith.addf %132, %141 : vector<64x16xf32>
    %c7_124 = arith.constant 7 : index
    %c0_125 = arith.constant 0 : index
    %c0_126 = arith.constant 0 : index
    %143 = vector.load %arg8[%c7_124, %c0_125, %c0_126] : memref<15x16x16xbf16, #tpu.memory_space<vmem>>, vector<1x16x16xbf16>
    %144 = vector.shape_cast %143 : vector<1x16x16xbf16> to vector<16x16xbf16>
    %cst_127 = arith.constant dense<0.000000e+00> : vector<64x16xf32>
    %145 = tpu.matmul %138, %144, %cst_127 {dimension_numbers = #tpu.dot_dimension_numbers<[1], [0], [0], [1], [0, 0, 1, 1], [], []>} : vector<64x16xbf16>, vector<16x16xbf16>, vector<64x16xf32> -> vector<64x16xf32>
    %146 = arith.addf %136, %145 : vector<64x16xf32>
    %c10_128 = arith.constant 10 : index
    %c0_129 = arith.constant 0 : index
    %147 = vector.load %arg18[%c10_128, %c0_129] : memref<80x16xf32, #tpu.memory_space<vmem>>, vector<64x16xf32>
    %148 = arith.truncf %147 : vector<64x16xf32> to vector<64x16xbf16>
    %c8_130 = arith.constant 8 : index
    %c0_131 = arith.constant 0 : index
    %c0_132 = arith.constant 0 : index
    %149 = vector.load %arg7[%c8_130, %c0_131, %c0_132] : memref<15x16x16xbf16, #tpu.memory_space<vmem>>, vector<1x16x16xbf16>
    %150 = vector.shape_cast %149 : vector<1x16x16xbf16> to vector<16x16xbf16>
    %cst_133 = arith.constant dense<0.000000e+00> : vector<64x16xf32>
    %151 = tpu.matmul %148, %150, %cst_133 {dimension_numbers = #tpu.dot_dimension_numbers<[1], [0], [0], [1], [0, 0, 1, 1], [], []>} : vector<64x16xbf16>, vector<16x16xbf16>, vector<64x16xf32> -> vector<64x16xf32>
    %152 = arith.addf %142, %151 : vector<64x16xf32>
    %c8_134 = arith.constant 8 : index
    %c0_135 = arith.constant 0 : index
    %c0_136 = arith.constant 0 : index
    %153 = vector.load %arg8[%c8_134, %c0_135, %c0_136] : memref<15x16x16xbf16, #tpu.memory_space<vmem>>, vector<1x16x16xbf16>
    %154 = vector.shape_cast %153 : vector<1x16x16xbf16> to vector<16x16xbf16>
    %cst_137 = arith.constant dense<0.000000e+00> : vector<64x16xf32>
    %155 = tpu.matmul %148, %154, %cst_137 {dimension_numbers = #tpu.dot_dimension_numbers<[1], [0], [0], [1], [0, 0, 1, 1], [], []>} : vector<64x16xbf16>, vector<16x16xbf16>, vector<64x16xf32> -> vector<64x16xf32>
    %156 = arith.addf %146, %155 : vector<64x16xf32>
    %c12 = arith.constant 12 : index
    %c0_138 = arith.constant 0 : index
    %157 = vector.load %arg18[%c12, %c0_138] : memref<80x16xf32, #tpu.memory_space<vmem>>, vector<64x16xf32>
    %158 = arith.truncf %157 : vector<64x16xf32> to vector<64x16xbf16>
    %c9_139 = arith.constant 9 : index
    %c0_140 = arith.constant 0 : index
    %c0_141 = arith.constant 0 : index
    %159 = vector.load %arg7[%c9_139, %c0_140, %c0_141] : memref<15x16x16xbf16, #tpu.memory_space<vmem>>, vector<1x16x16xbf16>
    %160 = vector.shape_cast %159 : vector<1x16x16xbf16> to vector<16x16xbf16>
    %cst_142 = arith.constant dense<0.000000e+00> : vector<64x16xf32>
    %161 = tpu.matmul %158, %160, %cst_142 {dimension_numbers = #tpu.dot_dimension_numbers<[1], [0], [0], [1], [0, 0, 1, 1], [], []>} : vector<64x16xbf16>, vector<16x16xbf16>, vector<64x16xf32> -> vector<64x16xf32>
    %162 = arith.addf %152, %161 : vector<64x16xf32>
    %c9_143 = arith.constant 9 : index
    %c0_144 = arith.constant 0 : index
    %c0_145 = arith.constant 0 : index
    %163 = vector.load %arg8[%c9_143, %c0_144, %c0_145] : memref<15x16x16xbf16, #tpu.memory_space<vmem>>, vector<1x16x16xbf16>
    %164 = vector.shape_cast %163 : vector<1x16x16xbf16> to vector<16x16xbf16>
    %cst_146 = arith.constant dense<0.000000e+00> : vector<64x16xf32>
    %165 = tpu.matmul %158, %164, %cst_146 {dimension_numbers = #tpu.dot_dimension_numbers<[1], [0], [0], [1], [0, 0, 1, 1], [], []>} : vector<64x16xbf16>, vector<16x16xbf16>, vector<64x16xf32> -> vector<64x16xf32>
    %166 = arith.addf %156, %165 : vector<64x16xf32>
    %c1_147 = arith.constant 1 : index
    %c0_148 = arith.constant 0 : index
    %c0_149 = arith.constant 0 : index
    %167 = vector.load %arg9[%c1_147, %c0_148, %c0_149] : memref<3x1x16xf32, #tpu.memory_space<vmem>>, vector<1x1x16xf32>
    %168 = vector.shape_cast %167 : vector<1x1x16xf32> to vector<1x16xf32>
    %169 = vector.broadcast %168 : vector<1x16xf32> to vector<64x16xf32>
    %170 = arith.addf %162, %169 : vector<64x16xf32>
    %c0_150 = arith.constant 0 : index
    %c1_151 = arith.constant 1 : index
    %c0_152 = arith.constant 0 : index
    %c0_153 = arith.constant 0 : index
    %171 = vector.load %arg3[%c0_150, %c1_151, %c0_152, %c0_153] : memref<1x3x1x16xf32, #tpu.memory_space<vmem>>, vector<1x1x1x16xf32>
    %172 = vector.shape_cast %171 : vector<1x1x1x16xf32> to vector<1x16xf32>
    %173 = vector.broadcast %172 : vector<1x16xf32> to vector<64x16xf32>
    %174 = arith.addf %170, %173 : vector<64x16xf32>
    %c1_154 = arith.constant 1 : index
    %c0_155 = arith.constant 0 : index
    %c0_156 = arith.constant 0 : index
    %175 = vector.load %arg10[%c1_154, %c0_155, %c0_156] : memref<3x1x16xf32, #tpu.memory_space<vmem>>, vector<1x1x16xf32>
    %176 = vector.shape_cast %175 : vector<1x1x16xf32> to vector<1x16xf32>
    %177 = vector.broadcast %176 : vector<1x16xf32> to vector<64x16xf32>
    %178 = arith.addf %166, %177 : vector<64x16xf32>
    %c0_157 = arith.constant 0 : index
    %c1_158 = arith.constant 1 : index
    %c0_159 = arith.constant 0 : index
    %c0_160 = arith.constant 0 : index
    %179 = vector.load %arg4[%c0_157, %c1_158, %c0_159, %c0_160] : memref<1x3x1x16xf32, #tpu.memory_space<vmem>>, vector<1x1x1x16xf32>
    %180 = vector.shape_cast %179 : vector<1x1x1x16xf32> to vector<1x16xf32>
    %181 = vector.broadcast %180 : vector<1x16xf32> to vector<64x16xf32>
    %182 = arith.addf %178, %181 : vector<64x16xf32>
    %183 = math.tanh %174 : vector<64x16xf32>
    %184 = arith.negf %182 : vector<64x16xf32>
    %185 = math.exp %184 : vector<64x16xf32>
    %cst_161 = arith.constant 1.000000e+00 : f32
    %186 = vector.broadcast %cst_161 : f32 to vector<64x16xf32>
    %187 = arith.addf %186, %185 : vector<64x16xf32>
    %188 = arith.divf %186, %187 : vector<64x16xf32>
    %189 = arith.mulf %183, %188 : vector<64x16xf32>
    %190 = arith.truncf %189 : vector<64x16xf32> to vector<64x16xbf16>
    %c0_162 = arith.constant 0 : index
    %c0_163 = arith.constant 0 : index
    %191 = vector.load %arg19[%c0_162, %c0_163] : memref<64x16xf32, #tpu.memory_space<vmem>>, vector<64x16xf32>
    %c1_164 = arith.constant 1 : index
    %c0_165 = arith.constant 0 : index
    %c0_166 = arith.constant 0 : index
    %192 = vector.load %arg13[%c1_164, %c0_165, %c0_166] : memref<3x16x16xbf16, #tpu.memory_space<vmem>>, vector<1x16x16xbf16>
    %193 = vector.shape_cast %192 : vector<1x16x16xbf16> to vector<16x16xbf16>
    %cst_167 = arith.constant dense<0.000000e+00> : vector<64x16xf32>
    %194 = tpu.matmul %190, %193, %cst_167 {dimension_numbers = #tpu.dot_dimension_numbers<[1], [0], [0], [1], [0, 0, 1, 1], [], []>} : vector<64x16xbf16>, vector<16x16xbf16>, vector<64x16xf32> -> vector<64x16xf32>
    %c1_168 = arith.constant 1 : index
    %c0_169 = arith.constant 0 : index
    %c0_170 = arith.constant 0 : index
    %195 = vector.load %arg14[%c1_168, %c0_169, %c0_170] : memref<3x1x16xf32, #tpu.memory_space<vmem>>, vector<1x1x16xf32>
    %196 = vector.shape_cast %195 : vector<1x1x16xf32> to vector<1x16xf32>
    %197 = vector.broadcast %196 : vector<1x16xf32> to vector<64x16xf32>
    %198 = arith.addf %194, %197 : vector<64x16xf32>
    %199 = arith.addf %191, %198 : vector<64x16xf32>
    %c0_171 = arith.constant 0 : index
    %c0_172 = arith.constant 0 : index
    %200 = vector.load %arg19[%c0_171, %c0_172] : memref<64x16xf32, #tpu.memory_space<vmem>>, vector<64x16xf32>
    tpu.vector_store %arg19[%c0_171, %c0_172], %199 {strides = array<i32>} : memref<64x16xf32, #tpu.memory_space<vmem>>, vector<64x16xf32>,
    %c1_173 = arith.constant 1 : index
    %c0_174 = arith.constant 0 : index
    %c0_175 = arith.constant 0 : index
    %201 = vector.load %arg11[%c1_173, %c0_174, %c0_175] : memref<2x16x16xbf16, #tpu.memory_space<vmem>>, vector<1x16x16xbf16>
    %202 = vector.shape_cast %201 : vector<1x16x16xbf16> to vector<16x16xbf16>
    %cst_176 = arith.constant dense<0.000000e+00> : vector<64x16xf32>
    %203 = tpu.matmul %190, %202, %cst_176 {dimension_numbers = #tpu.dot_dimension_numbers<[1], [0], [0], [1], [0, 0, 1, 1], [], []>} : vector<64x16xbf16>, vector<16x16xbf16>, vector<64x16xf32> -> vector<64x16xf32>
    %c1_177 = arith.constant 1 : index
    %c0_178 = arith.constant 0 : index
    %c0_179 = arith.constant 0 : index
    %204 = vector.load %arg12[%c1_177, %c0_178, %c0_179] : memref<2x1x16xf32, #tpu.memory_space<vmem>>, vector<1x1x16xf32>
    %205 = vector.shape_cast %204 : vector<1x1x16xf32> to vector<1x16xf32>
    %206 = vector.broadcast %205 : vector<1x16xf32> to vector<64x16xf32>
    %207 = arith.addf %203, %206 : vector<64x16xf32>
    %c8_180 = arith.constant 8 : index
    %c0_181 = arith.constant 0 : index
    %208 = vector.load %arg18[%c8_180, %c0_181] : memref<80x16xf32, #tpu.memory_space<vmem>>, vector<64x16xf32>
    %209 = arith.addf %208, %207 : vector<64x16xf32>
    %210 = vector.broadcast %1 : vector<64x1xf32> to vector<64x16xf32>
    %211 = arith.mulf %209, %210 : vector<64x16xf32>
    %c8_182 = arith.constant 8 : index
    %c0_183 = arith.constant 0 : index
    %212 = vector.load %arg18[%c8_182, %c0_183] : memref<80x16xf32, #tpu.memory_space<vmem>>, vector<64x16xf32>
    tpu.vector_store %arg18[%c8_182, %c0_183], %211 {strides = array<i32>} : memref<80x16xf32, #tpu.memory_space<vmem>>, vector<64x16xf32>,
    %cst_184 = arith.constant 0.000000e+00 : f32
    %213 = vector.broadcast %cst_184 : f32 to vector<64x16xf32>
    %cst_185 = arith.constant 0.000000e+00 : f32
    %214 = vector.broadcast %cst_185 : f32 to vector<64x16xf32>
    %c0_186 = arith.constant 0 : index
    %c0_187 = arith.constant 0 : index
    %215 = vector.load %arg18[%c0_186, %c0_187] : memref<80x16xf32, #tpu.memory_space<vmem>>, vector<64x16xf32>
    %216 = arith.truncf %215 : vector<64x16xf32> to vector<64x16xbf16>
    %c10_188 = arith.constant 10 : index
    %c0_189 = arith.constant 0 : index
    %c0_190 = arith.constant 0 : index
    %217 = vector.load %arg7[%c10_188, %c0_189, %c0_190] : memref<15x16x16xbf16, #tpu.memory_space<vmem>>, vector<1x16x16xbf16>
    %218 = vector.shape_cast %217 : vector<1x16x16xbf16> to vector<16x16xbf16>
    %cst_191 = arith.constant dense<0.000000e+00> : vector<64x16xf32>
    %219 = tpu.matmul %216, %218, %cst_191 {dimension_numbers = #tpu.dot_dimension_numbers<[1], [0], [0], [1], [0, 0, 1, 1], [], []>} : vector<64x16xbf16>, vector<16x16xbf16>, vector<64x16xf32> -> vector<64x16xf32>
    %220 = arith.addf %213, %219 : vector<64x16xf32>
    %c10_192 = arith.constant 10 : index
    %c0_193 = arith.constant 0 : index
    %c0_194 = arith.constant 0 : index
    %221 = vector.load %arg8[%c10_192, %c0_193, %c0_194] : memref<15x16x16xbf16, #tpu.memory_space<vmem>>, vector<1x16x16xbf16>
    %222 = vector.shape_cast %221 : vector<1x16x16xbf16> to vector<16x16xbf16>
    %cst_195 = arith.constant dense<0.000000e+00> : vector<64x16xf32>
    %223 = tpu.matmul %216, %222, %cst_195 {dimension_numbers = #tpu.dot_dimension_numbers<[1], [0], [0], [1], [0, 0, 1, 1], [], []>} : vector<64x16xbf16>, vector<16x16xbf16>, vector<64x16xf32> -> vector<64x16xf32>
    %224 = arith.addf %214, %223 : vector<64x16xf32>
    %c4_196 = arith.constant 4 : index
    %c0_197 = arith.constant 0 : index
    %225 = vector.load %arg18[%c4_196, %c0_197] : memref<80x16xf32, #tpu.memory_space<vmem>>, vector<64x16xf32>
    %226 = arith.truncf %225 : vector<64x16xf32> to vector<64x16xbf16>
    %c11 = arith.constant 11 : index
    %c0_198 = arith.constant 0 : index
    %c0_199 = arith.constant 0 : index
    %227 = vector.load %arg7[%c11, %c0_198, %c0_199] : memref<15x16x16xbf16, #tpu.memory_space<vmem>>, vector<1x16x16xbf16>
    %228 = vector.shape_cast %227 : vector<1x16x16xbf16> to vector<16x16xbf16>
    %cst_200 = arith.constant dense<0.000000e+00> : vector<64x16xf32>
    %229 = tpu.matmul %226, %228, %cst_200 {dimension_numbers = #tpu.dot_dimension_numbers<[1], [0], [0], [1], [0, 0, 1, 1], [], []>} : vector<64x16xbf16>, vector<16x16xbf16>, vector<64x16xf32> -> vector<64x16xf32>
    %230 = arith.addf %220, %229 : vector<64x16xf32>
    %c11_201 = arith.constant 11 : index
    %c0_202 = arith.constant 0 : index
    %c0_203 = arith.constant 0 : index
    %231 = vector.load %arg8[%c11_201, %c0_202, %c0_203] : memref<15x16x16xbf16, #tpu.memory_space<vmem>>, vector<1x16x16xbf16>
    %232 = vector.shape_cast %231 : vector<1x16x16xbf16> to vector<16x16xbf16>
    %cst_204 = arith.constant dense<0.000000e+00> : vector<64x16xf32>
    %233 = tpu.matmul %226, %232, %cst_204 {dimension_numbers = #tpu.dot_dimension_numbers<[1], [0], [0], [1], [0, 0, 1, 1], [], []>} : vector<64x16xbf16>, vector<16x16xbf16>, vector<64x16xf32> -> vector<64x16xf32>
    %234 = arith.addf %224, %233 : vector<64x16xf32>
    %c8_205 = arith.constant 8 : index
    %c0_206 = arith.constant 0 : index
    %235 = vector.load %arg18[%c8_205, %c0_206] : memref<80x16xf32, #tpu.memory_space<vmem>>, vector<64x16xf32>
    %236 = arith.truncf %235 : vector<64x16xf32> to vector<64x16xbf16>
    %c12_207 = arith.constant 12 : index
    %c0_208 = arith.constant 0 : index
    %c0_209 = arith.constant 0 : index
    %237 = vector.load %arg7[%c12_207, %c0_208, %c0_209] : memref<15x16x16xbf16, #tpu.memory_space<vmem>>, vector<1x16x16xbf16>
    %238 = vector.shape_cast %237 : vector<1x16x16xbf16> to vector<16x16xbf16>
    %cst_210 = arith.constant dense<0.000000e+00> : vector<64x16xf32>
    %239 = tpu.matmul %236, %238, %cst_210 {dimension_numbers = #tpu.dot_dimension_numbers<[1], [0], [0], [1], [0, 0, 1, 1], [], []>} : vector<64x16xbf16>, vector<16x16xbf16>, vector<64x16xf32> -> vector<64x16xf32>
    %240 = arith.addf %230, %239 : vector<64x16xf32>
    %c12_211 = arith.constant 12 : index
    %c0_212 = arith.constant 0 : index
    %c0_213 = arith.constant 0 : index
    %241 = vector.load %arg8[%c12_211, %c0_212, %c0_213] : memref<15x16x16xbf16, #tpu.memory_space<vmem>>, vector<1x16x16xbf16>
    %242 = vector.shape_cast %241 : vector<1x16x16xbf16> to vector<16x16xbf16>
    %cst_214 = arith.constant dense<0.000000e+00> : vector<64x16xf32>
    %243 = tpu.matmul %236, %242, %cst_214 {dimension_numbers = #tpu.dot_dimension_numbers<[1], [0], [0], [1], [0, 0, 1, 1], [], []>} : vector<64x16xbf16>, vector<16x16xbf16>, vector<64x16xf32> -> vector<64x16xf32>
    %244 = arith.addf %234, %243 : vector<64x16xf32>
    %c12_215 = arith.constant 12 : index
    %c0_216 = arith.constant 0 : index
    %245 = vector.load %arg18[%c12_215, %c0_216] : memref<80x16xf32, #tpu.memory_space<vmem>>, vector<64x16xf32>
    %246 = arith.truncf %245 : vector<64x16xf32> to vector<64x16xbf16>
    %c13 = arith.constant 13 : index
    %c0_217 = arith.constant 0 : index
    %c0_218 = arith.constant 0 : index
    %247 = vector.load %arg7[%c13, %c0_217, %c0_218] : memref<15x16x16xbf16, #tpu.memory_space<vmem>>, vector<1x16x16xbf16>
    %248 = vector.shape_cast %247 : vector<1x16x16xbf16> to vector<16x16xbf16>
    %cst_219 = arith.constant dense<0.000000e+00> : vector<64x16xf32>
    %249 = tpu.matmul %246, %248, %cst_219 {dimension_numbers = #tpu.dot_dimension_numbers<[1], [0], [0], [1], [0, 0, 1, 1], [], []>} : vector<64x16xbf16>, vector<16x16xbf16>, vector<64x16xf32> -> vector<64x16xf32>
    %250 = arith.addf %240, %249 : vector<64x16xf32>
    %c13_220 = arith.constant 13 : index
    %c0_221 = arith.constant 0 : index
    %c0_222 = arith.constant 0 : index
    %251 = vector.load %arg8[%c13_220, %c0_221, %c0_222] : memref<15x16x16xbf16, #tpu.memory_space<vmem>>, vector<1x16x16xbf16>
    %252 = vector.shape_cast %251 : vector<1x16x16xbf16> to vector<16x16xbf16>
    %cst_223 = arith.constant dense<0.000000e+00> : vector<64x16xf32>
    %253 = tpu.matmul %246, %252, %cst_223 {dimension_numbers = #tpu.dot_dimension_numbers<[1], [0], [0], [1], [0, 0, 1, 1], [], []>} : vector<64x16xbf16>, vector<16x16xbf16>, vector<64x16xf32> -> vector<64x16xf32>
    %254 = arith.addf %244, %253 : vector<64x16xf32>
    %c16 = arith.constant 16 : index
    %c0_224 = arith.constant 0 : index
    %255 = vector.load %arg18[%c16, %c0_224] : memref<80x16xf32, #tpu.memory_space<vmem>>, vector<64x16xf32>
    %256 = arith.truncf %255 : vector<64x16xf32> to vector<64x16xbf16>
    %c14 = arith.constant 14 : index
    %c0_225 = arith.constant 0 : index
    %c0_226 = arith.constant 0 : index
    %257 = vector.load %arg7[%c14, %c0_225, %c0_226] : memref<15x16x16xbf16, #tpu.memory_space<vmem>>, vector<1x16x16xbf16>
    %258 = vector.shape_cast %257 : vector<1x16x16xbf16> to vector<16x16xbf16>
    %cst_227 = arith.constant dense<0.000000e+00> : vector<64x16xf32>
    %259 = tpu.matmul %256, %258, %cst_227 {dimension_numbers = #tpu.dot_dimension_numbers<[1], [0], [0], [1], [0, 0, 1, 1], [], []>} : vector<64x16xbf16>, vector<16x16xbf16>, vector<64x16xf32> -> vector<64x16xf32>
    %260 = arith.addf %250, %259 : vector<64x16xf32>
    %c14_228 = arith.constant 14 : index
    %c0_229 = arith.constant 0 : index
    %c0_230 = arith.constant 0 : index
    %261 = vector.load %arg8[%c14_228, %c0_229, %c0_230] : memref<15x16x16xbf16, #tpu.memory_space<vmem>>, vector<1x16x16xbf16>
    %262 = vector.shape_cast %261 : vector<1x16x16xbf16> to vector<16x16xbf16>
    %cst_231 = arith.constant dense<0.000000e+00> : vector<64x16xf32>
    %263 = tpu.matmul %256, %262, %cst_231 {dimension_numbers = #tpu.dot_dimension_numbers<[1], [0], [0], [1], [0, 0, 1, 1], [], []>} : vector<64x16xbf16>, vector<16x16xbf16>, vector<64x16xf32> -> vector<64x16xf32>
    %264 = arith.addf %254, %263 : vector<64x16xf32>
    %c2_232 = arith.constant 2 : index
    %c0_233 = arith.constant 0 : index
    %c0_234 = arith.constant 0 : index
    %265 = vector.load %arg9[%c2_232, %c0_233, %c0_234] : memref<3x1x16xf32, #tpu.memory_space<vmem>>, vector<1x1x16xf32>
    %266 = vector.shape_cast %265 : vector<1x1x16xf32> to vector<1x16xf32>
    %267 = vector.broadcast %266 : vector<1x16xf32> to vector<64x16xf32>
    %268 = arith.addf %260, %267 : vector<64x16xf32>
    %c0_235 = arith.constant 0 : index
    %c2_236 = arith.constant 2 : index
    %c0_237 = arith.constant 0 : index
    %c0_238 = arith.constant 0 : index
    %269 = vector.load %arg3[%c0_235, %c2_236, %c0_237, %c0_238] : memref<1x3x1x16xf32, #tpu.memory_space<vmem>>, vector<1x1x1x16xf32>
    %270 = vector.shape_cast %269 : vector<1x1x1x16xf32> to vector<1x16xf32>
    %271 = vector.broadcast %270 : vector<1x16xf32> to vector<64x16xf32>
    %272 = arith.addf %268, %271 : vector<64x16xf32>
    %c2_239 = arith.constant 2 : index
    %c0_240 = arith.constant 0 : index
    %c0_241 = arith.constant 0 : index
    %273 = vector.load %arg10[%c2_239, %c0_240, %c0_241] : memref<3x1x16xf32, #tpu.memory_space<vmem>>, vector<1x1x16xf32>
    %274 = vector.shape_cast %273 : vector<1x1x16xf32> to vector<1x16xf32>
    %275 = vector.broadcast %274 : vector<1x16xf32> to vector<64x16xf32>
    %276 = arith.addf %264, %275 : vector<64x16xf32>
    %c0_242 = arith.constant 0 : index
    %c2_243 = arith.constant 2 : index
    %c0_244 = arith.constant 0 : index
    %c0_245 = arith.constant 0 : index
    %277 = vector.load %arg4[%c0_242, %c2_243, %c0_244, %c0_245] : memref<1x3x1x16xf32, #tpu.memory_space<vmem>>, vector<1x1x1x16xf32>
    %278 = vector.shape_cast %277 : vector<1x1x1x16xf32> to vector<1x16xf32>
    %279 = vector.broadcast %278 : vector<1x16xf32> to vector<64x16xf32>
    %280 = arith.addf %276, %279 : vector<64x16xf32>
    %281 = math.tanh %272 : vector<64x16xf32>
    %282 = arith.negf %280 : vector<64x16xf32>
    %283 = math.exp %282 : vector<64x16xf32>
    %cst_246 = arith.constant 1.000000e+00 : f32
    %284 = vector.broadcast %cst_246 : f32 to vector<64x16xf32>
    %285 = arith.addf %284, %283 : vector<64x16xf32>
    %286 = arith.divf %284, %285 : vector<64x16xf32>
    %287 = arith.mulf %281, %286 : vector<64x16xf32>
    %288 = arith.truncf %287 : vector<64x16xf32> to vector<64x16xbf16>
    %c0_247 = arith.constant 0 : index
    %c0_248 = arith.constant 0 : index
    %289 = vector.load %arg19[%c0_247, %c0_248] : memref<64x16xf32, #tpu.memory_space<vmem>>, vector<64x16xf32>
    %c2_249 = arith.constant 2 : index
    %c0_250 = arith.constant 0 : index
    %c0_251 = arith.constant 0 : index
    %290 = vector.load %arg13[%c2_249, %c0_250, %c0_251] : memref<3x16x16xbf16, #tpu.memory_space<vmem>>, vector<1x16x16xbf16>
    %291 = vector.shape_cast %290 : vector<1x16x16xbf16> to vector<16x16xbf16>
    %cst_252 = arith.constant dense<0.000000e+00> : vector<64x16xf32>
    %292 = tpu.matmul %288, %291, %cst_252 {dimension_numbers = #tpu.dot_dimension_numbers<[1], [0], [0], [1], [0, 0, 1, 1], [], []>} : vector<64x16xbf16>, vector<16x16xbf16>, vector<64x16xf32> -> vector<64x16xf32>
    %c2_253 = arith.constant 2 : index
    %c0_254 = arith.constant 0 : index
    %c0_255 = arith.constant 0 : index
    %293 = vector.load %arg14[%c2_253, %c0_254, %c0_255] : memref<3x1x16xf32, #tpu.memory_space<vmem>>, vector<1x1x16xf32>
    %294 = vector.shape_cast %293 : vector<1x1x16xf32> to vector<1x16xf32>
    %295 = vector.broadcast %294 : vector<1x16xf32> to vector<64x16xf32>
    %296 = arith.addf %292, %295 : vector<64x16xf32>
    %297 = arith.addf %289, %296 : vector<64x16xf32>
    %c0_256 = arith.constant 0 : index
    %c0_257 = arith.constant 0 : index
    %298 = vector.load %arg19[%c0_256, %c0_257] : memref<64x16xf32, #tpu.memory_space<vmem>>, vector<64x16xf32>
    tpu.vector_store %arg19[%c0_256, %c0_257], %297 {strides = array<i32>} : memref<64x16xf32, #tpu.memory_space<vmem>>, vector<64x16xf32>,
    %c0_258 = arith.constant 0 : index
    %c0_259 = arith.constant 0 : index
    %299 = vector.load %arg19[%c0_258, %c0_259] : memref<64x16xf32, #tpu.memory_space<vmem>>, vector<64x16xf32>
    %300 = vector.broadcast %1 : vector<64x1xf32> to vector<64x16xf32>
    %301 = arith.mulf %299, %300 : vector<64x16xf32>
    %302 = arith.truncf %301 : vector<64x16xf32> to vector<64x16xbf16>
    %c0_260 = arith.constant 0 : index
    %c0_261 = arith.constant 0 : index
    %303 = vector.load %arg15[%c0_260, %c0_261] : memref<16x8xbf16, #tpu.memory_space<vmem>>, vector<16x8xbf16>
    %cst_262 = arith.constant dense<0.000000e+00> : vector<64x8xf32>
    %304 = tpu.matmul %302, %303, %cst_262 {dimension_numbers = #tpu.dot_dimension_numbers<[1], [0], [0], [1], [0, 0, 1, 1], [], []>} : vector<64x16xbf16>, vector<16x8xbf16>, vector<64x8xf32> -> vector<64x8xf32>
    %c0_263 = arith.constant 0 : index
    %c0_264 = arith.constant 0 : index
    %305 = vector.load %arg16[%c0_263, %c0_264] : memref<1x8xf32, #tpu.memory_space<vmem>>, vector<1x8xf32>
    %306 = vector.broadcast %305 : vector<1x8xf32> to vector<64x8xf32>
    %307 = arith.addf %304, %306 : vector<64x8xf32>
    %308 = vector.broadcast %1 : vector<64x1xf32> to vector<64x8xf32>
    %309 = arith.mulf %307, %308 : vector<64x8xf32>
    %310 = tpu.iota {dimensions = array<i32: 1>} : vector<64x8xi32>
    %c4_i32 = arith.constant 4 : i32
    %311 = vector.broadcast %c4_i32 : i32 to vector<64x8xi32>
    %312 = arith.cmpi slt, %310, %311 : vector<64x8xi32>
    %cst_265 = arith.constant 1.000000e+00 : f32
    %313 = vector.broadcast %cst_265 : f32 to vector<64x8xf32>
    %314 = vector.shape_cast %1 : vector<64x1xf32> to vector<64x1xf32>
    %315 = vector.broadcast %314 : vector<64x1xf32> to vector<64x8xf32>
    %316 = arith.select %312, %313, %315 : vector<64x8xi1>, vector<64x8xf32>
    %317 = arith.mulf %3, %316 : vector<64x8xf32>
    %318 = arith.addf %317, %309 : vector<64x8xf32>
    %c0_266 = arith.constant 0 : index
    %c0_267 = arith.constant 0 : index
    %c0_268 = arith.constant 0 : index
    %319 = vector.load %arg17[%c0_266, %c0_267, %c0_268] : memref<1x64x8xf32, #tpu.memory_space<vmem>>, vector<1x64x8xf32>
    %320 = vector.shape_cast %319 : vector<1x64x8xf32> to vector<64x8xf32>
    %321 = vector.shape_cast %318 : vector<64x8xf32> to vector<1x64x8xf32>
    tpu.vector_store %arg17[%c0_266, %c0_267, %c0_268], %321 {strides = array<i32>} : memref<1x64x8xf32, #tpu.memory_space<vmem>>, vector<1x64x8xf32>,
    return
  }
  func.func @transform_0(%arg0: i32) -> (i32, i32, i32) {
    %c0_i32 = arith.constant 0 : i32
    %c0_i32_0 = arith.constant 0 : i32
    %c0_i32_1 = arith.constant 0 : i32
    return %arg0, %c0_i32, %c0_i32_0 : i32, i32, i32
  }
  func.func @transform_1(%arg0: i32) -> (i32, i32, i32) {
    %c0_i32 = arith.constant 0 : i32
    %c0_i32_0 = arith.constant 0 : i32
    %c0_i32_1 = arith.constant 0 : i32
    return %arg0, %c0_i32, %c0_i32_0 : i32, i32, i32
  }
  func.func @transform_2(%arg0: i32) -> (i32, i32, i32, i32) {
    %c0_i32 = arith.constant 0 : i32
    %c0_i32_0 = arith.constant 0 : i32
    %c0_i32_1 = arith.constant 0 : i32
    %c0_i32_2 = arith.constant 0 : i32
    return %arg0, %c0_i32, %c0_i32_0, %c0_i32_1 : i32, i32, i32, i32
  }
  func.func @transform_3(%arg0: i32) -> (i32, i32, i32, i32) {
    %c0_i32 = arith.constant 0 : i32
    %c0_i32_0 = arith.constant 0 : i32
    %c0_i32_1 = arith.constant 0 : i32
    %c0_i32_2 = arith.constant 0 : i32
    return %arg0, %c0_i32, %c0_i32_0, %c0_i32_1 : i32, i32, i32, i32
  }
  func.func @transform_4(%arg0: i32) -> (i32, i32) {
    %c0_i32 = arith.constant 0 : i32
    %c0_i32_0 = arith.constant 0 : i32
    %c0_i32_1 = arith.constant 0 : i32
    return %c0_i32, %c0_i32_0 : i32, i32
  }
  func.func @transform_5(%arg0: i32) -> (i32, i32) {
    %c0_i32 = arith.constant 0 : i32
    %c0_i32_0 = arith.constant 0 : i32
    %c0_i32_1 = arith.constant 0 : i32
    return %c0_i32, %c0_i32_0 : i32, i32
  }
  func.func @transform_6(%arg0: i32) -> (i32, i32, i32) {
    %c0_i32 = arith.constant 0 : i32
    %c0_i32_0 = arith.constant 0 : i32
    %c0_i32_1 = arith.constant 0 : i32
    %c0_i32_2 = arith.constant 0 : i32
    return %c0_i32, %c0_i32_0, %c0_i32_1 : i32, i32, i32
  }
  func.func @transform_7(%arg0: i32) -> (i32, i32, i32) {
    %c0_i32 = arith.constant 0 : i32
    %c0_i32_0 = arith.constant 0 : i32
    %c0_i32_1 = arith.constant 0 : i32
    %c0_i32_2 = arith.constant 0 : i32
    return %c0_i32, %c0_i32_0, %c0_i32_1 : i32, i32, i32
  }
  func.func @transform_8(%arg0: i32) -> (i32, i32, i32) {
    %c0_i32 = arith.constant 0 : i32
    %c0_i32_0 = arith.constant 0 : i32
    %c0_i32_1 = arith.constant 0 : i32
    %c0_i32_2 = arith.constant 0 : i32
    return %c0_i32, %c0_i32_0, %c0_i32_1 : i32, i32, i32
  }
  func.func @transform_9(%arg0: i32) -> (i32, i32, i32) {
    %c0_i32 = arith.constant 0 : i32
    %c0_i32_0 = arith.constant 0 : i32
    %c0_i32_1 = arith.constant 0 : i32
    %c0_i32_2 = arith.constant 0 : i32
    return %c0_i32, %c0_i32_0, %c0_i32_1 : i32, i32, i32
  }
  func.func @transform_10(%arg0: i32) -> (i32, i32, i32) {
    %c0_i32 = arith.constant 0 : i32
    %c0_i32_0 = arith.constant 0 : i32
    %c0_i32_1 = arith.constant 0 : i32
    %c0_i32_2 = arith.constant 0 : i32
    return %c0_i32, %c0_i32_0, %c0_i32_1 : i32, i32, i32
  }
  func.func @transform_11(%arg0: i32) -> (i32, i32, i32) {
    %c0_i32 = arith.constant 0 : i32
    %c0_i32_0 = arith.constant 0 : i32
    %c0_i32_1 = arith.constant 0 : i32
    %c0_i32_2 = arith.constant 0 : i32
    return %c0_i32, %c0_i32_0, %c0_i32_1 : i32, i32, i32
  }
  func.func @transform_12(%arg0: i32) -> (i32, i32, i32) {
    %c0_i32 = arith.constant 0 : i32
    %c0_i32_0 = arith.constant 0 : i32
    %c0_i32_1 = arith.constant 0 : i32
    %c0_i32_2 = arith.constant 0 : i32
    return %c0_i32, %c0_i32_0, %c0_i32_1 : i32, i32, i32
  }
  func.func @transform_13(%arg0: i32) -> (i32, i32, i32) {
    %c0_i32 = arith.constant 0 : i32
    %c0_i32_0 = arith.constant 0 : i32
    %c0_i32_1 = arith.constant 0 : i32
    %c0_i32_2 = arith.constant 0 : i32
    return %c0_i32, %c0_i32_0, %c0_i32_1 : i32, i32, i32
  }
  func.func @transform_14(%arg0: i32) -> (i32, i32) {
    %c0_i32 = arith.constant 0 : i32
    %c0_i32_0 = arith.constant 0 : i32
    %c0_i32_1 = arith.constant 0 : i32
    return %c0_i32, %c0_i32_0 : i32, i32
  }
  func.func @transform_15(%arg0: i32) -> (i32, i32) {
    %c0_i32 = arith.constant 0 : i32
    %c0_i32_0 = arith.constant 0 : i32
    %c0_i32_1 = arith.constant 0 : i32
    return %c0_i32, %c0_i32_0 : i32, i32
  }
  func.func @transform_16(%arg0: i32) -> (i32, i32, i32) {
    %c0_i32 = arith.constant 0 : i32
    %c0_i32_0 = arith.constant 0 : i32
    %c0_i32_1 = arith.constant 0 : i32
    return %arg0, %c0_i32, %c0_i32_0 : i32, i32, i32
  }
}

</mosaic_0001>

<bundles_post_ra>
// kernel: residual_coupling_blocks_forward.2
= control target key start
LH: loop header
LB: loop body
LE: loop exit
PB: predicated region body
PF: predicated region fallthrough
CT: control target
= control target key end

     0   :  { %s4348_s21 = smov 0   ;;  %s5563_s0 = inlined_call_operand.vmem [shape: f32[2,64,8], index: 0, kind: input, shape index: {}]   ;;  %s5564_s1 = inlined_call_operand.vmem [shape: f32[2,64,1], index: 1, kind: input, shape index: {}]   ;;  %s5565_s2 = inlined_call_operand.vmem [shape: f32[2,3,1,16], index: 2, kind: input, shape index: {}]   ;;  %s5566_s3 = inlined_call_operand.vmem [shape: f32[2,3,1,16], index: 3, kind: input, shape index: {}]   ;;  %s5567_s4 = inlined_call_operand.vmem [shape: bf16[8,16], index: 4, kind: input, shape index: {}]   ;;  %s5568_s5 = inlined_call_operand.vmem [shape: f32[1,16], index: 5, kind: input, shape index: {}]   ;;  %s5569_s6 = inlined_call_operand.vmem [shape: bf16[15,16,16], index: 6, kind: input, shape index: {}]   ;;  %s5570_s7 = inlined_call_operand.vmem [shape: bf16[15,16,16], index: 7, kind: input, shape index: {}]   ;;  %s5571_s8 = inlined_call_operand.vmem [shape: f32[3,1,16], index: 8, kind: input, shape index: {}]   ;;  %s5572_s9 = inlined_call_operand.vmem [shape: f32[3,1,16], index: 9, kind: input, shape index: {}]   ;;  %s5573_s10 = inlined_call_operand.vmem [shape: bf16[2,16,16], index: 10, kind: input, shape index: {}]   ;;  %s5574_s11 = inlined_call_operand.vmem [shape: f32[2,1,16], index: 11, kind: input, shape index: {}]   ;;  %s5575_s12 = inlined_call_operand.vmem [shape: bf16[3,16,16], index: 12, kind: input, shape index: {}]   ;;  %s5576_s13 = inlined_call_operand.vmem [shape: f32[3,1,16], index: 13, kind: input, shape index: {}]   ;;  %s5577_s14 = inlined_call_operand.vmem [shape: bf16[16,8], index: 14, kind: input, shape index: {}]   ;;  %s5578_s15 = inlined_call_operand.vmem [shape: f32[1,8], index: 15, kind: input, shape index: {}]   ;;  %s5579_s16 = inlined_call_operand.vmem [shape: f32[2,64,8], index: 16, kind: output, shape index: {}]  }
   0x1   :  { %5592 = sst [smem:[#allocation10_spill]] %s5563_s0 }
   0x2 LB: > { %s3623_s22 = sadd.s32 4294967295, %s4259_s21   ;;  %p3627_p0 = scmp.ge.s32.totalorder %s4259_s21, 1  ;;  %s4259_s21 = sphi %s4348_s21, %s26_s21  }
   0x3   : > { %p490_p1 = scmp.lt.s32.totalorder %s4259_s21, 3 }
   0x5   : > { %p491_p2 = pnand %p3627_p0, %p490_p1 }
   0x7   : > { %494 = sbr.rel (%p491_p2) target bundleno = 1728 (0x6c0), region = 84 }
   0xc   : > { %v597_v0 = vld [vmem:[%s5567_s4] sm:$0xf]  ;;  %vm615_vm0 = vcmask 1043456   ;;  %p553_p3 = scmp.lt.s32.totalorder %s3623_s22, 1  ;;  %v4261_v1 = vmov 0   ;;  %s5593_s24 = sld [smem:[#allocation10_spill]] }
   0xd   : > { %4078 = vset.pattern.permute.xlu0 %v4261_v1  ;;  %v617_v2 = vsel %vm615_vm0, %v597_v0, 0  ;;  %4079 = vset.pattern.permute.xlu1 %v4261_v1  ;;  %vm602_vm1 = vcmask 64512   ;;  %vm696_vm2 = vcmask 130048   ;;  %v4262_v23 = vmov 0.0   ;;  %v4028_v24 = vld [vmem:[%s5569_s6] sm:$0xff]  ;;  %v4030_v25 = vld [vmem:[%s5569_s6 + $0x8] sm:$0xff] }
   0xe   : > { %626 = vmatpush.bf16.msra.mxu0 %v617_v2  ;;  %4064 = vmatpush.bf16.msra.mxu1 %v617_v2  ;;  %s5617_s22 = smov (!%p553_p3, %s3623_s22), 1  ;;  %698 = vst.msk [vmem:[#allocation2 + $0x8] sm:$0xff] %vm696_vm2, %v4262_v23  ;;  %v4031_v26 = vld [vmem:[%s5570_s7 + $0x8] sm:$0xff]  ;;  %v4029_v27 = vld [vmem:[%s5570_s7] sm:$0xff]  ;;  %v4033_v29 = vld [vmem:[%s5570_s7 + $0x10] sm:$0xff] }
   0xf   : > { %4065 = vmatpush.bf16.msra.mxu2 %v617_v2  ;;  %4066 = vmatpush.bf16.msra.mxu3 %v617_v2  ;;  %s4359_s25 = sshll.u32 %s5617_s22, 6  ;;  %s4067_s26 = smul.u32 3, %s5617_s22  ;;  %697 = vst.msk [vmem:[#allocation2] sm:$0xff] %vm696_vm2, %v4262_v23  ;;  %v4087_v31 = vld [vmem:[%s5568_s5] ss:$0 sm:$0xff]  ;;  %v4032_v48 = vld [vmem:[%s5569_s6 + $0x10] sm:$0xff] }
  0x10   : > { %4080 = vset.pattern.permute.xlu2 %v4261_v1  ;;  %s4365_s29 = scalar_lea.vmem %s5564_s1, %s4359_s25  ;;  %699 = vst.msk [vmem:[#allocation2 + $0x10] sm:$0xff] %vm696_vm2, %v4262_v23  ;;  %s5514_s23 = scalar_lea.vmem %s5579_s16, %s4359_s25 }
  0x11   : > { %s4370_s17 = scalar_lea.vmem %s5565_s2, %s4067_s26  ;;  %s4375_s20 = scalar_lea.vmem %s5566_s3, %s4067_s26  ;;  %v577_v3 = vld [vmem:[%s4365_s29] sm:$0xff]  ;;  %v579_v4 = vld [vmem:[%s4365_s29 + $0x10] sm:$0xff]  ;;  %v578_v16 = vld [vmem:[%s4365_s29 + $0x8] sm:$0xff]  ;;  %700 = vst.msk [vmem:[#allocation2 + $0x18] sm:$0xff] %vm696_vm2, %v4262_v23 }
  0x12   : > { %650 = vperm.xlu0 %4078, %v577_v3   ;;  %660 = vperm.xlu1 %4079, %v579_v4   ;;  %s4383_s27 = scalar_lea.vmem %s5593_s24, %s4359_s25  ;;  %v580_v18 = vld [vmem:[%s4365_s29 + $0x18] sm:$0xff]  ;;  %v581_v19 = vld [vmem:[%s4365_s29 + $0x20] sm:$0xff]  ;;  %v583_v20 = vld [vmem:[%s4365_s29 + $0x30] sm:$0xff]  ;;  %701 = vst.msk [vmem:[#allocation2 + $0x20] sm:$0xff] %vm696_vm2, %v4262_v23 }
  0x13   : > { %v585_v5 = vld [vmem:[%s4383_s27] sm:$0xff]  ;;  %v586_v6 = vld [vmem:[%s4383_s27 + $0x8] sm:$0xff]  ;;  %v587_v7 = vld [vmem:[%s4383_s27 + $0x10] sm:$0xff]  ;;  %670 = vperm.xlu2 %4080, %v581_v19   ;;  %702 = vst.msk [vmem:[#allocation2 + $0x28] sm:$0xff] %vm696_vm2, %v4262_v23  ;;  %826 = vmatpush.bf16.msrb.mxu2 %v4028_v24 }
  0x14   : > { %v593_v8 = vpack.c.bf16 %v586_v6, %v585_v5  ;;  %v588_v9 = vld [vmem:[%s4383_s27 + $0x18] sm:$0xff]  ;;  %v589_v10 = vld [vmem:[%s4383_s27 + $0x20] sm:$0xff]  ;;  %v590_v11 = vld [vmem:[%s4383_s27 + $0x28] sm:$0xff]  ;;  %703 = vst.msk [vmem:[#allocation2 + $0x30] sm:$0xff] %vm696_vm2, %v4262_v23  ;;  %779 = vmatpush.bf16.msrb.mxu1 %v4030_v25  ;;  %864 = vmatpush.bf16.msrb.mxu3 %v4031_v26 }
  0x15   : > { %v594_v12 = vpack.c.bf16 %v588_v9, %v587_v7  ;;  %v595_v13 = vpack.c.bf16 %v590_v11, %v589_v10  ;;  %v591_v14 = vld [vmem:[%s4383_s27 + $0x30] sm:$0xff]  ;;  %v592_v15 = vld [vmem:[%s4383_s27 + $0x38] sm:$0xff]  ;;  %v582_v22 = vld [vmem:[%s4365_s29 + $0x28] sm:$0xff]  ;;  %704 = vst.msk [vmem:[#allocation2 + $0x38] sm:$0xff] %vm696_vm2, %v4262_v23  ;;  %899 = vmatpush.bf16.msrb.mxu0 %v4029_v27 }
  0x16   : > { %3634 = vmatmul.msk.bf16.vlgmr.msra.gmra.mxu0 %vm602_vm1, %v593_v8  ;;  %v596_v17 = vpack.c.bf16 %v592_v15, %v591_v14  ;;  %v584_v21 = vld [vmem:[%s4365_s29 + $0x38] sm:$0xff]  ;;  %705 = vst.msk [vmem:[#allocation2 + $0x40] sm:$0xff] %vm696_vm2, %v4262_v23  ;;  %v4037_v19 = vld [vmem:[%s5570_s7 + $0x20] sm:$0xff] }
  0x17   : > { %3635 = vmatmul.msk.bf16.vlgmr.msra.gmra.mxu1 %vm602_vm1, %v594_v12  ;;  %3636 = vmatmul.msk.bf16.vlgmr.msra.gmra.mxu2 %vm602_vm1, %v595_v13  ;;  %706 = vst.msk [vmem:[#allocation2 + $0x48] sm:$0xff] %vm696_vm2, %v4262_v23  ;;  %v4034_v11 = vld [vmem:[%s5569_s6 + $0x18] sm:$0xff]  ;;  %v4036_v26 = vld [vmem:[%s5569_s6 + $0x20] sm:$0xff] }
  0x18   : > { %3637 = vmatmul.msk.bf16.vlgmr.msra.gmra.mxu3 %vm602_vm1, %v596_v17  ;;  %715 = vst.msk [vmem:[#allocation3] sm:$0xff] %vm696_vm2, %v4262_v23  ;;  %1007 = vmatpush.bf16.msra.mxu2 %v4033_v29  ;;  %v4035_v12 = vld [vmem:[%s5570_s7 + $0x18] sm:$0xff] }
  0x19   : > { %716 = vst.msk [vmem:[#allocation3 + $0x8] sm:$0xff] %vm696_vm2, %v4262_v23  ;;  %961 = vmatpush.bf16.msra.mxu1 %v4032_v48  ;;  %1077 = vmatpush.bf16.msra.mxu3 %v4034_v11 }
  0x1a   : > { %655 = vperm.xlu0 %4078, %v578_v16   ;;  %665 = vperm.xlu1 %4079, %v580_v18   ;;  %717 = vst.msk [vmem:[#allocation3 + $0x10] sm:$0xff] %vm696_vm2, %v4262_v23 }
  0x1b   : > { %675 = vperm.xlu2 %4080, %v582_v22   ;;  %718 = vst.msk [vmem:[#allocation3 + $0x18] sm:$0xff] %vm696_vm2, %v4262_v23  ;;  %1123 = vmatpush.bf16.msra.mxu0 %v4035_v12 }
  0x1c   : > { %719 = vst.msk [vmem:[#allocation3 + $0x20] sm:$0xff] %vm696_vm2, %v4262_v23 }
  0x1d   : > { %720 = vst.msk [vmem:[#allocation3 + $0x28] sm:$0xff] %vm696_vm2, %v4262_v23 }
  0x1e   : > { %721 = vst.msk [vmem:[#allocation3 + $0x30] sm:$0xff] %vm696_vm2, %v4262_v23 }
  0x1f   : > { %722 = vst.msk [vmem:[#allocation3 + $0x38] sm:$0xff] %vm696_vm2, %v4262_v23 }
  0x22   : > { %680 = vperm.xlu0 %4078, %v583_v20   ;;  %685 = vperm.xlu1 %4079, %v584_v21  }
  0x6d   : > { %v4448_v39 = vpop.permute.xlu2 %670 }
  0x6e   : > { %5594 = vst [vmem:[#allocation4_spill] sm:$0xff] %v4448_v39 }
  0x75   : > { %v4466_v56 = vpop.permute.xlu2 %675 }
  0x76   : > { %5596 = vst [vmem:[#allocation6_spill] sm:$0xff] %v4466_v56 }
  0x84   : > { %v4433_v28 = vpop.permute.xlu0 %650  ;;  %v4438_v30 = vpop.permute.xlu1 %660 }
  0x8c   : > { %v4443_v32 = vpop.permute.xlu0 %655  ;;  %v4451_v40 = vpop.permute.xlu1 %665 }
  0x93   : > { %v628_v33 = vpop.f32.mrf.mxu0 }
  0x94   : > { %v629_v34 = vadd.f32 %v4087_v31, %v628_v33  ;;  %v633_v35 = vpop.f32.mrf.mxu1  ;;  %v4456_v49 = vpop.permute.xlu0 %680 }
  0x95   : > { %v634_v36 = vadd.f32 %v4087_v31, %v633_v35  ;;  %5595 = vst [vmem:[#allocation5_spill] sm:$0xff] %v4456_v49  ;;  %v4468_v59 = vpop.permute.xlu1 %685 }
  0x96   : > { %v688_v37 = vmul.f32 %v4433_v28, %v629_v34  ;;  %5597 = vst [vmem:[#allocation7_spill] sm:$0xff] %v4468_v59 }
  0x97   : > { %v690_v38 = vmul.f32 %v4438_v30, %v634_v36 }
  0x98   : > { %707 = vst.msk [vmem:[#allocation2 + $0x8] sm:$0xff] %vm696_vm2, %v688_v37 }
  0x99   : > { %709 = vst.msk [vmem:[#allocation2 + $0x18] sm:$0xff] %vm696_vm2, %v690_v38 }
  0x9a   : > { %v638_v41 = vpop.f32.mrf.mxu2 }
  0x9b   : > { %v639_v42 = vadd.f32 %v4087_v31, %v638_v41  ;;  %v643_v43 = vpop.f32.mrf.mxu3  ;;  %v630_v44 = vpop.f32.mrf.mxu0 }
  0x9c   : > { %v644_v45 = vadd.f32 %v4087_v31, %v643_v43  ;;  %v631_v46 = vadd.f32 %v4087_v31, %v630_v44  ;;  %v635_v47 = vpop.f32.mrf.mxu1 }
  0x9d   : > { %v692_v50 = vmul.f32 %v4448_v39, %v639_v42  ;;  %v636_v51 = vadd.f32 %v4087_v31, %v635_v47 }
  0x9e   : > { %v694_v52 = vmul.f32 %v4456_v49, %v644_v45  ;;  %v689_v53 = vmul.f32 %v4443_v32, %v631_v46 }
  0x9f   : > { %711 = vst.msk [vmem:[#allocation2 + $0x28] sm:$0xff] %vm696_vm2, %v692_v50  ;;  %v691_v54 = vmul.f32 %v4451_v40, %v636_v51  ;;  %v739_v63 = vld [vmem:[#allocation2 + $0x7] sm:$0xff] }
  0xa0   : > { %713 = vst.msk [vmem:[#allocation2 + $0x38] sm:$0xff] %vm696_vm2, %v694_v52  ;;  %v723_v1 = vld [vmem:[#allocation2 + $0x6] sm:$0xff]  ;;  %v4512_v36 = vld [vmem:[#allocation2 + $0x18] sm:$0xff] }
  0xa1   : > { %708 = vst.msk [vmem:[#allocation2 + $0x10] sm:$0xff] %vm696_vm2, %v689_v53  ;;  %v4504_v33 = vld [vmem:[#allocation2 + $0x8] sm:$0xff] }
  0xa2   : > { %710 = vst.msk [vmem:[#allocation2 + $0x20] sm:$0xff] %vm696_vm2, %v691_v54  ;;  %v640_v55 = vpop.f32.mrf.mxu2 }
  0xa3   : > { %v641_v57 = vadd.f32 %v4087_v31, %v640_v55  ;;  %v645_v58 = vpop.f32.mrf.mxu3 }
  0xa4   : > { %v646_v60 = vadd.f32 %v4087_v31, %v645_v58 }
  0xa5   : > { %v693_v61 = vmul.f32 %v4466_v56, %v641_v57 }
  0xa6   : > { %v695_v62 = vmul.f32 %v4468_v59, %v646_v60  ;;  %v4522_v44 = vld [vmem:[#allocation2 + $0x28] sm:$0xff] }
  0xa7   : > { %712 = vst.msk [vmem:[#allocation2 + $0x30] sm:$0xff] %vm696_vm2, %v693_v61  ;;  %v4532_v54 = vld [vmem:[#allocation2 + $0x38] sm:$0xff] }
  0xa8   : > { %714 = vst.msk [vmem:[#allocation2 + $0x40] sm:$0xff] %vm696_vm2, %v695_v62  ;;  %v740_v0 = vld [vmem:[#allocation2 + $0xf] sm:$0xff]  ;;  %v741_v5 = vld [vmem:[#allocation2 + $0x17] sm:$0xff] }
  0xa9   : > { %v724_v2 = vld [vmem:[#allocation2 + $0xe] sm:$0xff]  ;;  %v747_v3 = vpack.c.bf16 %v740_v0, %v739_v63  ;;  %v742_v6 = vld [vmem:[#allocation2 + $0x1f] sm:$0xff]  ;;  %v725_v7 = vld [vmem:[#allocation2 + $0x16] sm:$0xff]  ;;  %5599 = vst [vmem:[#allocation9_spill] sm:$0xff] %v4532_v54 }
  0xaa   : > { %v731_v4 = vpack.c.bf16 %v724_v2, %v723_v1  ;;  %v726_v8 = vld [vmem:[#allocation2 + $0x1e] sm:$0xff]  ;;  %v748_v9 = vpack.c.bf16 %v742_v6, %v741_v5  ;;  %v743_v13 = vld [vmem:[#allocation2 + $0x27] sm:$0xff]  ;;  %v4502_v27 = vld [vmem:[#allocation2 + $0x10] sm:$0xff] }
  0xab   : > { %3644 = vmatmul.msk.bf16.vlgmr.msrb.gmra.mxu1 %vm696_vm2, %v747_v3  ;;  %3662 = vmatmul.msk.bf16.vlgmr.msrb.gmra.mxu3 %vm696_vm2, %v747_v3  ;;  %v732_v10 = vpack.c.bf16 %v726_v8, %v725_v7  ;;  %v727_v15 = vld [vmem:[#allocation2 + $0x26] sm:$0xff]  ;;  %v1038_v31 = vld [vmem:[#allocation2 + $0x11] sm:$0xff]  ;;  %v929_v34 = vpack.c.bf16 %v4502_v27, %v4504_v33  ;;  %v1039_v38 = vld [vmem:[#allocation2 + $0x19] sm:$0xff] }
  0xac   : > { %3652 = vmatmul.msk.bf16.vlgmr.msrb.gmra.mxu2 %vm696_vm2, %v731_v4  ;;  %3670 = vmatmul.msk.bf16.vlgmr.msrb.gmra.mxu0 %vm696_vm2, %v731_v4  ;;  %v1037_v29 = vld [vmem:[#allocation2 + $0x9] sm:$0xff]  ;;  %v4514_v37 = vld [vmem:[#allocation2 + $0x20] sm:$0xff]  ;;  %v1154_v60 = vld [vmem:[#allocation2 + $0x12] sm:$0xff] }
  0xad   : > { %1239 = vmatpush.bf16.msrb.mxu2 %v4037_v19  ;;  %1193 = vmatpush.bf16.msrb.mxu1 %v4036_v26  ;;  %v1045_v35 = vpack.c.bf16 %v1038_v31, %v1037_v29  ;;  %v1040_v41 = vld [vmem:[#allocation2 + $0x21] sm:$0xff]  ;;  %v930_v42 = vpack.c.bf16 %v4514_v37, %v4512_v36  ;;  %v1153_v58 = vld [vmem:[#allocation2 + $0xa] sm:$0xff] }
  0xae   : > { %v744_v14 = vld [vmem:[#allocation2 + $0x2f] sm:$0xff]  ;;  %v745_v20 = vld [vmem:[#allocation2 + $0x37] sm:$0xff]  ;;  %v1046_v43 = vpack.c.bf16 %v1040_v41, %v1039_v38  ;;  %v1161_v62 = vpack.c.bf16 %v1154_v60, %v1153_v58  ;;  %v1156_v4 = vld [vmem:[#allocation2 + $0x22] sm:$0xff] }
  0xaf   : > { %v728_v16 = vld [vmem:[#allocation2 + $0x2e] sm:$0xff]  ;;  %v749_v17 = vpack.c.bf16 %v744_v14, %v743_v13  ;;  %v746_v21 = vld [vmem:[#allocation2 + $0x3f] sm:$0xff]  ;;  %v729_v22 = vld [vmem:[#allocation2 + $0x36] sm:$0xff] }
  0xb0   : > { %v733_v18 = vpack.c.bf16 %v728_v16, %v727_v15  ;;  %v730_v23 = vld [vmem:[#allocation2 + $0x3e] sm:$0xff]  ;;  %v750_v24 = vpack.c.bf16 %v746_v21, %v745_v20  ;;  %v4524_v45 = vld [vmem:[#allocation2 + $0x30] sm:$0xff] }
  0xb1   : > { %v734_v25 = vpack.c.bf16 %v730_v23, %v729_v22  ;;  %5598 = vst [vmem:[#allocation8_spill] sm:$0xff] %v4524_v45  ;;  %v1041_v46 = vld [vmem:[#allocation2 + $0x29] sm:$0xff]  ;;  %v1042_v47 = vld [vmem:[#allocation2 + $0x31] sm:$0xff]  ;;  %v931_v48 = vpack.c.bf16 %v4524_v45, %v4522_v44  ;;  %v928_v51 = vld [vmem:[#allocation2 + $0x40] sm:$0xff] }
  0xb2   : > { %v1047_v50 = vpack.c.bf16 %v1042_v47, %v1041_v46  ;;  %v1043_v52 = vld [vmem:[#allocation2 + $0x39] sm:$0xff]  ;;  %v1044_v53 = vld [vmem:[#allocation2 + $0x41] sm:$0xff]  ;;  %v932_v55 = vpack.c.bf16 %v928_v51, %v4532_v54  ;;  %v1157_v12 = vld [vmem:[#allocation2 + $0x2a] sm:$0xff] }
  0xb3   : > { %v1048_v57 = vpack.c.bf16 %v1044_v53, %v1043_v52  ;;  %v1155_v3 = vld [vmem:[#allocation2 + $0x1a] sm:$0xff]  ;;  %v1158_v13 = vld [vmem:[#allocation2 + $0x32] sm:$0xff]  ;;  %v1160_v23 = vld [vmem:[#allocation2 + $0x42] sm:$0xff] }
  0xb4   : > { %v1162_v6 = vpack.c.bf16 %v1156_v4, %v1155_v3  ;;  %v1163_v15 = vpack.c.bf16 %v1158_v13, %v1157_v12  ;;  %v1159_v22 = vld [vmem:[#allocation2 + $0x3a] sm:$0xff] }
  0xb5   : > { %v1164_v26 = vpack.c.bf16 %v1160_v23, %v1159_v22 }
  0xbb   : > { %3645 = vmatmul.msk.bf16.gmra.mxu1 %vm696_vm2, %v748_v9  ;;  %3663 = vmatmul.msk.bf16.gmra.mxu3 %vm696_vm2, %v748_v9 }
  0xbc   : > { %3653 = vmatmul.msk.bf16.gmra.mxu2 %vm696_vm2, %v732_v10  ;;  %3671 = vmatmul.msk.bf16.gmra.mxu0 %vm696_vm2, %v732_v10 }
  0xcb   : > { %3646 = vmatmul.msk.bf16.gmra.mxu1 %vm696_vm2, %v749_v17  ;;  %3664 = vmatmul.msk.bf16.gmra.mxu3 %vm696_vm2, %v749_v17 }
  0xcc   : > { %3654 = vmatmul.msk.bf16.gmra.mxu2 %vm696_vm2, %v733_v18  ;;  %3672 = vmatmul.msk.bf16.gmra.mxu0 %vm696_vm2, %v733_v18 }
  0xdb   : > { %3647 = vmatmul.msk.bf16.gmra.mxu1 %vm696_vm2, %v750_v24  ;;  %3665 = vmatmul.msk.bf16.gmra.mxu3 %vm696_vm2, %v750_v24 }
  0xdc   : > { %3655 = vmatmul.msk.bf16.gmra.mxu2 %vm696_vm2, %v734_v25  ;;  %3673 = vmatmul.msk.bf16.gmra.mxu0 %vm696_vm2, %v734_v25 }
  0xeb   : > { %3680 = vmatmul.msk.bf16.vlgmr.msra.gmra.mxu1 %vm696_vm2, %v929_v34  ;;  %3700 = vmatmul.msk.bf16.vlgmr.msra.gmra.mxu3 %vm696_vm2, %v1045_v35 }
  0xec   : > { %3690 = vmatmul.msk.bf16.vlgmr.msra.gmra.mxu2 %vm696_vm2, %v929_v34  ;;  %3710 = vmatmul.msk.bf16.vlgmr.msra.gmra.mxu0 %vm696_vm2, %v1045_v35 }
  0xfb   : > { %3681 = vmatmul.msk.bf16.gmra.mxu1 %vm696_vm2, %v930_v42  ;;  %3701 = vmatmul.msk.bf16.gmra.mxu3 %vm696_vm2, %v1046_v43 }
  0xfc   : > { %3691 = vmatmul.msk.bf16.gmra.mxu2 %vm696_vm2, %v930_v42  ;;  %3711 = vmatmul.msk.bf16.gmra.mxu0 %vm696_vm2, %v1046_v43 }
 0x10b   : > { %3682 = vmatmul.msk.bf16.gmra.mxu1 %vm696_vm2, %v931_v48  ;;  %3702 = vmatmul.msk.bf16.gmra.mxu3 %vm696_vm2, %v1047_v50 }
 0x10c   : > { %3692 = vmatmul.msk.bf16.gmra.mxu2 %vm696_vm2, %v931_v48  ;;  %3712 = vmatmul.msk.bf16.gmra.mxu0 %vm696_vm2, %v1047_v50 }
 0x11b   : > { %3683 = vmatmul.msk.bf16.gmra.mxu1 %vm696_vm2, %v932_v55  ;;  %3703 = vmatmul.msk.bf16.gmra.mxu3 %vm696_vm2, %v1048_v57 }
 0x11c   : > { %3693 = vmatmul.msk.bf16.gmra.mxu2 %vm696_vm2, %v932_v55  ;;  %3713 = vmatmul.msk.bf16.gmra.mxu0 %vm696_vm2, %v1048_v57 }
 0x128   : > { %v781_v61 = vpop.f32.mrf.mxu1 }
 0x129   : > { %v901_v16 = vpop.f32.mrf.mxu0 }
 0x12b   : > { %3720 = vmatmul.msk.bf16.vlgmr.msrb.gmra.mxu1 %vm696_vm2, %v1161_v62 }
 0x12c   : > { %3730 = vmatmul.msk.bf16.vlgmr.msrb.gmra.mxu2 %vm696_vm2, %v1161_v62  ;;  %v4039_v62 = vld [vmem:[%s5573_s10] sm:$0xff] }
 0x12d   : > { %1585 = vmatpush.bf16.msrb.mxu0 %v4039_v62 }
 0x12e   : > { %v866_v10 = vpop.f32.mrf.mxu3 }
 0x12f   : > { %v828_v63 = vpop.f32.mrf.mxu2  ;;  %v902_v48 = vadd.f32 %v901_v16, %v866_v10 }
 0x130   : > { %v829_v0 = vadd.f32 %v828_v63, %v781_v61  ;;  %v4541_v1 = vpop.f32.mrf.mxu1 }
 0x131   : > { %v4559_v24 = vpop.f32.mrf.mxu0 }
 0x136   : > { %v4553_v19 = vpop.f32.mrf.mxu3 }
 0x137   : > { %v4543_v2 = vpop.f32.mrf.mxu2 }
 0x138   : > { %v786_v5 = vpop.f32.mrf.mxu1 }
 0x139   : > { %v906_v38 = vpop.f32.mrf.mxu0 }
 0x13b   : > { %3721 = vmatmul.msk.bf16.gmra.mxu1 %vm696_vm2, %v1162_v6 }
 0x13c   : > { %3731 = vmatmul.msk.bf16.gmra.mxu2 %vm696_vm2, %v1162_v6 }
 0x13e   : > { %v871_v29 = vpop.f32.mrf.mxu3 }
 0x13f   : > { %v833_v7 = vpop.f32.mrf.mxu2  ;;  %v907_v63 = vadd.f32 %v906_v38, %v871_v29 }
 0x140   : > { %v834_v8 = vadd.f32 %v833_v7, %v786_v5  ;;  %v4547_v9 = vpop.f32.mrf.mxu1 }
 0x141   : > { %v4569_v47 = vpop.f32.mrf.mxu0 }
 0x146   : > { %v4565_v41 = vpop.f32.mrf.mxu3 }
 0x147   : > { %v4549_v11 = vpop.f32.mrf.mxu2 }
 0x148   : > { %v791_v14 = vpop.f32.mrf.mxu1 }
 0x149   : > { %v911_v55 = vpop.f32.mrf.mxu0 }
 0x14b   : > { %3722 = vmatmul.msk.bf16.gmra.mxu1 %vm696_vm2, %v1163_v15 }
 0x14c   : > { %3732 = vmatmul.msk.bf16.gmra.mxu2 %vm696_vm2, %v1163_v15 }
 0x14e   : > { %v876_v50 = vpop.f32.mrf.mxu3 }
 0x14f   : > { %v838_v17 = vpop.f32.mrf.mxu2 }
 0x150   : > { %v839_v18 = vadd.f32 %v838_v17, %v791_v14  ;;  %v4555_v20 = vpop.f32.mrf.mxu1  ;;  %v912_v14 = vadd.f32 %v911_v55, %v876_v50 }
 0x151   : > { %v4578_v4 = vpop.f32.mrf.mxu0 }
 0x156   : > { %v4573_v58 = vpop.f32.mrf.mxu3 }
 0x157   : > { %v4557_v21 = vpop.f32.mrf.mxu2 }
 0x158   : > { %v796_v25 = vpop.f32.mrf.mxu1 }
 0x159   : > { %v916_v13 = vpop.f32.mrf.mxu0 }
 0x15b   : > { %3723 = vmatmul.msk.bf16.gmra.mxu1 %vm696_vm2, %v1164_v26 }
 0x15c   : > { %3733 = vmatmul.msk.bf16.gmra.mxu2 %vm696_vm2, %v1164_v26 }
 0x15e   : > { %v881_v6 = vpop.f32.mrf.mxu3 }
 0x15f   : > { %v843_v31 = vpop.f32.mrf.mxu2 }
 0x160   : > { %v844_v34 = vadd.f32 %v843_v31, %v796_v25  ;;  %v4563_v35 = vpop.f32.mrf.mxu1 }
 0x161   : > { %v4592_v22 = vpop.f32.mrf.mxu0 }
 0x167   : > { %v4567_v42 = vpop.f32.mrf.mxu2 }
 0x168   : > { %v963_v43 = vpop.f32.mrf.mxu1 }
 0x169   : > { %v983_v46 = vadd.f32 %v963_v43, %v829_v0  ;;  %v1125_v31 = vpop.f32.mrf.mxu0 }
 0x16f   : > { %v1009_v51 = vpop.f32.mrf.mxu2 }
 0x170   : > { %v1029_v52 = vadd.f32 %v1009_v51, %v902_v48  ;;  %v4571_v53 = vpop.f32.mrf.mxu1 }
 0x171   : > { %v1127_v62 = vpop.f32.mrf.mxu0 }
 0x177   : > { %v1011_v57 = vpop.f32.mrf.mxu2 }
 0x178   : > { %v968_v60 = vpop.f32.mrf.mxu1 }
 0x179   : > { %v985_v61 = vadd.f32 %v968_v60, %v834_v8  ;;  %v4586_v8 = vpop.f32.mrf.mxu3  ;;  %v4607_v60 = vld [vmem:[%s5571_s8] ss:$0 sm:$0xff] }
 0x17f   : > { %v1014_v0 = vpop.f32.mrf.mxu2 }
 0x180   : > { %v1031_v3 = vadd.f32 %v1014_v0, %v907_v63  ;;  %v4580_v5 = vpop.f32.mrf.mxu1  ;;  %v4610_v63 = vld [vmem:[%s4370_s17] ss:$0 sm:$0xff] }
 0x181   : > { %v1079_v23 = vpop.f32.mrf.mxu3 }
 0x182   : > { %v1099_v55 = vadd.f32 %v1079_v23, %v983_v46  ;;  %v4619_v46 = vld [vmem:[%s5572_s9] ss:$0 sm:$0xff] }
 0x183   : > { %v4622_v23 = vld [vmem:[%s4375_s20] ss:$0 sm:$0xff] }
 0x187   : > { %v4582_v7 = vpop.f32.mrf.mxu2 }
 0x188   : > { %v973_v10 = vpop.f32.mrf.mxu1 }
 0x189   : > { %v4584_v12 = vadd.f32 %v973_v10, %v839_v18  ;;  %v917_v18 = vadd.f32 %v916_v13, %v881_v6  ;;  %v1081_v48 = vpop.f32.mrf.mxu3 }
 0x18f   : > { %v1019_v15 = vpop.f32.mrf.mxu2 }
 0x190   : > { %v4588_v16 = vadd.f32 %v1019_v15, %v912_v14  ;;  %v4590_v17 = vpop.f32.mrf.mxu1  ;;  %v1145_v14 = vadd.f32 %v1125_v31, %v1029_v52 }
 0x191   : > { %v1084_v6 = vpop.f32.mrf.mxu3 }
 0x192   : > { %v1101_v54 = vadd.f32 %v1084_v6, %v985_v61  ;;  %v4038_v61 = vld [vmem:[%s5575_s12] sm:$0xff] }
 0x193   : > { %1528 = vmatpush.bf16.msrb.mxu3 %v4038_v61 }
 0x197   : > { %v4594_v25 = vpop.f32.mrf.mxu2 }
 0x198   : > { %v978_v26 = vpop.f32.mrf.mxu1 }
 0x199   : > { %v4596_v29 = vadd.f32 %v978_v26, %v844_v34  ;;  %v904_v26 = vadd.f32 %v4559_v24, %v4553_v19  ;;  %v4628_v52 = vpop.f32.mrf.mxu3 }
 0x19f   : > { %v1024_v38 = vpop.f32.mrf.mxu2 }
 0x1a0   : > { %v4598_v43 = vadd.f32 %v1024_v38, %v917_v18  ;;  %v4600_v50 = vpop.f32.mrf.mxu1 }
 0x1a7   : > { %v4602_v51 = vpop.f32.mrf.mxu2 }
 0x1a8   : > { %v1195_v34 = vpop.f32.mrf.mxu1 }
 0x1a9   : > { %v1215_v0 = vadd.f32 %v1195_v34, %v1099_v55  ;;  %v1030_v55 = vadd.f32 %v1011_v57, %v904_v26 }
 0x1ab   : > { %v1273_v10 = vadd.f32 %v4607_v60, %v1215_v0  ;;  %v1130_v0 = vpop.f32.mrf.mxu0  ;;  %v1146_v59 = vadd.f32 %v1127_v62, %v1030_v55 }
 0x1ad   : > { %v4614_v13 = vadd.f32 %v4610_v63, %v1273_v10 }
 0x1af   : > { %v1241_v15 = vpop.f32.mrf.mxu2 }
 0x1b0   : > { %v1261_v18 = vadd.f32 %v1241_v15, %v1145_v14  ;;  %v1197_v38 = vpop.f32.mrf.mxu1 }
 0x1b2   : > { %v1297_v34 = vadd.f32 %v4619_v46, %v1261_v18 }
 0x1b3   : > { %v1132_v14 = vpop.f32.mrf.mxu0 }
 0x1b4   : > { %v1309_v10 = vadd.f32 %v4622_v23, %v1297_v34  ;;  %v1147_v34 = vadd.f32 %v1130_v0, %v1031_v3 }
 0x1b6   : > { %v3734_v31 = vmul.f32 -1.442695, %v1309_v10 }
 0x1b7   : > { %v1243_v49 = vpop.f32.mrf.mxu2 }
 0x1b8   : > { %4100 = vpow2.f32 %v3734_v31  ;;  %v1262_v56 = vadd.f32 %v1243_v49, %v1146_v59  ;;  %v1200_v45 = vpop.f32.mrf.mxu1  ;;  %v1089_v49 = vpop.f32.mrf.mxu3 }
 0x1b9   : > { %v1217_v19 = vadd.f32 %v1200_v45, %v1101_v54  ;;  %v831_v45 = vadd.f32 %v4543_v2, %v4541_v1  ;;  %v1103_v2 = vadd.f32 %v1089_v49, %v4584_v12 }
 0x1ba   : > { %v1298_v39 = vadd.f32 %v4619_v46, %v1262_v56  ;;  %v909_v56 = vadd.f32 %v4569_v47, %v4565_v41 }
 0x1bb   : > { %v1275_v57 = vadd.f32 %v4607_v60, %v1217_v19  ;;  %v984_v55 = vadd.f32 %v4571_v53, %v831_v45  ;;  %v836_v45 = vadd.f32 %v4549_v11, %v4547_v9 }
 0x1bc   : > { %v1310_v24 = vadd.f32 %v4622_v23, %v1298_v39  ;;  %v1032_v3 = vadd.f32 %v4582_v7, %v909_v56 }
 0x1bd   : > { %v4634_v18 = vadd.f32 %v4610_v63, %v1275_v57  ;;  %v1100_v10 = vadd.f32 %v1081_v48, %v984_v55 }
 0x1be   : > { %v4101_v15 = vpop.eup %4100  ;;  %v3735_v26 = vmul.f32 -1.442695, %v1310_v24  ;;  %v1148_v47 = vadd.f32 %v1132_v14, %v1032_v3  ;;  %v1135_v24 = vpop.f32.mrf.mxu0  ;;  %v914_v3 = vadd.f32 %v4578_v4, %v4573_v58 }
 0x1bf   : > { %v1349_v59 = vadd.f32 1.0, %v4101_v15  ;;  %v1246_v62 = vpop.f32.mrf.mxu2  ;;  %v1216_v57 = vadd.f32 %v1197_v38, %v1100_v10 }
 0x1c0   : > { %4102 = vpow2.f32 %v3735_v26  ;;  %v1263_v39 = vadd.f32 %v1246_v62, %v1147_v34  ;;  %v4643_v54 = vpop.f32.mrf.mxu1  ;;  %v4652_v34 = vpop.f32.mrf.mxu3 }
 0x1c1   : > { %4104 = vrcp.f32 %v1349_v59  ;;  %v1368_v38 = vand.u32 2147483648, %v1349_v59  ;;  %v1274_v62 = vadd.f32 %v4607_v60, %v1216_v57  ;;  %v1366_v56 = vand.u32 2147483647, %v1349_v59 }
 0x1c2   : > { %v1299_v6 = vadd.f32 %v4619_v46, %v1263_v39  ;;  %vm1362_vm4 = vweird.f32 %v1349_v59 }
 0x1c3   : > { %vm1367_vm6 = vcmp.eq.f32.partialorder %v1366_v56, 8.507059e+37  ;;  %v1369_v9 = vor.u32 1.1754944e-38, %v1368_v38 }
 0x1c4   : > { %v1311_v0 = vadd.f32 %v4622_v23, %v1299_v6  ;;  %v1149_v6 = vadd.f32 %v1135_v24, %v4588_v16  ;;  %v1034_v24 = vadd.f32 %v4594_v25, %v914_v3 }
 0x1c6   : > { %v4103_v31 = vpop.eup %4102  ;;  %v3736_v41 = vmul.f32 -1.442695, %v1311_v0 }
 0x1c7   : > { %v4105_v19 = vpop.eup %4104  ;;  %v4649_v15 = vadd.f32 1.0, %v4103_v31  ;;  %v1248_v1 = vpop.f32.mrf.mxu2 }
 0x1c8   : > { %v1358_v26 = vmul.f32 %v4105_v19, %v1349_v59  ;;  %4106 = vpow2.f32 %v3736_v41  ;;  %v1264_v7 = vadd.f32 %v1248_v1, %v1148_v47  ;;  %v1205_v53 = vpop.f32.mrf.mxu1  ;;  %vm1363_vm3 = vweird.f32 %v4105_v19  ;;  %v1137_v59 = vpop.f32.mrf.mxu0 }
 0x1c9   : > { %4108 = vrcp.f32 %v4649_v15  ;;  %v1219_v14 = vadd.f32 %v1205_v53, %v1103_v2  ;;  %v1286_v41 = vadd.f32 %v4610_v63, %v1274_v62  ;;  %vm1364_vm5 = vmor %vm1362_vm4, %vm1363_vm3  ;;  %v1150_v56 = vadd.f32 %v1137_v59, %v1034_v24 }
 0x1ca   : > { %v1359_v48 = vsub.f32 1.0, %v1358_v26  ;;  %v1300_v61 = vadd.f32 %v4619_v46, %v1264_v7  ;;  %4110 = vtanh.f32 %v4614_v13  ;;  %v986_v26 = vadd.f32 %v4580_v5, %v836_v45 }
 0x1cb   : > { %v1277_v49 = vadd.f32 %v4607_v60, %v1219_v14  ;;  %vm1377_vm8 = vweird.f32 %v4649_v15 }
 0x1cc   : > { %v1360_v39 = vmul.f32 %v4105_v19, %v1359_v48  ;;  %v1312_v12 = vadd.f32 %v4622_v23, %v1300_v61  ;;  %v1094_v48 = vpop.f32.mrf.mxu3  ;;  %v1381_v61 = vand.u32 2147483647, %v4649_v15  ;;  %v1102_v62 = vadd.f32 %v4628_v52, %v986_v26 }
 0x1cd   : > { %v4666_v0 = vadd.f32 %v4610_v63, %v1277_v49  ;;  %v1105_v5 = vadd.f32 %v1094_v48, %v4596_v29  ;;  %v919_v48 = vadd.f32 %v4592_v22, %v4586_v8 }
 0x1ce   : > { %v4107_v55 = vpop.eup %4106  ;;  %v3737_v13 = vmul.f32 -1.442695, %v1312_v12  ;;  %v1361_v10 = vadd.f32 %v4105_v19, %v1360_v39  ;;  %v1218_v3 = vadd.f32 %v4643_v54, %v1102_v62  ;;  %vm1382_vm10 = vcmp.eq.f32.partialorder %v1381_v61, 8.507059e+37 }
 0x1cf   : > { %v4109_v31 = vpop.eup %4108  ;;  %v4669_v47 = vadd.f32 1.0, %v4107_v55  ;;  %v1251_v57 = vpop.f32.mrf.mxu2 }
 0x1d0   : > { %v1373_v11 = vmul.f32 %v4109_v31, %v4649_v15  ;;  %4112 = vpow2.f32 %v3737_v13  ;;  %v1265_v58 = vadd.f32 %v1251_v57, %v1149_v6  ;;  %v1365_v4 = vsel %vm1364_vm5, %v4105_v19, %v1361_v10  ;;  %v4111_v16 = vpop.eup %4110  ;;  %v4674_v1 = vpop.f32.mrf.mxu1 }
 0x1d1   : > { %4114 = vrcp.f32 %v4669_v47  ;;  %v1370_v2 = vsel %vm1367_vm6, %v1369_v9, %v1365_v4  ;;  %v1383_v19 = vand.u32 2147483648, %v4649_v15  ;;  %vm1378_vm7 = vweird.f32 %v4109_v31 }
 0x1d2   : > { %v1374_v7 = vsub.f32 1.0, %v1373_v11  ;;  %v1301_v53 = vadd.f32 %v4619_v46, %v1265_v58  ;;  %4116 = vtanh.f32 %v1286_v41  ;;  %v1477_v14 = vmul.f32 %v4111_v16, %v1370_v2  ;;  %vm1379_vm9 = vmor %vm1377_vm8, %vm1378_vm7  ;;  %v1140_v58 = vpop.f32.mrf.mxu0 }
 0x1d3   : > { %v1384_v13 = vor.u32 1.1754944e-38, %v1383_v19  ;;  %v1276_v4 = vadd.f32 %v4607_v60, %v1218_v3  ;;  %v1398_v2 = vand.u32 2147483648, %v4669_v47  ;;  %v1151_v19 = vadd.f32 %v1140_v58, %v4598_v43 }
 0x1d4   : > { %v1375_v38 = vmul.f32 %v4109_v31, %v1374_v7  ;;  %v1313_v25 = vadd.f32 %v4622_v23, %v1301_v53  ;;  %v1396_v7 = vand.u32 2147483647, %v4669_v47  ;;  %vm1392_vm12 = vweird.f32 %v4669_v47 }
 0x1d5   : > { %v1399_v22 = vor.u32 1.1754944e-38, %v1398_v2  ;;  %v841_v43 = vadd.f32 %v4557_v21, %v4555_v20 }
 0x1d6   : > { %v4113_v39 = vpop.eup %4112  ;;  %v3738_v12 = vmul.f32 -1.442695, %v1313_v25  ;;  %v1376_v49 = vadd.f32 %v4109_v31, %v1375_v38  ;;  %v1288_v38 = vadd.f32 %v4610_v63, %v1276_v4  ;;  %vm1397_vm14 = vcmp.eq.f32.partialorder %v1396_v7, 8.507059e+37 }
 0x1d7   : > { %v4115_v45 = vpop.eup %4114  ;;  %v4685_v6 = vadd.f32 1.0, %v4113_v39  ;;  %v1253_v55 = vpop.f32.mrf.mxu2 }
 0x1d8   : > { %4118 = vpow2.f32 %v3738_v12  ;;  %v1266_v10 = vadd.f32 %v1253_v55, %v1150_v56  ;;  %v1380_v52 = vsel %vm1379_vm9, %v4109_v31, %v1376_v49  ;;  %v1388_v41 = vmul.f32 %v4115_v45, %v4669_v47  ;;  %v4117_v57 = vpop.eup %4116  ;;  %v1210_v29 = vpop.f32.mrf.mxu1 }
 0x1d9   : > { %4120 = vrcp.f32 %v4685_v6  ;;  %v1385_v9 = vsel %vm1382_vm10, %v1384_v13, %v1380_v52  ;;  %v1221_v11 = vadd.f32 %v1210_v29, %v1105_v5  ;;  %vm1393_vm11 = vweird.f32 %v4115_v45 }
 0x1da   : > { %v1302_v15 = vadd.f32 %v4619_v46, %v1266_v10  ;;  %v1478_v54 = vmul.f32 %v4117_v57, %v1385_v9  ;;  %4122 = vtanh.f32 %v4634_v18  ;;  %v1389_v16 = vsub.f32 1.0, %v1388_v41  ;;  %vm1394_vm13 = vmor %vm1392_vm12, %vm1393_vm11  ;;  %v1142_v21 = vpop.f32.mrf.mxu0 }
 0x1db   : > { %v1279_v31 = vadd.f32 %v4607_v60, %v1221_v11  ;;  %v1036_v49 = vadd.f32 %v4602_v51, %v919_v48  ;;  %v988_v55 = vadd.f32 %v4590_v17, %v841_v43  ;;  %v1413_v41 = vand.u32 2147483648, %v4685_v6 }
 0x1dc   : > { %v1314_v59 = vadd.f32 %v4622_v23, %v1302_v15  ;;  %v1485_v24 = vpack.c.bf16 %v1478_v54, %v1477_v14  ;;  %v1390_v26 = vmul.f32 %v4115_v45, %v1389_v16  ;;  %vm1407_vm0 = vweird.f32 %v4685_v6 }
 0x1dd   : > { %v4699_v18 = vadd.f32 %v4610_v63, %v1279_v31  ;;  %v1104_v20 = vadd.f32 %v4652_v34, %v988_v55  ;;  %v1152_v9 = vadd.f32 %v1142_v21, %v1036_v49  ;;  %v1414_v34 = vor.u32 1.1754944e-38, %v1413_v41  ;;  %v1096_v49 = vpop.f32.mrf.mxu3 }
 0x1de   : > { %v4119_v53 = vpop.eup %4118  ;;  %v3739_v61 = vmul.f32 -1.442695, %v1314_v59  ;;  %3746 = vmatmul.msk.bf16.vlgmr.msrb.gmra.mxu3 %vm696_vm2, %v1485_v24  ;;  %3754 = vmatmul.msk.bf16.vlgmr.msrb.gmra.mxu0 %vm696_vm2, %v1485_v24  ;;  %v1391_v56 = vadd.f32 %v4115_v45, %v1390_v26  ;;  %v846_v43 = vadd.f32 %v4567_v42, %v4563_v35 }
 0x1df   : > { %v4121_v14 = vpop.eup %4120  ;;  %v4705_v25 = vadd.f32 1.0, %v4119_v53  ;;  %v1256_v62 = vpop.f32.mrf.mxu2  ;;  %v1220_v17 = vadd.f32 %v4674_v1, %v1104_v20 }
 0x1e0   : > { %4124 = vpow2.f32 %v3739_v61  ;;  %v1267_v8 = vadd.f32 %v1256_v62, %v1151_v19  ;;  %v1403_v39 = vmul.f32 %v4121_v14, %v4685_v6  ;;  %v4123_v5 = vpop.eup %4122  ;;  %v1395_v12 = vsel %vm1394_vm13, %v4115_v45, %v1391_v56 }
 0x1e1   : > { %4126 = vrcp.f32 %v4705_v25  ;;  %v1400_v47 = vsel %vm1397_vm14, %v1399_v22, %v1395_v12  ;;  %vm1408_vm15 = vweird.f32 %v4121_v14  ;;  %v1411_v45 = vand.u32 2147483647, %v4685_v6  ;;  %v4042_v22 = vld [vmem:[%s5569_s6 + $0x30] sm:$0xff] }
 0x1e2   : > { %v1303_v3 = vadd.f32 %v4619_v46, %v1267_v8  ;;  %v1404_v13 = vsub.f32 1.0, %v1403_v39  ;;  %v1479_v10 = vmul.f32 %v4123_v5, %v1400_v47  ;;  %4128 = vtanh.f32 %v1288_v38  ;;  %vm1409_vm3 = vmor %vm1407_vm0, %vm1408_vm15  ;;  %v4040_v8 = vld [vmem:[%s5569_s6 + $0x28] sm:$0xff]  ;;  %1697 = vmatpush.bf16.msra.mxu1 %v4042_v22 }
 0x1e3   : > { %vm1412_vm4 = vcmp.eq.f32.partialorder %v1411_v45, 8.507059e+37  ;;  %v1278_v26 = vadd.f32 %v4607_v60, %v1220_v17  ;;  %v1428_v7 = vand.u32 2147483648, %v4705_v25  ;;  %v1426_v61 = vand.u32 2147483647, %v4705_v25  ;;  %1744 = vmatpush.bf16.msra.mxu2 %v4040_v8  ;;  %v4765_v8 = vld [vmem:[%s5574_s11] ss:$0 sm:$0xff] }
 0x1e4   : > { %v1315_v52 = vadd.f32 %v4622_v23, %v1303_v3  ;;  %v1405_v57 = vmul.f32 %v4121_v14, %v1404_v13  ;;  %vm1422_vm6 = vweird.f32 %v4705_v25  ;;  %v990_v55 = vadd.f32 %v4600_v50, %v846_v43  ;;  %v4775_v43 = vld [vmem:[%s5576_s13] ss:$0 sm:$0xff] }
 0x1e5   : > { %vm1427_vm8 = vcmp.eq.f32.partialorder %v1426_v61, 8.507059e+37 }
 0x1e6   : > { %v4125_v51 = vpop.eup %4124  ;;  %v3740_v29 = vmul.f32 -1.442695, %v1315_v52  ;;  %v1406_v58 = vadd.f32 %v4121_v14, %v1405_v57  ;;  %v1106_v20 = vadd.f32 %v1096_v49, %v990_v55  ;;  %v1489_v49 = vld [vmem:[#allocation3] sm:$0xff] }
 0x1e7   : > { %v4127_v15 = vpop.eup %4126  ;;  %v4721_v11 = vadd.f32 1.0, %v4125_v51  ;;  %v1258_v54 = vpop.f32.mrf.mxu2 }
 0x1e8   : > { %4130 = vpow2.f32 %v3740_v29  ;;  %v1268_v4 = vadd.f32 %v1258_v54, %v1152_v9  ;;  %v1418_v16 = vmul.f32 %v4127_v15, %v4705_v25  ;;  %v1410_v59 = vsel %vm1409_vm3, %v4121_v14, %v1406_v58  ;;  %v4129_v31 = vpop.eup %4128 }
 0x1e9   : > { %4132 = vrcp.f32 %v4721_v11  ;;  %v1415_v1 = vsel %vm1412_vm4, %v1414_v34, %v1410_v59  ;;  %vm1423_vm5 = vweird.f32 %v4127_v15  ;;  %v1443_v13 = vand.u32 2147483648, %v4721_v11 }
 0x1ea   : > { %v1304_v24 = vadd.f32 %v4619_v46, %v1268_v4  ;;  %v1419_v2 = vsub.f32 1.0, %v1418_v16  ;;  %4134 = vtanh.f32 %v4666_v0  ;;  %v1480_v6 = vmul.f32 %v4129_v31, %v1415_v1  ;;  %vm1424_vm7 = vmor %vm1422_vm6, %vm1423_vm5 }
 0x1eb   : > { %v1290_v0 = vadd.f32 %v4610_v63, %v1278_v26  ;;  %v1441_v41 = vand.u32 2147483647, %v4721_v11  ;;  %vm1437_vm10 = vweird.f32 %v4721_v11  ;;  %v1444_v51 = vor.u32 1.1754944e-38, %v1443_v13 }
 0x1ec   : > { %v1316_v53 = vadd.f32 %v4622_v23, %v1304_v24  ;;  %v1420_v48 = vmul.f32 %v4127_v15, %v1419_v2  ;;  %v1486_v19 = vpack.c.bf16 %v1480_v6, %v1479_v10  ;;  %v1429_v23 = vor.u32 1.1754944e-38, %v1428_v7  ;;  %v1212_v10 = vpop.f32.mrf.mxu1 }
 0x1ed   : > { %v1222_v57 = vadd.f32 %v1212_v10, %v1106_v20  ;;  %vm1442_vm12 = vcmp.eq.f32.partialorder %v1441_v41, 8.507059e+37  ;;  %v1490_v41 = vld [vmem:[#allocation3 + $0x8] sm:$0xff] }
 0x1ee   : > { %v4131_v14 = vpop.eup %4130  ;;  %v3741_v38 = vmul.f32 -1.442695, %v1316_v53  ;;  %v1421_v62 = vadd.f32 %v4127_v15, %v1420_v48  ;;  %3747 = vmatmul.msk.bf16.gmra.mxu3 %vm696_vm2, %v1486_v19  ;;  %3755 = vmatmul.msk.bf16.gmra.mxu0 %vm696_vm2, %v1486_v19 }
 0x1ef   : > { %v4133_v46 = vpop.eup %4132  ;;  %v1355_v56 = vadd.f32 1.0, %v4131_v14  ;;  %v1280_v58 = vadd.f32 %v4607_v60, %v1222_v57 }
 0x1f0   : > { %4136 = vpow2.f32 %v3741_v38  ;;  %v1425_v25 = vsel %vm1424_vm7, %v4127_v15, %v1421_v62  ;;  %v1433_v39 = vmul.f32 %v4133_v46, %v4721_v11  ;;  %v4135_v5 = vpop.eup %4134  ;;  %vm1438_vm9 = vweird.f32 %v4133_v46 }
 0x1f1   : > { %4138 = vrcp.f32 %v1355_v56  ;;  %v1430_v12 = vsel %vm1427_vm8, %v1429_v23, %v1425_v25  ;;  %vm1439_vm11 = vmor %vm1437_vm10, %vm1438_vm9  ;;  %v1458_v4 = vand.u32 2147483648, %v1355_v56  ;;  %v1456_v16 = vand.u32 2147483647, %v1355_v56  ;;  %v4041_v23 = vld [vmem:[%s5570_s7 + $0x28] sm:$0xff]  ;;  %v4045_v25 = vld [vmem:[%s5570_s7 + $0x38] sm:$0xff] }
 0x1f2   : > { %v1434_v3 = vsub.f32 1.0, %v1433_v39  ;;  %v1481_v47 = vmul.f32 %v4135_v5, %v1430_v12  ;;  %4140 = vtanh.f32 %v1290_v0  ;;  %vm1452_vm14 = vweird.f32 %v1355_v56  ;;  %1817 = vmatpush.bf16.msra.mxu0 %v4041_v23  ;;  %1925 = vmatpush.bf16.msrb.mxu2 %v4045_v25  ;;  %v4046_v23 = vld [vmem:[%s5569_s6 + $0x40] sm:$0xff]  ;;  %v5601_v25 = vld [vmem:[#allocation8_spill] sm:$0xff] }
 0x1f3   : > { %v1292_v24 = vadd.f32 %v4610_v63, %v1280_v58  ;;  %v1459_v1 = vor.u32 1.1754944e-38, %v1458_v4  ;;  %vm1457_vm0 = vcmp.eq.f32.partialorder %v1456_v16, 8.507059e+37 }
 0x1f4   : > { %v1435_v52 = vmul.f32 %v4133_v46, %v1434_v3 }
 0x1f6   : > { %v4137_v21 = vpop.eup %4136  ;;  %v1436_v35 = vadd.f32 %v4133_v46, %v1435_v52 }
 0x1f7   : > { %v4139_v42 = vpop.eup %4138  ;;  %v1356_v45 = vadd.f32 1.0, %v4137_v21 }
 0x1f8   : > { %v1448_v29 = vmul.f32 %v4139_v42, %v1355_v56  ;;  %v1440_v50 = vsel %vm1439_vm11, %v4133_v46, %v1436_v35  ;;  %v4141_v9 = vpop.eup %4140  ;;  %vm1453_vm13 = vweird.f32 %v4139_v42  ;;  %v4043_v56 = vld [vmem:[%s5570_s7 + $0x30] sm:$0xff] }
 0x1f9   : > { %4142 = vrcp.f32 %v1356_v45  ;;  %v1445_v15 = vsel %vm1442_vm12, %v1444_v51, %v1440_v50  ;;  %vm1454_vm15 = vmor %vm1452_vm14, %vm1453_vm13  ;;  %v1473_v53 = vand.u32 2147483648, %v1356_v45  ;;  %v1471_v61 = vand.u32 2147483647, %v1356_v45  ;;  %1782 = vmatpush.bf16.msra.mxu3 %v4043_v56 }
 0x1fa   : > { %v1449_v17 = vsub.f32 1.0, %v1448_v29  ;;  %v1482_v54 = vmul.f32 %v4141_v9, %v1445_v15  ;;  %4144 = vtanh.f32 %v4699_v18  ;;  %vm1467_vm4 = vweird.f32 %v1356_v45  ;;  %v1491_v15 = vld [vmem:[#allocation3 + $0x10] sm:$0xff] }
 0x1fb   : > { %4146 = vtanh.f32 %v1292_v24  ;;  %v1474_v63 = vor.u32 1.1754944e-38, %v1473_v53  ;;  %vm1472_vm6 = vcmp.eq.f32.partialorder %v1471_v61, 8.507059e+37  ;;  %v1492_v24 = vld [vmem:[#allocation3 + $0x18] sm:$0xff] }
 0x1fc   : > { %v1487_v34 = vpack.c.bf16 %v1482_v54, %v1481_v47  ;;  %v1450_v11 = vmul.f32 %v4139_v42, %v1449_v17 }
 0x1fd   : > { %1995 = vmatpush.bf16.msrb.mxu3 %v4046_v23 }
 0x1fe   : > { %v1451_v59 = vadd.f32 %v4139_v42, %v1450_v11  ;;  %3748 = vmatmul.msk.bf16.gmra.mxu3 %vm696_vm2, %v1487_v34  ;;  %3756 = vmatmul.msk.bf16.gmra.mxu0 %vm696_vm2, %v1487_v34 }
 0x1ff   : > { %v4143_v31 = vpop.eup %4142 }
 0x200   : > { %v1463_v2 = vmul.f32 %v4143_v31, %v1356_v45  ;;  %v1455_v18 = vsel %vm1454_vm15, %v4139_v42, %v1451_v59  ;;  %v4145_v60 = vpop.eup %4144  ;;  %vm1468_vm3 = vweird.f32 %v4143_v31 }
 0x201   : > { %v1460_v26 = vsel %vm1457_vm0, %v1459_v1, %v1455_v18  ;;  %vm1469_vm5 = vmor %vm1467_vm4, %vm1468_vm3  ;;  %v4147_v38 = vpop.eup %4146 }
 0x202   : > { %v1464_v6 = vsub.f32 1.0, %v1463_v2  ;;  %v1483_v7 = vmul.f32 %v4145_v60, %v1460_v26 }
 0x204   : > { %v1465_v48 = vmul.f32 %v4143_v31, %v1464_v6 }
 0x206   : > { %v1466_v19 = vadd.f32 %v4143_v31, %v1465_v48  ;;  %v1493_v48 = vld [vmem:[#allocation3 + $0x20] sm:$0xff] }
 0x208   : > { %v1470_v14 = vsel %vm1469_vm5, %v4143_v31, %v1466_v19 }
 0x209   : > { %v1475_v62 = vsel %vm1472_vm6, %v1474_v63, %v1470_v14 }
 0x20a   : > { %v1484_v46 = vmul.f32 %v4147_v38, %v1475_v62 }
 0x20c   : > { %v1488_v0 = vpack.c.bf16 %v1484_v46, %v1483_v7  ;;  %v5600_v7 = vld [vmem:[#allocation4_spill] sm:$0xff] }
 0x20e   : > { %3749 = vmatmul.msk.bf16.gmra.mxu3 %vm696_vm2, %v1488_v0  ;;  %3757 = vmatmul.msk.bf16.gmra.mxu0 %vm696_vm2, %v1488_v0 }
 0x25b   : > { %v1587_v22 = vpop.f32.mrf.mxu0 }
 0x25c   : > { %v1588_v39 = vadd.f32 %v4765_v8, %v1587_v22  ;;  %v4047_v22 = vld [vmem:[%s5570_s7 + $0x40] sm:$0xff] }
 0x25d   : > { %2041 = vmatpush.bf16.msrb.mxu0 %v4047_v22 }
 0x25e   : > { %v1615_v5 = vadd.f32 %v1588_v39, %v4504_v33 }
 0x260   : > { %v1623_v12 = vmul.f32 %v1615_v5, %v4433_v28  ;;  %v5602_v5 = vld [vmem:[#allocation6_spill] sm:$0xff] }
 0x261   : > { %v1530_v3 = vpop.f32.mrf.mxu3 }
 0x262   : > { %1631 = vst.msk [vmem:[#allocation2 + $0x8] sm:$0xff] %vm696_vm2, %v1623_v12  ;;  %v1531_v47 = vadd.f32 %v4775_v43, %v1530_v3 }
 0x263   : > { %v1589_v55 = vpop.f32.mrf.mxu0 }
 0x264   : > { %v1550_v13 = vadd.f32 %v1531_v47, %v1489_v49  ;;  %v1590_v10 = vadd.f32 %v4765_v8, %v1589_v55  ;;  %v1494_v49 = vld [vmem:[#allocation3 + $0x28] sm:$0xff] }
 0x266   : > { %1558 = vst.msk [vmem:[#allocation3] sm:$0xff] %vm696_vm2, %v1550_v13  ;;  %v1616_v33 = vadd.f32 %v1590_v10, %v4502_v27 }
 0x268   : > { %v1624_v52 = vmul.f32 %v1616_v33, %v4443_v32  ;;  %v5603_v33 = vld [vmem:[#allocation9_spill] sm:$0xff] }
 0x269   : > { %v1532_v20 = vpop.f32.mrf.mxu3  ;;  %v1657_v51 = vld [vmem:[#allocation2 + $0x6] sm:$0xff] }
 0x26a   : > { %1632 = vst.msk [vmem:[#allocation2 + $0x10] sm:$0xff] %vm696_vm2, %v1624_v52  ;;  %v1533_v21 = vadd.f32 %v4775_v43, %v1532_v20  ;;  %v1639_v50 = vld [vmem:[#allocation2 + $0x4] sm:$0xff] }
 0x26b   : > { %v1592_v42 = vpop.f32.mrf.mxu0 }
 0x26c   : > { %v1551_v35 = vadd.f32 %v1533_v21, %v1490_v41  ;;  %v1593_v57 = vadd.f32 %v4765_v8, %v1592_v42  ;;  %v5604_v41 = vld [vmem:[#allocation5_spill] sm:$0xff]  ;;  %v1495_v21 = vld [vmem:[#allocation3 + $0x30] sm:$0xff] }
 0x26e   : > { %1559 = vst.msk [vmem:[#allocation3 + $0x8] sm:$0xff] %vm696_vm2, %v1551_v35  ;;  %v1617_v45 = vadd.f32 %v1593_v57, %v4512_v36  ;;  %v4044_v36 = vld [vmem:[%s5569_s6 + $0x38] sm:$0xff] }
 0x26f   : > { %1879 = vmatpush.bf16.msrb.mxu1 %v4044_v36 }
 0x270   : > { %v1625_v29 = vmul.f32 %v1617_v45, %v4438_v30 }
 0x271   : > { %v1658_v27 = vld [vmem:[#allocation2 + $0xe] sm:$0xff]  ;;  %v1535_v17 = vpop.f32.mrf.mxu3 }
 0x272   : > { %v4790_v9 = vld [vmem:[#allocation2 + $0xc] sm:$0xff]  ;;  %v1665_v54 = vpack.c.bf16 %v1658_v27, %v1657_v51  ;;  %1633 = vst.msk [vmem:[#allocation2 + $0x18] sm:$0xff] %vm696_vm2, %v1625_v29  ;;  %v1536_v4 = vadd.f32 %v4775_v43, %v1535_v17 }
 0x273   : > { %v1647_v58 = vpack.c.bf16 %v4790_v9, %v1639_v50  ;;  %v1594_v34 = vpop.f32.mrf.mxu0 }
 0x274   : > { %3768 = vmatmul.msk.bf16.vlgmr.msra.gmra.mxu1 %vm696_vm2, %v1665_v54  ;;  %v1552_v11 = vadd.f32 %v1536_v4, %v1491_v15  ;;  %v1595_v16 = vadd.f32 %v4765_v8, %v1594_v34  ;;  %3786 = vmatmul.msk.bf16.vlgmr.msra.gmra.mxu3 %vm696_vm2, %v1665_v54  ;;  %v4244_v4 = vld [vmem:[#allocation2 + $0x40] sm:$0xff]  ;;  %v5605_v34 = vld [vmem:[#allocation7_spill] sm:$0xff] }
 0x275   : > { %3776 = vmatmul.msk.bf16.vlgmr.msra.gmra.mxu2 %vm696_vm2, %v1647_v58  ;;  %3794 = vmatmul.msk.bf16.vlgmr.msra.gmra.mxu0 %vm696_vm2, %v1647_v58  ;;  %v4049_v58 = vld [vmem:[%s5570_s7 + $0x48] sm:$0xff] }
 0x276   : > { %1560 = vst.msk [vmem:[#allocation3 + $0x10] sm:$0xff] %vm696_vm2, %v1552_v11  ;;  %v1618_v59 = vadd.f32 %v1595_v16, %v4514_v37  ;;  %2157 = vmatpush.bf16.msra.mxu2 %v4049_v58 }
 0x278   : > { %v1626_v31 = vmul.f32 %v1618_v59, %v4451_v40 }
 0x279   : > { %v1537_v1 = vpop.f32.mrf.mxu3  ;;  %v1659_v37 = vld [vmem:[#allocation2 + $0x16] sm:$0xff] }
 0x27a   : > { %1634 = vst.msk [vmem:[#allocation2 + $0x20] sm:$0xff] %vm696_vm2, %v1626_v31  ;;  %v1538_v2 = vadd.f32 %v4775_v43, %v1537_v1  ;;  %v4812_v63 = vld [vmem:[#allocation2 + $0x14] sm:$0xff] }
 0x27b   : > { %v1597_v18 = vpop.f32.mrf.mxu0 }
 0x27c   : > { %v1553_v60 = vadd.f32 %v1538_v2, %v1492_v24  ;;  %v1598_v26 = vadd.f32 %v4765_v8, %v1597_v18 }
 0x27e   : > { %1561 = vst.msk [vmem:[#allocation3 + $0x18] sm:$0xff] %vm696_vm2, %v1553_v60  ;;  %v1619_v6 = vadd.f32 %v1598_v26, %v4522_v44 }
 0x280   : > { %v1627_v53 = vmul.f32 %v1619_v6, %v5600_v7  ;;  %v4874_v6 = vld [vmem:[#allocation2 + $0x10] sm:$0xff] }
 0x281   : > { %v1540_v61 = vpop.f32.mrf.mxu3  ;;  %v1660_v19 = vld [vmem:[#allocation2 + $0x1e] sm:$0xff] }
 0x282   : > { %v4814_v14 = vld [vmem:[#allocation2 + $0x1c] sm:$0xff]  ;;  %1635 = vst.msk [vmem:[#allocation2 + $0x28] sm:$0xff] %vm696_vm2, %v1627_v53  ;;  %v1541_v38 = vadd.f32 %v4775_v43, %v1540_v61  ;;  %v1666_v62 = vpack.c.bf16 %v1660_v19, %v1659_v37  ;;  %v1956_v53 = vld [vmem:[#allocation2 + $0x12] sm:$0xff]  ;;  %v1955_v61 = vld [vmem:[#allocation2 + $0xa] sm:$0xff] }
 0x283   : > { %v1648_v46 = vpack.c.bf16 %v4814_v14, %v4812_v63  ;;  %v1599_v0 = vpop.f32.mrf.mxu0  ;;  %v1963_v19 = vpack.c.bf16 %v1956_v53, %v1955_v61 }
 0x284   : > { %v1554_v44 = vadd.f32 %v1541_v38, %v1493_v48  ;;  %v1600_v56 = vadd.f32 %v4765_v8, %v1599_v0  ;;  %3769 = vmatmul.msk.bf16.gmra.mxu1 %vm696_vm2, %v1666_v62  ;;  %3787 = vmatmul.msk.bf16.gmra.mxu3 %vm696_vm2, %v1666_v62  ;;  %v4876_v48 = vld [vmem:[#allocation2 + $0x8] sm:$0xff]  ;;  %v4884_v38 = vld [vmem:[#allocation2 + $0x20] sm:$0xff] }
 0x285   : > { %3777 = vmatmul.msk.bf16.gmra.mxu2 %vm696_vm2, %v1648_v46  ;;  %3795 = vmatmul.msk.bf16.gmra.mxu0 %vm696_vm2, %v1648_v46  ;;  %v1847_v37 = vpack.c.bf16 %v4874_v6, %v4876_v48  ;;  %v4886_v46 = vld [vmem:[#allocation2 + $0x18] sm:$0xff] }
 0x286   : > { %1562 = vst.msk [vmem:[#allocation3 + $0x20] sm:$0xff] %vm696_vm2, %v1554_v44  ;;  %v1620_v39 = vadd.f32 %v1600_v56, %v5601_v25  ;;  %v1848_v0 = vpack.c.bf16 %v4884_v38, %v4886_v46  ;;  %v1957_v44 = vld [vmem:[#allocation2 + $0x1a] sm:$0xff] }
 0x288   : > { %v1628_v12 = vmul.f32 %v1620_v39, %v5602_v5 }
 0x289   : > { %v1542_v3 = vpop.f32.mrf.mxu3  ;;  %v1661_v35 = vld [vmem:[#allocation2 + $0x26] sm:$0xff] }
 0x28a   : > { %1636 = vst.msk [vmem:[#allocation2 + $0x30] sm:$0xff] %vm696_vm2, %v1628_v12  ;;  %v1543_v47 = vadd.f32 %v4775_v43, %v1542_v3  ;;  %v4840_v45 = vld [vmem:[#allocation2 + $0x24] sm:$0xff] }
 0x28b   : > { %v1602_v55 = vpop.f32.mrf.mxu0  ;;  %v1958_v62 = vld [vmem:[#allocation2 + $0x22] sm:$0xff] }
 0x28c   : > { %v1555_v13 = vadd.f32 %v1543_v47, %v1494_v49  ;;  %v1603_v10 = vadd.f32 %v4765_v8, %v1602_v55  ;;  %v1964_v56 = vpack.c.bf16 %v1958_v62, %v1957_v44  ;;  %v4896_v25 = vld [vmem:[#allocation2 + $0x28] sm:$0xff] }
 0x28e   : > { %1563 = vst.msk [vmem:[#allocation3 + $0x28] sm:$0xff] %vm696_vm2, %v1555_v13  ;;  %v1621_v52 = vadd.f32 %v1603_v10, %v5603_v33 }
 0x290   : > { %v1629_v20 = vmul.f32 %v1621_v52, %v5604_v41 }
 0x291   : > { %v1545_v42 = vpop.f32.mrf.mxu3  ;;  %v1662_v57 = vld [vmem:[#allocation2 + $0x2e] sm:$0xff] }
 0x292   : > { %v4842_v51 = vld [vmem:[#allocation2 + $0x2c] sm:$0xff]  ;;  %1637 = vst.msk [vmem:[#allocation2 + $0x38] sm:$0xff] %vm696_vm2, %v1629_v20  ;;  %v1546_v29 = vadd.f32 %v4775_v43, %v1545_v42  ;;  %v1667_v27 = vpack.c.bf16 %v1662_v57, %v1661_v35  ;;  %v2079_v20 = vpack.c.bf16 %v4812_v63, %v4790_v9 }
 0x293   : > { %v1649_v50 = vpack.c.bf16 %v4842_v51, %v4840_v45  ;;  %v1604_v15 = vpop.f32.mrf.mxu0  ;;  %v4894_v23 = vld [vmem:[#allocation2 + $0x30] sm:$0xff] }
 0x294   : > { %v1556_v17 = vadd.f32 %v1546_v29, %v1495_v21  ;;  %v1605_v54 = vadd.f32 %v4765_v8, %v1604_v15  ;;  %3770 = vmatmul.msk.bf16.gmra.mxu1 %vm696_vm2, %v1667_v27  ;;  %3788 = vmatmul.msk.bf16.gmra.mxu3 %vm696_vm2, %v1667_v27  ;;  %v1496_v8 = vld [vmem:[#allocation3 + $0x38] sm:$0xff]  ;;  %5606 = vst [vmem:[#allocation8_spill] sm:$0xff] %v4894_v23 }
 0x295   : > { %3778 = vmatmul.msk.bf16.gmra.mxu2 %vm696_vm2, %v1649_v50  ;;  %3796 = vmatmul.msk.bf16.gmra.mxu0 %vm696_vm2, %v1649_v50  ;;  %v1849_v39 = vpack.c.bf16 %v4894_v23, %v4896_v25  ;;  %v1959_v12 = vld [vmem:[#allocation2 + $0x2a] sm:$0xff]  ;;  %v2080_v27 = vpack.c.bf16 %v4840_v45, %v4814_v14 }
 0x296   : > { %1564 = vst.msk [vmem:[#allocation3 + $0x30] sm:$0xff] %vm696_vm2, %v1556_v17  ;;  %v1622_v36 = vadd.f32 %v4244_v4, %v1605_v54 }
 0x298   : > { %v1630_v11 = vmul.f32 %v1622_v36, %v5605_v34 }
 0x299   : > { %v1547_v16 = vpop.f32.mrf.mxu3  ;;  %v1663_v24 = vld [vmem:[#allocation2 + $0x36] sm:$0xff] }
 0x29a   : > { %1638 = vst.msk [vmem:[#allocation2 + $0x40] sm:$0xff] %vm696_vm2, %v1630_v11  ;;  %v1548_v59 = vadd.f32 %v4775_v43, %v1547_v16  ;;  %v4861_v2 = vld [vmem:[#allocation2 + $0x34] sm:$0xff]  ;;  %v4048_v43 = vld [vmem:[%s5569_s6 + $0x48] sm:$0xff] }
 0x29b   : > { %2111 = vmatpush.bf16.msra.mxu1 %v4048_v43  ;;  %v1960_v22 = vld [vmem:[#allocation2 + $0x32] sm:$0xff]  ;;  %v2081_v58 = vpack.c.bf16 %v4861_v2, %v4842_v51 }
 0x29c   : > { %v1557_v31 = vadd.f32 %v1548_v59, %v1496_v8  ;;  %v1965_v49 = vpack.c.bf16 %v1960_v22, %v1959_v12  ;;  %v4904_v13 = vld [vmem:[#allocation2 + $0x38] sm:$0xff] }
 0x29d   : > { %5607 = vst [vmem:[#allocation9_spill] sm:$0xff] %v4904_v13 }
 0x29e   : > { %1565 = vst.msk [vmem:[#allocation3 + $0x38] sm:$0xff] %vm696_vm2, %v1557_v31 }
 0x2a1   : > { %v1664_v1 = vld [vmem:[#allocation2 + $0x3e] sm:$0xff] }
 0x2a2   : > { %v4863_v18 = vld [vmem:[#allocation2 + $0x3c] sm:$0xff]  ;;  %v1668_v60 = vpack.c.bf16 %v1664_v1, %v1663_v24  ;;  %v2078_v16 = vld [vmem:[#allocation2 + $0x44] sm:$0xff] }
 0x2a3   : > { %v1650_v26 = vpack.c.bf16 %v4863_v18, %v4861_v2  ;;  %v1846_v3 = vld [vmem:[#allocation2 + $0x40] sm:$0xff]  ;;  %v2082_v24 = vpack.c.bf16 %v2078_v16, %v4863_v18 }
 0x2a4   : > { %3771 = vmatmul.msk.bf16.gmra.mxu1 %vm696_vm2, %v1668_v60  ;;  %3789 = vmatmul.msk.bf16.gmra.mxu3 %vm696_vm2, %v1668_v60  ;;  %v1961_v47 = vld [vmem:[#allocation2 + $0x3a] sm:$0xff]  ;;  %v1962_v55 = vld [vmem:[#allocation2 + $0x42] sm:$0xff]  ;;  %v1850_v10 = vpack.c.bf16 %v1846_v3, %v4904_v13 }
 0x2a5   : > { %3779 = vmatmul.msk.bf16.gmra.mxu2 %vm696_vm2, %v1650_v26  ;;  %3797 = vmatmul.msk.bf16.gmra.mxu0 %vm696_vm2, %v1650_v26  ;;  %v1966_v33 = vpack.c.bf16 %v1962_v55, %v1961_v47  ;;  %v4051_v47 = vld [vmem:[%s5573_s10 + $0x8] sm:$0xff] }
 0x2a6   : > { %2511 = vmatpush.bf16.msra.mxu0 %v4051_v47 }
 0x2b4   : > { %3804 = vmatmul.msk.bf16.vlgmr.msrb.gmra.mxu1 %vm696_vm2, %v1847_v37  ;;  %3824 = vmatmul.msk.bf16.vlgmr.msrb.gmra.mxu3 %vm696_vm2, %v1963_v19 }
 0x2b5   : > { %3814 = vmatmul.msk.bf16.vlgmr.msrb.gmra.mxu2 %vm696_vm2, %v1847_v37  ;;  %3834 = vmatmul.msk.bf16.vlgmr.msrb.gmra.mxu0 %vm696_vm2, %v1963_v19 }
 0x2c4   : > { %3805 = vmatmul.msk.bf16.gmra.mxu1 %vm696_vm2, %v1848_v0  ;;  %3825 = vmatmul.msk.bf16.gmra.mxu3 %vm696_vm2, %v1964_v56 }
 0x2c5   : > { %3815 = vmatmul.msk.bf16.gmra.mxu2 %vm696_vm2, %v1848_v0  ;;  %3835 = vmatmul.msk.bf16.gmra.mxu0 %vm696_vm2, %v1964_v56 }
 0x2d4   : > { %3806 = vmatmul.msk.bf16.gmra.mxu1 %vm696_vm2, %v1849_v39  ;;  %3826 = vmatmul.msk.bf16.gmra.mxu3 %vm696_vm2, %v1965_v49 }
 0x2d5   : > { %3816 = vmatmul.msk.bf16.gmra.mxu2 %vm696_vm2, %v1849_v39  ;;  %3836 = vmatmul.msk.bf16.gmra.mxu0 %vm696_vm2, %v1965_v49 }
 0x2e4   : > { %3807 = vmatmul.msk.bf16.gmra.mxu1 %vm696_vm2, %v1850_v10  ;;  %3827 = vmatmul.msk.bf16.gmra.mxu3 %vm696_vm2, %v1966_v33 }
 0x2e5   : > { %3817 = vmatmul.msk.bf16.gmra.mxu2 %vm696_vm2, %v1850_v10  ;;  %3837 = vmatmul.msk.bf16.gmra.mxu0 %vm696_vm2, %v1966_v33 }
 0x2f1   : > { %v1699_v52 = vpop.f32.mrf.mxu1 }
 0x2f2   : > { %v1819_v14 = vpop.f32.mrf.mxu0 }
 0x2f4   : > { %3844 = vmatmul.msk.bf16.vlgmr.msra.gmra.mxu1 %vm696_vm2, %v2079_v20 }
 0x2f5   : > { %3854 = vmatmul.msk.bf16.vlgmr.msra.gmra.mxu2 %vm696_vm2, %v2079_v20 }
 0x2f7   : > { %v1784_v15 = vpop.f32.mrf.mxu3 }
 0x2f8   : > { %v1746_v21 = vpop.f32.mrf.mxu2  ;;  %v1820_v62 = vadd.f32 %v1819_v14, %v1784_v15 }
 0x2f9   : > { %v1747_v35 = vadd.f32 %v1746_v21, %v1699_v52  ;;  %v4915_v42 = vpop.f32.mrf.mxu1 }
 0x2fa   : > { %v4937_v59 = vpop.f32.mrf.mxu0 }
 0x2ff   : > { %v4931_v36 = vpop.f32.mrf.mxu3 }
 0x300   : > { %v4917_v57 = vpop.f32.mrf.mxu2 }
 0x301   : > { %v1704_v29 = vpop.f32.mrf.mxu1 }
 0x302   : > { %v1824_v26 = vpop.f32.mrf.mxu0 }
 0x304   : > { %3845 = vmatmul.msk.bf16.gmra.mxu1 %vm696_vm2, %v2080_v27 }
 0x305   : > { %3855 = vmatmul.msk.bf16.gmra.mxu2 %vm696_vm2, %v2080_v27 }
 0x307   : > { %v1789_v51 = vpop.f32.mrf.mxu3 }
 0x308   : > { %v1751_v50 = vpop.f32.mrf.mxu2  ;;  %v1825_v55 = vadd.f32 %v1824_v26, %v1789_v51 }
 0x309   : > { %v1752_v9 = vadd.f32 %v1751_v50, %v1704_v29  ;;  %v4923_v63 = vpop.f32.mrf.mxu1 }
 0x30a   : > { %v4948_v19 = vpop.f32.mrf.mxu0 }
 0x30f   : > { %v4944_v43 = vpop.f32.mrf.mxu3 }
 0x310   : > { %v4925_v17 = vpop.f32.mrf.mxu2 }
 0x311   : > { %v1709_v54 = vpop.f32.mrf.mxu1 }
 0x312   : > { %v1829_v22 = vpop.f32.mrf.mxu0 }
 0x314   : > { %3846 = vmatmul.msk.bf16.gmra.mxu1 %vm696_vm2, %v2081_v58 }
 0x315   : > { %3856 = vmatmul.msk.bf16.gmra.mxu2 %vm696_vm2, %v2081_v58 }
 0x317   : > { %v1794_v18 = vpop.f32.mrf.mxu3 }
 0x318   : > { %v1756_v45 = vpop.f32.mrf.mxu2  ;;  %v1830_v15 = vadd.f32 %v1829_v22, %v1794_v18 }
 0x319   : > { %v1757_v4 = vadd.f32 %v1756_v45, %v1709_v54  ;;  %v4933_v11 = vpop.f32.mrf.mxu1 }
 0x31a   : > { %v4957_v52 = vpop.f32.mrf.mxu0 }
 0x31f   : > { %v4952_v12 = vpop.f32.mrf.mxu3 }
 0x320   : > { %v4935_v8 = vpop.f32.mrf.mxu2 }
 0x321   : > { %v1714_v31 = vpop.f32.mrf.mxu1 }
 0x322   : > { %v1834_v50 = vpop.f32.mrf.mxu0 }
 0x324   : > { %3847 = vmatmul.msk.bf16.gmra.mxu1 %vm696_vm2, %v2082_v24 }
 0x325   : > { %3857 = vmatmul.msk.bf16.gmra.mxu2 %vm696_vm2, %v2082_v24 }
 0x327   : > { %v1799_v21 = vpop.f32.mrf.mxu3 }
 0x328   : > { %v1761_v1 = vpop.f32.mrf.mxu2 }
 0x329   : > { %v1762_v2 = vadd.f32 %v1761_v1, %v1714_v31  ;;  %v4942_v60 = vpop.f32.mrf.mxu1 }
 0x32a   : > { %v4971_v45 = vpop.f32.mrf.mxu0 }
 0x330   : > { %v4946_v53 = vpop.f32.mrf.mxu2 }
 0x331   : > { %v1881_v37 = vpop.f32.mrf.mxu1 }
 0x332   : > { %v1901_v61 = vadd.f32 %v1881_v37, %v1747_v35  ;;  %v2043_v1 = vpop.f32.mrf.mxu0 }
 0x338   : > { %v1927_v0 = vpop.f32.mrf.mxu2 }
 0x339   : > { %v1947_v44 = vadd.f32 %v1927_v0, %v1820_v62  ;;  %v4950_v56 = vpop.f32.mrf.mxu1 }
 0x33a   : > { %v2045_v47 = vpop.f32.mrf.mxu0 }
 0x340   : > { %v1929_v39 = vpop.f32.mrf.mxu2 }
 0x341   : > { %v1886_v49 = vpop.f32.mrf.mxu1 }
 0x342   : > { %v1903_v3 = vadd.f32 %v1886_v49, %v1752_v9  ;;  %v4965_v9 = vpop.f32.mrf.mxu3  ;;  %v4986_v49 = vld [vmem:[%s5571_s8 + $0x1] ss:$0 sm:$0xff] }
 0x348   : > { %v1932_v10 = vpop.f32.mrf.mxu2 }
 0x349   : > { %v1949_v33 = vadd.f32 %v1932_v10, %v1825_v55  ;;  %v4959_v20 = vpop.f32.mrf.mxu1  ;;  %v4989_v55 = vld [vmem:[%s4370_s17 + $0x1] ss:$0 sm:$0xff] }
 0x34a   : > { %v1997_v16 = vpop.f32.mrf.mxu3 }
 0x34b   : > { %v2017_v22 = vadd.f32 %v1997_v16, %v1901_v61  ;;  %v4998_v61 = vld [vmem:[%s5572_s9 + $0x1] ss:$0 sm:$0xff] }
 0x34c   : > { %v5001_v16 = vld [vmem:[%s4375_s20 + $0x1] ss:$0 sm:$0xff] }
 0x350   : > { %v4961_v35 = vpop.f32.mrf.mxu2 }
 0x351   : > { %v1891_v29 = vpop.f32.mrf.mxu1 }
 0x352   : > { %v4963_v27 = vadd.f32 %v1891_v29, %v1757_v4  ;;  %v1835_v4 = vadd.f32 %v1834_v50, %v1799_v21  ;;  %v1999_v62 = vpop.f32.mrf.mxu3 }
 0x358   : > { %v1937_v54 = vpop.f32.mrf.mxu2 }
 0x359   : > { %v4967_v58 = vadd.f32 %v1937_v54, %v1830_v15  ;;  %v4969_v14 = vpop.f32.mrf.mxu1  ;;  %v2063_v15 = vadd.f32 %v2043_v1, %v1947_v44 }
 0x35a   : > { %v2002_v21 = vpop.f32.mrf.mxu3 }
 0x35b   : > { %v2019_v13 = vadd.f32 %v2002_v21, %v1903_v3 }
 0x360   : > { %v4973_v31 = vpop.f32.mrf.mxu2 }
 0x361   : > { %v1896_v24 = vpop.f32.mrf.mxu1 }
 0x362   : > { %v4975_v51 = vadd.f32 %v1896_v24, %v1762_v2  ;;  %v1822_v24 = vadd.f32 %v4937_v59, %v4931_v36  ;;  %v5007_v44 = vpop.f32.mrf.mxu3 }
 0x368   : > { %v1942_v26 = vpop.f32.mrf.mxu2 }
 0x369   : > { %v4977_v37 = vadd.f32 %v1942_v26, %v1835_v4  ;;  %v4979_v18 = vpop.f32.mrf.mxu1 }
 0x370   : > { %v4981_v0 = vpop.f32.mrf.mxu2 }
 0x371   : > { %v2113_v2 = vpop.f32.mrf.mxu1 }
 0x372   : > { %v2133_v10 = vadd.f32 %v2113_v2, %v2017_v22  ;;  %v1948_v22 = vadd.f32 %v1929_v39, %v1822_v24 }
 0x374   : > { %v2192_v29 = vadd.f32 %v4986_v49, %v2133_v10  ;;  %v2048_v10 = vpop.f32.mrf.mxu0  ;;  %v2064_v34 = vadd.f32 %v2045_v47, %v1948_v22 }
 0x375   : > { %v2065_v3 = vadd.f32 %v2048_v10, %v1949_v33 }
 0x376   : > { %v4993_v50 = vadd.f32 %v4989_v55, %v2192_v29 }
 0x378   : > { %v2159_v54 = vpop.f32.mrf.mxu2 }
 0x379   : > { %v2179_v4 = vadd.f32 %v2159_v54, %v2063_v15  ;;  %v2115_v26 = vpop.f32.mrf.mxu1  ;;  %v4050_v54 = vld [vmem:[%s5575_s12 + $0x8] sm:$0xff] }
 0x37a   : > { %2452 = vmatpush.bf16.msra.mxu3 %v4050_v54 }
 0x37b   : > { %v2218_v2 = vadd.f32 %v4998_v61, %v2179_v4 }
 0x37c   : > { %v2050_v15 = vpop.f32.mrf.mxu0 }
 0x37d   : > { %v2231_v29 = vadd.f32 %v5001_v16, %v2218_v2 }
 0x37f   : > { %v3862_v1 = vmul.f32 -1.442695, %v2231_v29 }
 0x380   : > { %v2161_v41 = vpop.f32.mrf.mxu2 }
 0x381   : > { %4148 = vpow2.f32 %v3862_v1  ;;  %v2180_v5 = vadd.f32 %v2161_v41, %v2064_v34  ;;  %v2118_v23 = vpop.f32.mrf.mxu1  ;;  %v2007_v41 = vpop.f32.mrf.mxu3 }
 0x382   : > { %v2135_v36 = vadd.f32 %v2118_v23, %v2019_v13  ;;  %v1749_v13 = vadd.f32 %v4917_v57, %v4915_v42  ;;  %v2021_v54 = vadd.f32 %v2007_v41, %v4963_v27 }
 0x383   : > { %v2219_v7 = vadd.f32 %v4998_v61, %v2180_v5 }
 0x384   : > { %v2194_v39 = vadd.f32 %v4986_v49, %v2135_v36  ;;  %v1902_v2 = vadd.f32 %v4950_v56, %v1749_v13 }
 0x385   : > { %v2232_v59 = vadd.f32 %v5001_v16, %v2219_v7  ;;  %v1827_v7 = vadd.f32 %v4948_v19, %v4944_v43 }
 0x386   : > { %v5016_v47 = vadd.f32 %v4989_v55, %v2194_v39  ;;  %v2018_v29 = vadd.f32 %v1999_v62, %v1902_v2 }
 0x387   : > { %v4149_v24 = vpop.eup %4148  ;;  %v3863_v4 = vmul.f32 -1.442695, %v2232_v59  ;;  %v1950_v22 = vadd.f32 %v4961_v35, %v1827_v7  ;;  %v2053_v59 = vpop.f32.mrf.mxu0 }
 0x388   : > { %v5018_v34 = vadd.f32 1.0, %v4149_v24  ;;  %v2164_v5 = vpop.f32.mrf.mxu2  ;;  %v2134_v39 = vadd.f32 %v2115_v26, %v2018_v29 }
 0x389   : > { %4150 = vpow2.f32 %v3863_v4  ;;  %v2181_v23 = vadd.f32 %v2164_v5, %v2065_v3  ;;  %v5025_v21 = vpop.f32.mrf.mxu1  ;;  %v2066_v19 = vadd.f32 %v2050_v15, %v1950_v22  ;;  %v5035_v4 = vpop.f32.mrf.mxu3 }
 0x38a   : > { %4152 = vrcp.f32 %v5018_v34  ;;  %v2193_v26 = vadd.f32 %v4986_v49, %v2134_v39  ;;  %v2290_v41 = vand.u32 2147483648, %v5018_v34  ;;  %vm2284_vm8 = vweird.f32 %v5018_v34 }
 0x38b   : > { %v2220_v33 = vadd.f32 %v4998_v61, %v2181_v23  ;;  %v2067_v23 = vadd.f32 %v2053_v59, %v4967_v58  ;;  %v1754_v58 = vadd.f32 %v4925_v17, %v4923_v63 }
 0x38d   : > { %v2233_v10 = vadd.f32 %v5001_v16, %v2220_v33  ;;  %v2288_v33 = vand.u32 2147483647, %v5018_v34  ;;  %v1904_v17 = vadd.f32 %v4959_v20, %v1754_v58 }
 0x38f   : > { %v4151_v1 = vpop.eup %4150  ;;  %v3864_v43 = vmul.f32 -1.442695, %v2233_v10  ;;  %vm2289_vm10 = vcmp.eq.f32.partialorder %v2288_v33, 8.507059e+37 }
 0x390   : > { %v4153_v36 = vpop.eup %4152  ;;  %v5031_v42 = vadd.f32 1.0, %v4151_v1  ;;  %v2166_v57 = vpop.f32.mrf.mxu2  ;;  %v1832_v1 = vadd.f32 %v4957_v52, %v4952_v12 }
 0x391   : > { %v2280_v35 = vmul.f32 %v4153_v36, %v5018_v34  ;;  %4154 = vpow2.f32 %v3864_v43  ;;  %v2182_v24 = vadd.f32 %v2166_v57, %v2066_v19  ;;  %v2123_v56 = vpop.f32.mrf.mxu1  ;;  %vm2285_vm7 = vweird.f32 %v4153_v36  ;;  %v2055_v12 = vpop.f32.mrf.mxu0 }
 0x392   : > { %4156 = vrcp.f32 %v5031_v42  ;;  %v2137_v3 = vadd.f32 %v2123_v56, %v2021_v54  ;;  %vm5058_vm9 = vmor %vm2284_vm8, %vm2285_vm7  ;;  %v1952_v52 = vadd.f32 %v4973_v31, %v1832_v1  ;;  %v2291_v34 = vor.u32 1.1754944e-38, %v2290_v41 }
 0x393   : > { %v2281_v62 = vsub.f32 1.0, %v2280_v35  ;;  %v2221_v15 = vadd.f32 %v4998_v61, %v2182_v24  ;;  %4158 = vtanh.f32 %v4993_v50  ;;  %v2206_v50 = vadd.f32 %v4989_v55, %v2193_v26 }
 0x394   : > { %v2196_v27 = vadd.f32 %v4986_v49, %v2137_v3  ;;  %v2305_v31 = vand.u32 2147483648, %v5031_v42  ;;  %v2068_v20 = vadd.f32 %v2055_v12, %v1952_v52  ;;  %vm2299_vm12 = vweird.f32 %v5031_v42 }
 0x395   : > { %v2282_v5 = vmul.f32 %v4153_v36, %v2281_v62  ;;  %v2234_v7 = vadd.f32 %v5001_v16, %v2221_v15  ;;  %v2012_v62 = vpop.f32.mrf.mxu3  ;;  %v2303_v15 = vand.u32 2147483647, %v5031_v42 }
 0x396   : > { %v5047_v10 = vadd.f32 %v4989_v55, %v2196_v27  ;;  %v2023_v41 = vadd.f32 %v2012_v62, %v4975_v51  ;;  %v2306_v33 = vor.u32 1.1754944e-38, %v2305_v31 }
 0x397   : > { %v4155_v13 = vpop.eup %4154  ;;  %v2283_v22 = vadd.f32 %v4153_v36, %v2282_v5  ;;  %v3865_v2 = vmul.f32 -1.442695, %v2234_v7  ;;  %vm2304_vm14 = vcmp.eq.f32.partialorder %v2303_v15, 8.507059e+37 }
 0x398   : > { %v4157_v29 = vpop.eup %4156  ;;  %v5053_v43 = vadd.f32 1.0, %v4155_v13  ;;  %v2169_v19 = vpop.f32.mrf.mxu2 }
 0x399   : > { %v2295_v39 = vmul.f32 %v4157_v29, %v5031_v42  ;;  %4160 = vpow2.f32 %v3865_v2  ;;  %v2183_v57 = vadd.f32 %v2169_v19, %v2067_v23  ;;  %v5065_v54 = vpop.f32.mrf.mxu1  ;;  %v2287_v63 = vsel %vm5058_vm9, %v4153_v36, %v2283_v22  ;;  %v4159_v56 = vpop.eup %4158 }
 0x39a   : > { %4162 = vrcp.f32 %v5053_v43  ;;  %v2292_v3 = vsel %vm2289_vm10, %v2291_v34, %v2287_v63  ;;  %vm2300_vm11 = vweird.f32 %v4157_v29  ;;  %v2020_v36 = vadd.f32 %v5007_v44, %v1904_v17 }
 0x39b   : > { %v2296_v35 = vsub.f32 1.0, %v2295_v39  ;;  %v2222_v24 = vadd.f32 %v4998_v61, %v2183_v57  ;;  %4164 = vtanh.f32 %v2206_v50  ;;  %v2399_v7 = vmul.f32 %v4159_v56, %v2292_v3  ;;  %vm2301_vm13 = vmor %vm2299_vm12, %vm2300_vm11 }
 0x39c   : > { %v2136_v2 = vadd.f32 %v5025_v21, %v2020_v36  ;;  %v2058_v21 = vpop.f32.mrf.mxu0  ;;  %v2318_v63 = vand.u32 2147483647, %v5053_v43  ;;  %v2320_v17 = vand.u32 2147483648, %v5053_v43  ;;  %v1837_v56 = vadd.f32 %v4971_v45, %v4965_v9 }
 0x39d   : > { %v2297_v26 = vmul.f32 %v4157_v29, %v2296_v35  ;;  %v2235_v5 = vadd.f32 %v5001_v16, %v2222_v24  ;;  %v2069_v15 = vadd.f32 %v2058_v21, %v4977_v37  ;;  %vm2314_vm0 = vweird.f32 %v5053_v43 }
 0x39e   : > { %v2195_v52 = vadd.f32 %v4986_v49, %v2136_v2  ;;  %vm2319_vm4 = vcmp.eq.f32.partialorder %v2318_v63, 8.507059e+37 }
 0x39f   : > { %v4161_v27 = vpop.eup %4160  ;;  %v2298_v23 = vadd.f32 %v4157_v29, %v2297_v26  ;;  %v3866_v13 = vmul.f32 -1.442695, %v2235_v5 }
 0x3a0   : > { %v4163_v22 = vpop.eup %4162  ;;  %v5078_v1 = vadd.f32 1.0, %v4161_v27  ;;  %v2171_v50 = vpop.f32.mrf.mxu2 }
 0x3a1   : > { %v2310_v19 = vmul.f32 %v4163_v22, %v5053_v43  ;;  %4166 = vpow2.f32 %v3866_v13  ;;  %v2184_v44 = vadd.f32 %v2171_v50, %v2068_v20  ;;  %v2302_v58 = vsel %vm2301_vm13, %v4157_v29, %v2298_v23  ;;  %v4165_v59 = vpop.eup %4164  ;;  %v2128_v51 = vpop.f32.mrf.mxu1 }
 0x3a2   : > { %4168 = vrcp.f32 %v5078_v1  ;;  %v2307_v42 = vsel %vm2304_vm14, %v2306_v33, %v2302_v58  ;;  %v2139_v12 = vadd.f32 %v2128_v51, %v2023_v41  ;;  %vm2315_vm15 = vweird.f32 %v4163_v22 }
 0x3a3   : > { %4170 = vtanh.f32 %v5016_v47  ;;  %v2311_v39 = vsub.f32 1.0, %v2310_v19  ;;  %v2223_v57 = vadd.f32 %v4998_v61, %v2184_v44  ;;  %v2400_v34 = vmul.f32 %v4165_v59, %v2307_v42  ;;  %vm2316_vm3 = vmor %vm2314_vm0, %vm2315_vm15 }
 0x3a4   : > { %v2198_v35 = vadd.f32 %v4986_v49, %v2139_v12  ;;  %v1759_v47 = vadd.f32 %v4935_v8, %v4933_v11  ;;  %v2208_v20 = vadd.f32 %v4989_v55, %v2195_v52  ;;  %v2321_v8 = vor.u32 1.1754944e-38, %v2320_v17  ;;  %v2060_v59 = vpop.f32.mrf.mxu0 }
 0x3a5   : > { %v2236_v29 = vadd.f32 %v5001_v16, %v2223_v57  ;;  %v2312_v24 = vmul.f32 %v4163_v22, %v2311_v39  ;;  %v2407_v62 = vpack.c.bf16 %v2400_v34, %v2399_v7  ;;  %v1954_v23 = vadd.f32 %v4981_v0, %v1837_v56 }
 0x3a6   : > { %v5095_v26 = vadd.f32 %v4989_v55, %v2198_v35  ;;  %v1906_v41 = vadd.f32 %v4969_v14, %v1759_v47  ;;  %v2333_v2 = vand.u32 2147483647, %v5078_v1  ;;  %v2335_v50 = vand.u32 2147483648, %v5078_v1 }
 0x3a7   : > { %v4167_v31 = vpop.eup %4166  ;;  %v3867_v3 = vmul.f32 -1.442695, %v2236_v29  ;;  %v2313_v5 = vadd.f32 %v4163_v22, %v2312_v24  ;;  %3877 = vmatmul.msk.bf16.vlgmr.msra.gmra.mxu3 %vm696_vm2, %v2407_v62  ;;  %3888 = vmatmul.msk.bf16.vlgmr.msra.gmra.mxu0 %vm696_vm2, %v2407_v62  ;;  %v2070_v42 = vadd.f32 %v2060_v59, %v1954_v23  ;;  %vm2329_vm6 = vweird.f32 %v5078_v1 }
 0x3a8   : > { %v4169_v36 = vpop.eup %4168  ;;  %v5099_v27 = vadd.f32 1.0, %v4167_v31  ;;  %v2174_v11 = vpop.f32.mrf.mxu2  ;;  %vm2334_vm8 = vcmp.eq.f32.partialorder %v2333_v2, 8.507059e+37  ;;  %v2336_v52 = vor.u32 1.1754944e-38, %v2335_v50 }
 0x3a9   : > { %v4171_v9 = vpop.eup %4170  ;;  %v2325_v45 = vmul.f32 %v4169_v36, %v5078_v1  ;;  %4172 = vpow2.f32 %v3867_v3  ;;  %v2185_v37 = vadd.f32 %v2174_v11, %v2069_v15  ;;  %v2317_v43 = vsel %vm2316_vm3, %v4163_v22, %v2313_v5  ;;  %v2130_v2 = vpop.f32.mrf.mxu1 }
 0x3aa   : > { %4174 = vrcp.f32 %v5099_v27  ;;  %v2322_v7 = vsel %vm2319_vm4, %v2321_v8, %v2317_v43  ;;  %vm2330_vm5 = vweird.f32 %v4169_v36  ;;  %v2022_v22 = vadd.f32 %v5035_v4, %v1906_v41  ;;  %v4054_v8 = vld [vmem:[%s5569_s6 + $0x58] sm:$0xff] }
 0x3ab   : > { %v2224_v13 = vadd.f32 %v4998_v61, %v2185_v37  ;;  %v2326_v33 = vsub.f32 1.0, %v2325_v45  ;;  %4176 = vtanh.f32 %v2208_v20  ;;  %v2401_v19 = vmul.f32 %v4171_v9, %v2322_v7  ;;  %vm2331_vm7 = vmor %vm2329_vm6, %vm2330_vm5  ;;  %2623 = vmatpush.bf16.msrb.mxu1 %v4054_v8  ;;  %v2014_v7 = vpop.f32.mrf.mxu3  ;;  %v5161_v8 = vld [vmem:[%s5574_s11 + $0x1] ss:$0 sm:$0xff] }
 0x3ac   : > { %v2138_v57 = vadd.f32 %v5065_v54, %v2022_v22  ;;  %v2348_v47 = vand.u32 2147483647, %v5099_v27  ;;  %v2350_v56 = vand.u32 2147483648, %v5099_v27  ;;  %vm2344_vm10 = vweird.f32 %v5099_v27 }
 0x3ad   : > { %v2237_v44 = vadd.f32 %v5001_v16, %v2224_v13  ;;  %v2327_v58 = vmul.f32 %v4169_v36, %v2326_v33  ;;  %v1764_v37 = vadd.f32 %v4946_v53, %v4942_v60 }
 0x3ae   : > { %v2197_v54 = vadd.f32 %v4986_v49, %v2138_v57  ;;  %v2351_v11 = vor.u32 1.1754944e-38, %v2350_v56  ;;  %vm2349_vm12 = vcmp.eq.f32.partialorder %v2348_v47, 8.507059e+37 }
 0x3af   : > { %v4173_v51 = vpop.eup %4172  ;;  %v3868_v14 = vmul.f32 -1.442695, %v2237_v44  ;;  %v2328_v0 = vadd.f32 %v4169_v36, %v2327_v58  ;;  %v1908_v13 = vadd.f32 %v4979_v18, %v1764_v37  ;;  %v5168_v37 = vld [vmem:[%s5576_s13 + $0x1] ss:$0 sm:$0xff] }
 0x3b0   : > { %v4175_v39 = vpop.eup %4174  ;;  %v5115_v12 = vadd.f32 1.0, %v4173_v51  ;;  %v2176_v21 = vpop.f32.mrf.mxu2  ;;  %v2210_v20 = vadd.f32 %v4989_v55, %v2197_v54 }
 0x3b1   : > { %v2340_v34 = vmul.f32 %v4175_v39, %v5099_v27  ;;  %4178 = vpow2.f32 %v3868_v14  ;;  %v2186_v4 = vadd.f32 %v2176_v21, %v2070_v42  ;;  %v2332_v63 = vsel %vm2331_vm7, %v4169_v36, %v2328_v0  ;;  %v4177_v17 = vpop.eup %4176 }
 0x3b2   : > { %4180 = vrcp.f32 %v5115_v12  ;;  %v2337_v29 = vsel %vm2334_vm8, %v2336_v52, %v2332_v63  ;;  %vm2345_vm9 = vweird.f32 %v4175_v39  ;;  %v2365_v33 = vand.u32 2147483648, %v5115_v12 }
 0x3b3   : > { %v2341_v35 = vsub.f32 1.0, %v2340_v34  ;;  %v2225_v1 = vadd.f32 %v4998_v61, %v2186_v4  ;;  %v2402_v24 = vmul.f32 %v4177_v17, %v2337_v29  ;;  %4182 = vtanh.f32 %v5047_v10  ;;  %vm2346_vm11 = vmor %vm2344_vm10, %vm2345_vm9 }
 0x3b4   : > { %v2024_v44 = vadd.f32 %v2014_v7, %v1908_v13  ;;  %vm2359_vm14 = vweird.f32 %v5115_v12  ;;  %v2366_v51 = vor.u32 1.1754944e-38, %v2365_v33 }
 0x3b5   : > { %v2238_v62 = vadd.f32 %v5001_v16, %v2225_v1  ;;  %v2408_v15 = vpack.c.bf16 %v2402_v24, %v2401_v19  ;;  %v2342_v31 = vmul.f32 %v4175_v39, %v2341_v35  ;;  %v4052_v16 = vld [vmem:[%s5569_s6 + $0x50] sm:$0xff]  ;;  %v2363_v19 = vand.u32 2147483647, %v5115_v12 }
 0x3b6   : > { %2670 = vmatpush.bf16.msrb.mxu2 %v4052_v16  ;;  %v2140_v22 = vadd.f32 %v2130_v2, %v2024_v44  ;;  %v4055_v16 = vld [vmem:[%s5570_s7 + $0x58] sm:$0xff] }
 0x3b7   : > { %v4179_v3 = vpop.eup %4178  ;;  %v3869_v5 = vmul.f32 -1.442695, %v2238_v62  ;;  %v2343_v36 = vadd.f32 %v4175_v39, %v2342_v31  ;;  %3878 = vmatmul.msk.bf16.gmra.mxu3 %vm696_vm2, %v2408_v15  ;;  %3889 = vmatmul.msk.bf16.gmra.mxu0 %vm696_vm2, %v2408_v15  ;;  %vm2364_vm0 = vcmp.eq.f32.partialorder %v2363_v19, 8.507059e+37 }
 0x3b8   : > { %v4181_v61 = vpop.eup %4180  ;;  %v2277_v10 = vadd.f32 1.0, %v4179_v3  ;;  %v2199_v21 = vadd.f32 %v4986_v49, %v2140_v22  ;;  %2708 = vmatpush.bf16.msrb.mxu3 %v4055_v16  ;;  %v4056_v22 = vld [vmem:[%s5569_s6 + $0x60] sm:$0xff]  ;;  %v5611_v16 = vld [vmem:[#allocation8_spill] sm:$0xff] }
 0x3b9   : > { %v2355_v27 = vmul.f32 %v4181_v61, %v5115_v12  ;;  %4184 = vpow2.f32 %v3869_v5  ;;  %v2347_v9 = vsel %vm2346_vm11, %v4175_v39, %v2343_v36  ;;  %v4183_v45 = vpop.eup %4182  ;;  %vm2360_vm13 = vweird.f32 %v4181_v61  ;;  %2805 = vmatpush.bf16.msra.mxu1 %v4056_v22  ;;  %v5614_v22 = vld [vmem:[#allocation5_spill] sm:$0xff] }
 0x3ba   : > { %4186 = vrcp.f32 %v2277_v10  ;;  %v2352_v43 = vsel %vm2349_vm12, %v2351_v11, %v2347_v9  ;;  %vm2361_vm15 = vmor %vm2359_vm14, %vm2360_vm13  ;;  %v2380_v52 = vand.u32 2147483648, %v2277_v10  ;;  %v2378_v4 = vand.u32 2147483647, %v2277_v10  ;;  %v4057_v11 = vld [vmem:[%s5570_s7 + $0x60] sm:$0xff] }
 0x3bb   : > { %v2356_v41 = vsub.f32 1.0, %v2355_v27  ;;  %v2403_v23 = vmul.f32 %v4183_v45, %v2352_v43  ;;  %4188 = vtanh.f32 %v2210_v20  ;;  %vm2374_vm4 = vweird.f32 %v2277_v10  ;;  %2851 = vmatpush.bf16.msra.mxu2 %v4057_v11 }
 0x3bc   : > { %v2212_v29 = vadd.f32 %v4989_v55, %v2199_v21  ;;  %v2381_v35 = vor.u32 1.1754944e-38, %v2380_v52  ;;  %vm2379_vm6 = vcmp.eq.f32.partialorder %v2378_v4, 8.507059e+37 }
 0x3bd   : > { %v2357_v50 = vmul.f32 %v4181_v61, %v2356_v41 }
 0x3bf   : > { %v4185_v58 = vpop.eup %4184  ;;  %v2358_v60 = vadd.f32 %v4181_v61, %v2357_v50  ;;  %v2565_v50 = vld [vmem:[#allocation2] sm:$0xff] }
 0x3c0   : > { %v4187_v53 = vpop.eup %4186  ;;  %v2278_v59 = vadd.f32 1.0, %v4185_v58 }
 0x3c1   : > { %v2370_v14 = vmul.f32 %v4187_v53, %v2277_v10  ;;  %v2362_v18 = vsel %vm2361_vm15, %v4181_v61, %v2358_v60  ;;  %v4189_v42 = vpop.eup %4188  ;;  %vm2375_vm3 = vweird.f32 %v4187_v53  ;;  %v4053_v10 = vld [vmem:[%s5570_s7 + $0x50] sm:$0xff] }
 0x3c2   : > { %4190 = vrcp.f32 %v2278_v59  ;;  %v2367_v0 = vsel %vm2364_vm0, %v2366_v51, %v2362_v18  ;;  %vm2376_vm5 = vmor %vm2374_vm4, %vm2375_vm3  ;;  %v2395_v56 = vand.u32 2147483648, %v2278_v59  ;;  %v2393_v15 = vand.u32 2147483647, %v2278_v59  ;;  %2743 = vmatpush.bf16.msrb.mxu0 %v4053_v10 }
 0x3c3   : > { %v2371_v39 = vsub.f32 1.0, %v2370_v14  ;;  %v2404_v57 = vmul.f32 %v4189_v42, %v2367_v0  ;;  %4192 = vtanh.f32 %v5095_v26  ;;  %vm2389_vm8 = vweird.f32 %v2278_v59 }
 0x3c4   : > { %4194 = vtanh.f32 %v2212_v29  ;;  %v2396_v55 = vor.u32 1.1754944e-38, %v2395_v56  ;;  %vm2394_vm10 = vcmp.eq.f32.partialorder %v2393_v15, 8.507059e+37 }
 0x3c5   : > { %v2409_v34 = vpack.c.bf16 %v2404_v57, %v2403_v23  ;;  %v2372_v12 = vmul.f32 %v4187_v53, %v2371_v39  ;;  %v2411_v23 = vld [vmem:[#allocation3] sm:$0xff] }
 0x3c7   : > { %v2373_v63 = vadd.f32 %v4187_v53, %v2372_v12  ;;  %3879 = vmatmul.msk.bf16.gmra.mxu3 %vm696_vm2, %v2409_v34  ;;  %3890 = vmatmul.msk.bf16.gmra.mxu0 %vm696_vm2, %v2409_v34  ;;  %v2413_v34 = vld [vmem:[#allocation3 + $0x10] sm:$0xff] }
 0x3c8   : > { %v4191_v17 = vpop.eup %4190 }
 0x3c9   : > { %v2385_v1 = vmul.f32 %v4191_v17, %v2278_v59  ;;  %v2377_v26 = vsel %vm2376_vm5, %v4187_v53, %v2373_v63  ;;  %v4193_v49 = vpop.eup %4192  ;;  %vm2390_vm7 = vweird.f32 %v4191_v17  ;;  %v2412_v59 = vld [vmem:[#allocation3 + $0x8] sm:$0xff] }
 0x3ca   : > { %v2382_v24 = vsel %vm2379_vm6, %v2381_v35, %v2377_v26  ;;  %vm2391_vm9 = vmor %vm2389_vm8, %vm2390_vm7  ;;  %v4195_v5 = vpop.eup %4194 }
 0x3cb   : > { %v2386_v54 = vsub.f32 1.0, %v2385_v1  ;;  %v2405_v47 = vmul.f32 %v4193_v49, %v2382_v24  ;;  %v2414_v24 = vld [vmem:[#allocation3 + $0x18] sm:$0xff] }
 0x3cd   : > { %v2387_v62 = vmul.f32 %v4191_v17, %v2386_v54 }
 0x3cf   : > { %v2388_v31 = vadd.f32 %v4191_v17, %v2387_v62  ;;  %v5610_v62 = vld [vmem:[#allocation4_spill] sm:$0xff] }
 0x3d1   : > { %v2392_v3 = vsel %vm2391_vm9, %v4191_v17, %v2388_v31 }
 0x3d2   : > { %v2397_v36 = vsel %vm2394_vm10, %v2396_v55, %v2392_v3 }
 0x3d3   : > { %v2406_v61 = vmul.f32 %v4195_v5, %v2397_v36 }
 0x3d5   : > { %v2410_v20 = vpack.c.bf16 %v2406_v61, %v2405_v47  ;;  %v2415_v61 = vld [vmem:[#allocation3 + $0x20] sm:$0xff] }
 0x3d7   : > { %3880 = vmatmul.msk.bf16.gmra.mxu3 %vm696_vm2, %v2410_v20  ;;  %3891 = vmatmul.msk.bf16.gmra.mxu0 %vm696_vm2, %v2410_v20 }
 0x424   : > { %v2513_v27 = vpop.f32.mrf.mxu0 }
 0x425   : > { %v2514_v9 = vadd.f32 %v5161_v8, %v2513_v27 }
 0x427   : > { %v2541_v45 = vadd.f32 %v2514_v9, %v4876_v48  ;;  %v5612_v9 = vld [vmem:[#allocation6_spill] sm:$0xff] }
 0x429   : > { %v2549_v43 = vmul.f32 %v2541_v45, %v4433_v28 }
 0x42a   : > { %v2454_v7 = vpop.f32.mrf.mxu3 }
 0x42b   : > { %2557 = vst.msk [vmem:[#allocation2 + $0x8] sm:$0xff] %vm696_vm2, %v2549_v43  ;;  %v2455_v41 = vadd.f32 %v5168_v37, %v2454_v7 }
 0x42c   : > { %v2515_v13 = vpop.f32.mrf.mxu0 }
 0x42d   : > { %v2474_v33 = vadd.f32 %v2455_v41, %v2411_v23  ;;  %v2516_v2 = vadd.f32 %v5161_v8, %v2515_v13 }
 0x42f   : > { %2482 = vst.msk [vmem:[#allocation3] sm:$0xff] %vm696_vm2, %v2474_v33  ;;  %v2542_v48 = vadd.f32 %v2516_v2, %v4874_v6  ;;  %v2416_v33 = vld [vmem:[#allocation3 + $0x28] sm:$0xff] }
 0x431   : > { %v2550_v19 = vmul.f32 %v2542_v48, %v4443_v32 }
 0x432   : > { %v2456_v44 = vpop.f32.mrf.mxu3  ;;  %v5177_v58 = vld [vmem:[#allocation2 + $0x8] sm:$0xff] }
 0x433   : > { %2558 = vst.msk [vmem:[#allocation2 + $0x10] sm:$0xff] %vm696_vm2, %v2550_v19  ;;  %v2457_v60 = vadd.f32 %v5168_v37, %v2456_v44  ;;  %v2573_v53 = vpack.c.bf16 %v5177_v58, %v2565_v50  ;;  %v2583_v39 = vld [vmem:[#allocation2 + $0x4] sm:$0xff]  ;;  %v4061_v19 = vld [vmem:[%s5570_s7 + $0x70] sm:$0xff] }
 0x434   : > { %v2518_v51 = vpop.f32.mrf.mxu0  ;;  %v4058_v44 = vld [vmem:[%s5569_s6 + $0x68] sm:$0xff] }
 0x435   : > { %v2475_v14 = vadd.f32 %v2457_v60, %v2412_v59  ;;  %v2519_v6 = vadd.f32 %v5161_v8, %v2518_v51  ;;  %3910 = vmatmul.msk.bf16.vlgmr.msrb.gmra.mxu2 %vm696_vm2, %v2573_v53  ;;  %3928 = vmatmul.msk.bf16.vlgmr.msrb.gmra.mxu0 %vm696_vm2, %v2573_v53  ;;  %v5613_v60 = vld [vmem:[#allocation9_spill] sm:$0xff] }
 0x436   : > { %3083 = vmatpush.bf16.msrb.mxu2 %v4061_v19  ;;  %2921 = vmatpush.bf16.msra.mxu3 %v4058_v44  ;;  %v3004_v44 = vld [vmem:[#allocation2 + $0x48] sm:$0xff] }
 0x437   : > { %2483 = vst.msk [vmem:[#allocation3 + $0x8] sm:$0xff] %vm696_vm2, %v2475_v14  ;;  %v2543_v18 = vadd.f32 %v2519_v6, %v4886_v46 }
 0x439   : > { %v2551_v42 = vmul.f32 %v2543_v18, %v4438_v30 }
 0x43a   : > { %v2459_v0 = vpop.f32.mrf.mxu3  ;;  %v5191_v57 = vld [vmem:[#allocation2 + $0xc] sm:$0xff] }
 0x43b   : > { %2559 = vst.msk [vmem:[#allocation2 + $0x18] sm:$0xff] %vm696_vm2, %v2551_v42  ;;  %v2460_v21 = vadd.f32 %v5168_v37, %v2459_v0  ;;  %v2591_v52 = vpack.c.bf16 %v5191_v57, %v2583_v39  ;;  %v5202_v35 = vld [vmem:[#allocation2 + $0x10] sm:$0xff]  ;;  %v2417_v0 = vld [vmem:[#allocation3 + $0x30] sm:$0xff] }
 0x43c   : > { %v2520_v12 = vpop.f32.mrf.mxu0 }
 0x43d   : > { %v2476_v4 = vadd.f32 %v2460_v21, %v2413_v34  ;;  %v2521_v63 = vadd.f32 %v5161_v8, %v2520_v12  ;;  %3902 = vmatmul.msk.bf16.vlgmr.msrb.gmra.mxu1 %vm696_vm2, %v2591_v52  ;;  %3920 = vmatmul.msk.bf16.vlgmr.msrb.gmra.mxu3 %vm696_vm2, %v2591_v52  ;;  %v2540_v34 = vld [vmem:[#allocation2 + $0x40] sm:$0xff] }
 0x43f   : > { %2484 = vst.msk [vmem:[#allocation3 + $0x10] sm:$0xff] %vm696_vm2, %v2476_v4  ;;  %v2544_v46 = vadd.f32 %v2521_v63, %v4884_v38  ;;  %v5615_v4 = vld [vmem:[#allocation7_spill] sm:$0xff] }
 0x441   : > { %v2552_v17 = vmul.f32 %v2544_v46, %v4451_v40 }
 0x442   : > { %v2461_v29 = vpop.f32.mrf.mxu3  ;;  %v5204_v1 = vld [vmem:[#allocation2 + $0x18] sm:$0xff] }
 0x443   : > { %2560 = vst.msk [vmem:[#allocation2 + $0x20] sm:$0xff] %vm696_vm2, %v2552_v17  ;;  %v2462_v26 = vadd.f32 %v5168_v37, %v2461_v29  ;;  %v5210_v49 = vpack.c.bf16 %v5204_v1, %v5202_v35  ;;  %v5220_v55 = vld [vmem:[#allocation2 + $0x14] sm:$0xff] }
 0x444   : > { %v2523_v54 = vpop.f32.mrf.mxu0 }
 0x445   : > { %v2477_v47 = vadd.f32 %v2462_v26, %v2414_v24  ;;  %v2524_v38 = vadd.f32 %v5161_v8, %v2523_v54  ;;  %3911 = vmatmul.msk.bf16.gmra.mxu2 %vm696_vm2, %v5210_v49  ;;  %3929 = vmatmul.msk.bf16.gmra.mxu0 %vm696_vm2, %v5210_v49  ;;  %v2418_v54 = vld [vmem:[#allocation3 + $0x38] sm:$0xff] }
 0x447   : > { %2485 = vst.msk [vmem:[#allocation3 + $0x18] sm:$0xff] %vm696_vm2, %v2477_v47  ;;  %v2545_v56 = vadd.f32 %v2524_v38, %v4896_v25  ;;  %v4059_v25 = vld [vmem:[%s5570_s7 + $0x68] sm:$0xff] }
 0x448   : > { %2967 = vmatpush.bf16.msra.mxu0 %v4059_v25 }
 0x449   : > { %v2553_v15 = vmul.f32 %v2545_v56, %v5610_v62 }
 0x44a   : > { %v2464_v31 = vpop.f32.mrf.mxu3  ;;  %v5222_v3 = vld [vmem:[#allocation2 + $0x1c] sm:$0xff] }
 0x44b   : > { %2561 = vst.msk [vmem:[#allocation2 + $0x28] sm:$0xff] %vm696_vm2, %v2553_v15  ;;  %v2465_v5 = vadd.f32 %v5168_v37, %v2464_v31  ;;  %v2592_v36 = vpack.c.bf16 %v5222_v3, %v5220_v55  ;;  %v2569_v7 = vld [vmem:[#allocation2 + $0x20] sm:$0xff]  ;;  %v2773_v15 = vpack.c.bf16 %v5202_v35, %v5177_v58  ;;  %v2889_v31 = vpack.c.bf16 %v5220_v55, %v5191_v57 }
 0x44c   : > { %v2525_v20 = vpop.f32.mrf.mxu0 }
 0x44d   : > { %v2478_v10 = vadd.f32 %v2465_v5, %v2415_v61  ;;  %v2526_v11 = vadd.f32 %v5161_v8, %v2525_v20  ;;  %3903 = vmatmul.msk.bf16.gmra.mxu1 %vm696_vm2, %v2592_v36  ;;  %3921 = vmatmul.msk.bf16.gmra.mxu3 %vm696_vm2, %v2592_v36  ;;  %v2774_v5 = vpack.c.bf16 %v2569_v7, %v5204_v1 }
 0x44f   : > { %2486 = vst.msk [vmem:[#allocation3 + $0x20] sm:$0xff] %vm696_vm2, %v2478_v10  ;;  %v2546_v27 = vadd.f32 %v2526_v11, %v5611_v16 }
 0x451   : > { %v2554_v45 = vmul.f32 %v2546_v27, %v5612_v9 }
 0x452   : > { %v2466_v43 = vpop.f32.mrf.mxu3  ;;  %v5237_v41 = vld [vmem:[#allocation2 + $0x28] sm:$0xff] }
 0x453   : > { %2562 = vst.msk [vmem:[#allocation2 + $0x30] sm:$0xff] %vm696_vm2, %v2554_v45  ;;  %v2467_v23 = vadd.f32 %v5168_v37, %v2466_v43  ;;  %v5242_v13 = vpack.c.bf16 %v5237_v41, %v2569_v7  ;;  %v2587_v14 = vld [vmem:[#allocation2 + $0x24] sm:$0xff] }
 0x454   : > { %v2528_v2 = vpop.f32.mrf.mxu0  ;;  %v2890_v36 = vpack.c.bf16 %v2587_v14, %v5222_v3 }
 0x455   : > { %v2479_v48 = vadd.f32 %v2467_v23, %v2416_v33  ;;  %v2529_v50 = vadd.f32 %v5161_v8, %v2528_v2  ;;  %3912 = vmatmul.msk.bf16.gmra.mxu2 %vm696_vm2, %v5242_v13  ;;  %3930 = vmatmul.msk.bf16.gmra.mxu0 %vm696_vm2, %v5242_v13 }
 0x457   : > { %2487 = vst.msk [vmem:[#allocation3 + $0x28] sm:$0xff] %vm696_vm2, %v2479_v48  ;;  %v2547_v53 = vadd.f32 %v2529_v50, %v5613_v60 }
 0x459   : > { %v2555_v59 = vmul.f32 %v2547_v53, %v5614_v22 }
 0x45a   : > { %v2469_v51 = vpop.f32.mrf.mxu3  ;;  %v2588_v6 = vld [vmem:[#allocation2 + $0x2c] sm:$0xff] }
 0x45b   : > { %2563 = vst.msk [vmem:[#allocation2 + $0x38] sm:$0xff] %vm696_vm2, %v2555_v59  ;;  %v2470_v18 = vadd.f32 %v5168_v37, %v2469_v51  ;;  %v2593_v42 = vpack.c.bf16 %v2588_v6, %v2587_v14  ;;  %v2571_v17 = vld [vmem:[#allocation2 + $0x30] sm:$0xff] }
 0x45c   : > { %v2530_v39 = vpop.f32.mrf.mxu0  ;;  %v2775_v58 = vpack.c.bf16 %v2571_v17, %v5237_v41 }
 0x45d   : > { %v2480_v21 = vadd.f32 %v2470_v18, %v2417_v0  ;;  %v2531_v52 = vadd.f32 %v5161_v8, %v2530_v39  ;;  %3904 = vmatmul.msk.bf16.gmra.mxu1 %vm696_vm2, %v2593_v42  ;;  %3922 = vmatmul.msk.bf16.gmra.mxu3 %vm696_vm2, %v2593_v42 }
 0x45f   : > { %2488 = vst.msk [vmem:[#allocation3 + $0x30] sm:$0xff] %vm696_vm2, %v2480_v21  ;;  %v2548_v12 = vadd.f32 %v2540_v34, %v2531_v52 }
 0x461   : > { %v2556_v63 = vmul.f32 %v2548_v12, %v5615_v4 }
 0x462   : > { %v2471_v46 = vpop.f32.mrf.mxu3  ;;  %v2572_v29 = vld [vmem:[#allocation2 + $0x38] sm:$0xff] }
 0x463   : > { %2564 = vst.msk [vmem:[#allocation2 + $0x40] sm:$0xff] %vm696_vm2, %v2556_v63  ;;  %v2472_v26 = vadd.f32 %v5168_v37, %v2471_v46  ;;  %v2576_v24 = vpack.c.bf16 %v2572_v29, %v2571_v17  ;;  %v2589_v47 = vld [vmem:[#allocation2 + $0x34] sm:$0xff] }
 0x464   : > { %v4060_v37 = vld [vmem:[%s5569_s6 + $0x70] sm:$0xff]  ;;  %v2891_v57 = vpack.c.bf16 %v2589_v47, %v2588_v6 }
 0x465   : > { %v2481_v8 = vadd.f32 %v2472_v26, %v2418_v54  ;;  %3913 = vmatmul.msk.bf16.gmra.mxu2 %vm696_vm2, %v2576_v24  ;;  %3931 = vmatmul.msk.bf16.gmra.mxu0 %vm696_vm2, %v2576_v24 }
 0x466   : > { %3037 = vmatpush.bf16.msrb.mxu1 %v4060_v37 }
 0x467   : > { %2489 = vst.msk [vmem:[#allocation3 + $0x38] sm:$0xff] %vm696_vm2, %v2481_v8 }
 0x46a   : > { %v2590_v38 = vld [vmem:[#allocation2 + $0x3c] sm:$0xff]  ;;  %v2888_v1 = vld [vmem:[#allocation2 + $0x44] sm:$0xff] }
 0x46b   : > { %v2594_v56 = vpack.c.bf16 %v2590_v38, %v2589_v47  ;;  %v2772_v35 = vld [vmem:[#allocation2 + $0x40] sm:$0xff]  ;;  %v2892_v3 = vpack.c.bf16 %v2888_v1, %v2590_v38  ;;  %v4062_v38 = vld [vmem:[%s5575_s12 + $0x10] sm:$0xff] }
 0x46c   : > { %v2776_v55 = vpack.c.bf16 %v2772_v35, %v2572_v29  ;;  %v3008_v51 = vpack.c.bf16 %v3004_v44, %v2772_v35  ;;  %3378 = vmatpush.bf16.msrb.mxu3 %v4062_v38 }
 0x46d   : > { %3905 = vmatmul.msk.bf16.gmra.mxu1 %vm696_vm2, %v2594_v56  ;;  %3923 = vmatmul.msk.bf16.gmra.mxu3 %vm696_vm2, %v2594_v56 }
 0x475   : > { %3948 = vmatmul.msk.bf16.vlgmr.msra.gmra.mxu2 %vm696_vm2, %v2773_v15  ;;  %3968 = vmatmul.msk.bf16.vlgmr.msra.gmra.mxu0 %vm696_vm2, %v2889_v31 }
 0x47d   : > { %3938 = vmatmul.msk.bf16.vlgmr.msra.gmra.mxu1 %vm696_vm2, %v2773_v15  ;;  %3958 = vmatmul.msk.bf16.vlgmr.msra.gmra.mxu3 %vm696_vm2, %v2889_v31 }
 0x485   : > { %3949 = vmatmul.msk.bf16.gmra.mxu2 %vm696_vm2, %v2774_v5  ;;  %3969 = vmatmul.msk.bf16.gmra.mxu0 %vm696_vm2, %v2890_v36 }
 0x48d   : > { %3939 = vmatmul.msk.bf16.gmra.mxu1 %vm696_vm2, %v2774_v5  ;;  %3959 = vmatmul.msk.bf16.gmra.mxu3 %vm696_vm2, %v2890_v36 }
 0x495   : > { %3950 = vmatmul.msk.bf16.gmra.mxu2 %vm696_vm2, %v2775_v58  ;;  %3970 = vmatmul.msk.bf16.gmra.mxu0 %vm696_vm2, %v2891_v57 }
 0x49d   : > { %3940 = vmatmul.msk.bf16.gmra.mxu1 %vm696_vm2, %v2775_v58  ;;  %3960 = vmatmul.msk.bf16.gmra.mxu3 %vm696_vm2, %v2891_v57 }
 0x4a5   : > { %3951 = vmatmul.msk.bf16.gmra.mxu2 %vm696_vm2, %v2776_v55  ;;  %3971 = vmatmul.msk.bf16.gmra.mxu0 %vm696_vm2, %v2892_v3 }
 0x4ad   : > { %3941 = vmatmul.msk.bf16.gmra.mxu1 %vm696_vm2, %v2776_v55  ;;  %3961 = vmatmul.msk.bf16.gmra.mxu3 %vm696_vm2, %v2892_v3 }
 0x4b5   : > { %3988 = vmatmul.msk.bf16.vlgmr.msrb.gmra.mxu2 %vm696_vm2, %v5210_v49 }
 0x4b8   : > { %v2672_v61 = vpop.f32.mrf.mxu2 }
 0x4ba   : > { %v2625_v20 = vpop.f32.mrf.mxu1 }
 0x4bb   : > { %v2673_v10 = vadd.f32 %v2672_v61, %v2625_v20 }
 0x4bd   : > { %3978 = vmatmul.msk.bf16.vlgmr.msrb.gmra.mxu1 %vm696_vm2, %v5210_v49  ;;  %v2745_v49 = vpop.f32.mrf.mxu0 }
 0x4c0   : > { %v2674_v11 = vpop.f32.mrf.mxu2  ;;  %v2710_v33 = vpop.f32.mrf.mxu3 }
 0x4c1   : > { %v2746_v63 = vadd.f32 %v2745_v49, %v2710_v33 }
 0x4c2   : > { %v2627_v25 = vpop.f32.mrf.mxu1 }
 0x4c3   : > { %v5302_v16 = vadd.f32 %v2674_v11, %v2627_v25 }
 0x4c5   : > { %3989 = vmatmul.msk.bf16.gmra.mxu2 %vm696_vm2, %v5242_v13  ;;  %v5312_v60 = vpop.f32.mrf.mxu0 }
 0x4c8   : > { %v2677_v27 = vpop.f32.mrf.mxu2  ;;  %v2712_v53 = vpop.f32.mrf.mxu3 }
 0x4ca   : > { %v2630_v45 = vpop.f32.mrf.mxu1 }
 0x4cb   : > { %v2678_v43 = vadd.f32 %v2677_v27, %v2630_v45 }
 0x4cd   : > { %3979 = vmatmul.msk.bf16.gmra.mxu1 %vm696_vm2, %v5242_v13  ;;  %v2750_v18 = vpop.f32.mrf.mxu0 }
 0x4d0   : > { %v2679_v7 = vpop.f32.mrf.mxu2  ;;  %v2715_v42 = vpop.f32.mrf.mxu3 }
 0x4d1   : > { %v2751_v56 = vadd.f32 %v2750_v18, %v2715_v42  ;;  %v5363_v42 = vld [vmem:[%s4375_s20 + $0x2] ss:$0 sm:$0xff] }
 0x4d2   : > { %v2632_v41 = vpop.f32.mrf.mxu1 }
 0x4d3   : > { %v5308_v23 = vadd.f32 %v2679_v7, %v2632_v41 }
 0x4d5   : > { %3990 = vmatmul.msk.bf16.gmra.mxu2 %vm696_vm2, %v2576_v24  ;;  %v5320_v34 = vpop.f32.mrf.mxu0 }
 0x4d8   : > { %v2682_v2 = vpop.f32.mrf.mxu2  ;;  %v5322_v12 = vpop.f32.mrf.mxu3 }
 0x4da   : > { %v2635_v48 = vpop.f32.mrf.mxu1 }
 0x4db   : > { %v2683_v50 = vadd.f32 %v2682_v2, %v2635_v48 }
 0x4dd   : > { %3980 = vmatmul.msk.bf16.gmra.mxu1 %vm696_vm2, %v2576_v24  ;;  %v2755_v24 = vpop.f32.mrf.mxu0 }
 0x4e0   : > { %v2684_v19 = vpop.f32.mrf.mxu2  ;;  %v2720_v54 = vpop.f32.mrf.mxu3 }
 0x4e1   : > { %v2756_v3 = vadd.f32 %v2755_v24, %v2720_v54 }
 0x4e2   : > { %v2637_v59 = vpop.f32.mrf.mxu1 }
 0x4e3   : > { %v5314_v13 = vadd.f32 %v2684_v19, %v2637_v59 }
 0x4e5   : > { %3991 = vmatmul.msk.bf16.gmra.mxu2 %vm696_vm2, %v3008_v51  ;;  %v5327_v15 = vpop.f32.mrf.mxu0 }
 0x4e8   : > { %v2687_v14 = vpop.f32.mrf.mxu2  ;;  %v5329_v31 = vpop.f32.mrf.mxu3 }
 0x4ea   : > { %v2640_v6 = vpop.f32.mrf.mxu1 }
 0x4eb   : > { %v2688_v0 = vadd.f32 %v2687_v14, %v2640_v6  ;;  %v5360_v6 = vld [vmem:[%s5572_s9 + $0x2] ss:$0 sm:$0xff] }
 0x4ed   : > { %3981 = vmatmul.msk.bf16.gmra.mxu1 %vm696_vm2, %v3008_v51  ;;  %v2760_v1 = vpop.f32.mrf.mxu0 }
 0x4f0   : > { %v2689_v39 = vpop.f32.mrf.mxu2  ;;  %v2725_v55 = vpop.f32.mrf.mxu3 }
 0x4f1   : > { %v2761_v7 = vadd.f32 %v2760_v1, %v2725_v55 }
 0x4f2   : > { %v2642_v21 = vpop.f32.mrf.mxu1 }
 0x4f3   : > { %v5318_v52 = vadd.f32 %v2689_v39, %v2642_v21  ;;  %v2748_v39 = vadd.f32 %v5312_v60, %v2712_v53 }
 0x4f5   : > { %v5341_v25 = vpop.f32.mrf.mxu0 }
 0x4f8   : > { %v2853_v46 = vpop.f32.mrf.mxu2  ;;  %v5343_v27 = vpop.f32.mrf.mxu3 }
 0x4f9   : > { %v2873_v17 = vadd.f32 %v2853_v46, %v2746_v63  ;;  %v5369_v63 = vld [vmem:[%s5571_s8 + $0x2] ss:$0 sm:$0xff] }
 0x4fa   : > { %v2807_v29 = vpop.f32.mrf.mxu1 }
 0x4fb   : > { %v2827_v26 = vadd.f32 %v2807_v29, %v2673_v10  ;;  %v5372_v29 = vld [vmem:[%s4370_s17 + $0x2] ss:$0 sm:$0xff] }
 0x4fd   : > { %v2969_v41 = vpop.f32.mrf.mxu0 }
 0x4fe   : > { %v2989_v14 = vadd.f32 %v2969_v41, %v2873_v17 }
 0x500   : > { %v2855_v8 = vpop.f32.mrf.mxu2  ;;  %v2923_v49 = vpop.f32.mrf.mxu3 }
 0x501   : > { %v2943_v21 = vadd.f32 %v2923_v49, %v2827_v26  ;;  %v2874_v17 = vadd.f32 %v2855_v8, %v2748_v39  ;;  %v2753_v39 = vadd.f32 %v5320_v34, %v5322_v12 }
 0x502   : > { %v2809_v47 = vpop.f32.mrf.mxu1 }
 0x503   : > { %v2828_v53 = vadd.f32 %v2809_v47, %v5302_v16 }
 0x505   : > { %v2971_v44 = vpop.f32.mrf.mxu0 }
 0x506   : > { %v2990_v1 = vadd.f32 %v2971_v44, %v2874_v17 }
 0x508   : > { %v2858_v37 = vpop.f32.mrf.mxu2  ;;  %v2925_v59 = vpop.f32.mrf.mxu3 }
 0x509   : > { %v2875_v5 = vadd.f32 %v2858_v37, %v2751_v56 }
 0x50a   : > { %v2812_v36 = vpop.f32.mrf.mxu1 }
 0x50b   : > { %v5331_v58 = vadd.f32 %v2812_v36, %v2678_v43 }
 0x50d   : > { %v2974_v24 = vpop.f32.mrf.mxu0 }
 0x50e   : > { %v2991_v44 = vadd.f32 %v2974_v24, %v2875_v5 }
 0x510   : > { %v5333_v57 = vpop.f32.mrf.mxu2  ;;  %v2928_v54 = vpop.f32.mrf.mxu3 }
 0x511   : > { %v2876_v17 = vadd.f32 %v5333_v57, %v2753_v39 }
 0x512   : > { %v5335_v35 = vpop.f32.mrf.mxu1 }
 0x515   : > { %v2976_v41 = vpop.f32.mrf.mxu0 }
 0x518   : > { %v2863_v61 = vpop.f32.mrf.mxu2  ;;  %v2930_v49 = vpop.f32.mrf.mxu3 }
 0x519   : > { %v5337_v20 = vadd.f32 %v2863_v61, %v2756_v3  ;;  %v2944_v3 = vadd.f32 %v2925_v59, %v2828_v53  ;;  %v2992_v53 = vadd.f32 %v2976_v41, %v2876_v17 }
 0x51a   : > { %v2817_v10 = vpop.f32.mrf.mxu1 }
 0x51b   : > { %v5339_v11 = vadd.f32 %v2817_v10, %v2683_v50 }
 0x51d   : > { %v2979_v34 = vpop.f32.mrf.mxu0 }
 0x51e   : > { %v2993_v17 = vadd.f32 %v2979_v34, %v5337_v20 }
 0x520   : > { %v5345_v45 = vpop.f32.mrf.mxu2  ;;  %v2933_v12 = vpop.f32.mrf.mxu3 }
 0x522   : > { %v5347_v43 = vpop.f32.mrf.mxu1 }
 0x528   : > { %v2868_v33 = vpop.f32.mrf.mxu2 }
 0x529   : > { %v5349_v2 = vadd.f32 %v2868_v33, %v2761_v7 }
 0x52a   : > { %v2822_v48 = vpop.f32.mrf.mxu1 }
 0x52b   : > { %v5351_v19 = vadd.f32 %v2822_v48, %v2688_v0 }
 0x530   : > { %v5353_v50 = vpop.f32.mrf.mxu2 }
 0x532   : > { %v5355_v51 = vpop.f32.mrf.mxu1 }
 0x538   : > { %v3085_v18 = vpop.f32.mrf.mxu2 }
 0x539   : > { %v3105_v0 = vadd.f32 %v3085_v18, %v2989_v14 }
 0x53a   : > { %v3039_v46 = vpop.f32.mrf.mxu1 }
 0x53b   : > { %v3144_v38 = vadd.f32 %v5360_v6, %v3105_v0  ;;  %v3059_v56 = vadd.f32 %v3039_v46, %v2943_v21  ;;  %v2945_v21 = vadd.f32 %v2928_v54, %v5331_v58 }
 0x53d   : > { %v3157_v37 = vadd.f32 %v5363_v42, %v3144_v38  ;;  %v3118_v60 = vadd.f32 %v5369_v63, %v3059_v56 }
 0x53f   : > { %v3996_v26 = vmul.f32 -1.442695, %v3157_v37  ;;  %v3131_v36 = vadd.f32 %v5372_v29, %v3118_v60  ;;  %v2830_v60 = vadd.f32 %v5335_v35, %v5308_v23 }
 0x540   : > { %v3087_v55 = vpop.f32.mrf.mxu2 }
 0x541   : > { %4196 = vpow2.f32 %v3996_v26  ;;  %v3106_v61 = vadd.f32 %v3087_v55, %v2990_v1  ;;  %v2946_v55 = vadd.f32 %v2930_v49, %v2830_v60  ;;  %v2758_v49 = vadd.f32 %v5327_v15, %v5329_v31 }
 0x542   : > { %v3041_v8 = vpop.f32.mrf.mxu1 }
 0x543   : > { %v3145_v10 = vadd.f32 %v5360_v6, %v3106_v61  ;;  %v3060_v7 = vadd.f32 %v3041_v8, %v2944_v3  ;;  %v2878_v60 = vadd.f32 %v5345_v45, %v2758_v49 }
 0x545   : > { %v3158_v33 = vadd.f32 %v5363_v42, %v3145_v10  ;;  %v3119_v48 = vadd.f32 %v5369_v63, %v3060_v7 }
 0x547   : > { %v4197_v14 = vpop.eup %4196  ;;  %v3997_v16 = vmul.f32 -1.442695, %v3158_v33  ;;  %v5383_v47 = vadd.f32 %v5372_v29, %v3119_v48 }
 0x548   : > { %v3197_v18 = vadd.f32 1.0, %v4197_v14  ;;  %v3090_v59 = vpop.f32.mrf.mxu2 }
 0x549   : > { %4198 = vpow2.f32 %v3997_v16  ;;  %v3107_v0 = vadd.f32 %v3090_v59, %v2991_v44 }
 0x54a   : > { %4200 = vrcp.f32 %v3197_v18  ;;  %v3044_v46 = vpop.f32.mrf.mxu1  ;;  %v3214_v7 = vand.u32 2147483647, %v3197_v18  ;;  %v3216_v33 = vand.u32 2147483648, %v3197_v18  ;;  %vm3210_vm12 = vweird.f32 %v3197_v18 }
 0x54b   : > { %v3146_v38 = vadd.f32 %v5360_v6, %v3107_v0  ;;  %v3061_v56 = vadd.f32 %v3044_v46, %v2945_v21 }
 0x54c   : > { %v3217_v0 = vor.u32 1.1754944e-38, %v3216_v33  ;;  %vm3215_vm14 = vcmp.eq.f32.partialorder %v3214_v7, 8.507059e+37 }
 0x54d   : > { %v3159_v37 = vadd.f32 %v5363_v42, %v3146_v38  ;;  %v3120_v5 = vadd.f32 %v5369_v63, %v3061_v56  ;;  %v2981_v56 = vpop.f32.mrf.mxu0 }
 0x54f   : > { %v4199_v24 = vpop.eup %4198  ;;  %v3998_v58 = vmul.f32 -1.442695, %v3159_v37  ;;  %v5395_v54 = vadd.f32 %v5372_v29, %v3120_v5  ;;  %v2935_v37 = vpop.f32.mrf.mxu3 }
 0x550   : > { %v4201_v26 = vpop.eup %4200  ;;  %v5397_v57 = vadd.f32 1.0, %v4199_v24  ;;  %v3092_v1 = vpop.f32.mrf.mxu2 }
 0x551   : > { %v3206_v3 = vmul.f32 %v4201_v26, %v3197_v18  ;;  %4202 = vpow2.f32 %v3998_v58  ;;  %v3108_v61 = vadd.f32 %v3092_v1, %v2992_v53  ;;  %vm3211_vm11 = vweird.f32 %v4201_v26 }
 0x552   : > { %4204 = vrcp.f32 %v5397_v57  ;;  %v3046_v8 = vpop.f32.mrf.mxu1  ;;  %vm3212_vm13 = vmor %vm3210_vm12, %vm3211_vm11  ;;  %v3231_v20 = vand.u32 2147483648, %v5397_v57  ;;  %v3229_v1 = vand.u32 2147483647, %v5397_v57  ;;  %vm3225_vm0 = vweird.f32 %v5397_v57 }
 0x553   : > { %v3207_v10 = vsub.f32 1.0, %v3206_v3  ;;  %v3147_v23 = vadd.f32 %v5360_v6, %v3108_v61  ;;  %v3062_v35 = vadd.f32 %v3046_v8, %v2946_v55  ;;  %4206 = vtanh.f32 %v3131_v36 }
 0x554   : > { %v2947_v36 = vadd.f32 %v2933_v12, %v5339_v11  ;;  %vm3230_vm4 = vcmp.eq.f32.partialorder %v3229_v1, 8.507059e+37 }
 0x555   : > { %v3208_v48 = vmul.f32 %v4201_v26, %v3207_v10  ;;  %v3160_v41 = vadd.f32 %v5363_v42, %v3147_v23  ;;  %v3121_v14 = vadd.f32 %v5369_v63, %v3062_v35  ;;  %v2832_v23 = vadd.f32 %v5347_v43, %v5314_v13 }
 0x556   : > { %v3232_v35 = vor.u32 1.1754944e-38, %v3231_v20 }
 0x557   : > { %v4203_v16 = vpop.eup %4202  ;;  %v3209_v44 = vadd.f32 %v4201_v26, %v3208_v48  ;;  %v3999_v59 = vmul.f32 -1.442695, %v3160_v41  ;;  %v5406_v39 = vadd.f32 %v5372_v29, %v3121_v14 }
 0x558   : > { %v4205_v21 = vpop.eup %4204  ;;  %v5409_v46 = vadd.f32 1.0, %v4203_v16  ;;  %v3095_v38 = vpop.f32.mrf.mxu2  ;;  %v2948_v16 = vadd.f32 %v2935_v37, %v2832_v23 }
 0x559   : > { %v3213_v15 = vsel %vm3212_vm13, %v4201_v26, %v3209_v44  ;;  %v3221_v31 = vmul.f32 %v4205_v21, %v5397_v57  ;;  %4208 = vpow2.f32 %v3999_v59  ;;  %v4207_v18 = vpop.eup %4206  ;;  %v3109_v24 = vadd.f32 %v3095_v38, %v2993_v17 }
 0x55a   : > { %v3218_v5 = vsel %vm3215_vm14, %v3217_v0, %v3213_v15  ;;  %4210 = vrcp.f32 %v5409_v46  ;;  %v3049_v11 = vpop.f32.mrf.mxu1  ;;  %vm3226_vm15 = vweird.f32 %v4205_v21  ;;  %v2938_v0 = vpop.f32.mrf.mxu3  ;;  %v3244_v38 = vand.u32 2147483647, %v5409_v46 }
 0x55b   : > { %v3325_v12 = vmul.f32 %v4207_v18, %v3218_v5  ;;  %v3222_v58 = vsub.f32 1.0, %v3221_v31  ;;  %v3063_v53 = vadd.f32 %v3049_v11, %v2947_v36  ;;  %4212 = vtanh.f32 %v5383_v47  ;;  %vm3227_vm3 = vmor %vm3225_vm0, %vm3226_vm15  ;;  %v2984_v36 = vpop.f32.mrf.mxu0 }
 0x55c   : > { %v3148_v34 = vadd.f32 %v5360_v6, %v3109_v24  ;;  %v2994_v47 = vadd.f32 %v2981_v56, %v2878_v60  ;;  %v3246_v56 = vand.u32 2147483648, %v5409_v46  ;;  %v2763_v18 = vadd.f32 %v5341_v25, %v5343_v27 }
 0x55d   : > { %v3223_v26 = vmul.f32 %v4205_v21, %v3222_v58  ;;  %v3122_v55 = vadd.f32 %v5369_v63, %v3063_v53  ;;  %vm3240_vm6 = vweird.f32 %v5409_v46  ;;  %vm3245_vm8 = vcmp.eq.f32.partialorder %v3244_v38, 8.507059e+37 }
 0x55e   : > { %v3161_v3 = vadd.f32 %v5363_v42, %v3148_v34  ;;  %v3247_v25 = vor.u32 1.1754944e-38, %v3246_v56  ;;  %v2880_v1 = vadd.f32 %v5353_v50, %v2763_v18 }
 0x55f   : > { %v4209_v61 = vpop.eup %4208  ;;  %v3224_v8 = vadd.f32 %v4205_v21, %v3223_v26  ;;  %v5423_v45 = vadd.f32 %v5372_v29, %v3122_v55 }
 0x560   : > { %v4211_v10 = vpop.eup %4210  ;;  %v5427_v7 = vadd.f32 1.0, %v4209_v61  ;;  %v4000_v33 = vmul.f32 -1.442695, %v3161_v3  ;;  %v3097_v48 = vpop.f32.mrf.mxu2 }
 0x561   : > { %v3228_v41 = vsel %vm3227_vm3, %v4205_v21, %v3224_v8  ;;  %v3236_v14 = vmul.f32 %v4211_v10, %v5409_v46  ;;  %v3110_v49 = vadd.f32 %v3097_v48, %v2994_v47  ;;  %v4213_v57 = vpop.eup %4212  ;;  %vm3241_vm5 = vweird.f32 %v4211_v10 }
 0x562   : > { %v3233_v44 = vsel %vm3230_vm4, %v3232_v35, %v3228_v41  ;;  %4214 = vrcp.f32 %v5427_v7  ;;  %v3051_v59 = vpop.f32.mrf.mxu1  ;;  %vm3242_vm7 = vmor %vm3240_vm6, %vm3241_vm5  ;;  %v3259_v23 = vand.u32 2147483647, %v5427_v7  ;;  %v2834_v41 = vadd.f32 %v5355_v51, %v5318_v52 }
 0x563   : > { %v3326_v13 = vmul.f32 %v4213_v57, %v3233_v44  ;;  %v3237_v43 = vsub.f32 1.0, %v3236_v14  ;;  %4216 = vpow2.f32 %v4000_v33  ;;  %v3149_v17 = vadd.f32 %v5360_v6, %v3110_v49  ;;  %v2986_v35 = vpop.f32.mrf.mxu0  ;;  %v2940_v33 = vpop.f32.mrf.mxu3 }
 0x564   : > { %4218 = vtanh.f32 %v5395_v54  ;;  %v3064_v21 = vadd.f32 %v3051_v59, %v2948_v16  ;;  %v2995_v54 = vadd.f32 %v2984_v36, %v5349_v2  ;;  %v2996_v14 = vadd.f32 %v2986_v35, %v2880_v1 }
 0x565   : > { %v3333_v15 = vpack.c.bf16 %v3326_v13, %v3325_v12  ;;  %v3162_v37 = vadd.f32 %v5363_v42, %v3149_v17  ;;  %v3238_v31 = vmul.f32 %v4211_v10, %v3237_v43  ;;  %v2949_v12 = vadd.f32 %v2938_v0, %v5351_v19 }
 0x566   : > { %v3123_v5 = vadd.f32 %v5369_v63, %v3064_v21  ;;  %vm3255_vm10 = vweird.f32 %v5427_v7  ;;  %v2950_v36 = vadd.f32 %v2940_v33, %v2834_v41  ;;  %vm3260_vm12 = vcmp.eq.f32.partialorder %v3259_v23, 8.507059e+37 }
 0x567   : > { %v4001_v24 = vmul.f32 -1.442695, %v3162_v37  ;;  %4011 = vmatmul.msk.bf16.vlgmr.msrb.gmra.mxu3 %vm696_vm2, %v3333_v15  ;;  %v3239_v11 = vadd.f32 %v4211_v10, %v3238_v31 }
 0x568   : > { %v4215_v60 = vpop.eup %4214  ;;  %v5444_v58 = vadd.f32 %v5372_v29, %v3123_v5  ;;  %v3100_v53 = vpop.f32.mrf.mxu2 }
 0x569   : > { %v4217_v27 = vpop.eup %4216  ;;  %v3251_v20 = vmul.f32 %v4215_v60, %v5427_v7  ;;  %4220 = vpow2.f32 %v4001_v24  ;;  %v3111_v34 = vadd.f32 %v3100_v53, %v2995_v54  ;;  %v3243_v26 = vsel %vm3242_vm7, %v4211_v10, %v3239_v11 }
 0x56a   : > { %v4219_v2 = vpop.eup %4218  ;;  %4222 = vtanh.f32 %v5406_v39  ;;  %v5449_v46 = vadd.f32 1.0, %v4217_v27  ;;  %v3054_v19 = vpop.f32.mrf.mxu1  ;;  %v3248_v55 = vsel %vm3245_vm8, %v3247_v25, %v3243_v26  ;;  %v3261_v10 = vand.u32 2147483648, %v5427_v7 }
 0x56b   : > { %v3252_v3 = vsub.f32 1.0, %v3251_v20  ;;  %v3150_v61 = vadd.f32 %v5360_v6, %v3111_v34  ;;  %v3065_v8 = vadd.f32 %v3054_v19, %v2949_v12  ;;  %v3327_v47 = vmul.f32 %v4219_v2, %v3248_v55 }
 0x56c   : > { %4224 = vrcp.f32 %v5449_v46  ;;  %vm3256_vm9 = vweird.f32 %v4215_v60  ;;  %v3262_v43 = vor.u32 1.1754944e-38, %v3261_v10  ;;  %v3274_v54 = vand.u32 2147483647, %v5449_v46 }
 0x56d   : > { %v3163_v50 = vadd.f32 %v5363_v42, %v3150_v61  ;;  %v3124_v39 = vadd.f32 %v5369_v63, %v3065_v8  ;;  %v3253_v48 = vmul.f32 %v4215_v60, %v3252_v3  ;;  %vm3257_vm11 = vmor %vm3255_vm10, %vm3256_vm9  ;;  %v3276_v11 = vand.u32 2147483648, %v5449_v46 }
 0x56e   : > { %vm3270_vm14 = vweird.f32 %v5449_v46  ;;  %vm3275_vm0 = vcmp.eq.f32.partialorder %v3274_v54, 8.507059e+37 }
 0x56f   : > { %v4221_v49 = vpop.eup %4220  ;;  %v4002_v57 = vmul.f32 -1.442695, %v3163_v50  ;;  %v5460_v16 = vadd.f32 %v5372_v29, %v3124_v39  ;;  %v3254_v44 = vadd.f32 %v4215_v60, %v3253_v48  ;;  %v3277_v20 = vor.u32 1.1754944e-38, %v3276_v11  ;;  %v3337_v11 = vld [vmem:[#allocation3] sm:$0xff] }
 0x570   : > { %v4223_v59 = vpop.eup %4222  ;;  %v3202_v0 = vadd.f32 1.0, %v4221_v49  ;;  %v3102_v13 = vpop.f32.mrf.mxu2 }
 0x571   : > { %4226 = vpow2.f32 %v4002_v57  ;;  %v3112_v17 = vadd.f32 %v3102_v13, %v2996_v14  ;;  %v3258_v21 = vsel %vm3257_vm11, %v4215_v60, %v3254_v44 }
 0x572   : > { %v4225_v52 = vpop.eup %4224  ;;  %4228 = vrcp.f32 %v3202_v0  ;;  %v3056_v51 = vpop.f32.mrf.mxu1  ;;  %v3263_v38 = vsel %vm3260_vm12, %v3262_v43, %v3258_v21  ;;  %v3291_v1 = vand.u32 2147483648, %v3202_v0  ;;  %v3289_v55 = vand.u32 2147483647, %v3202_v0 }
 0x573   : > { %v3266_v56 = vmul.f32 %v4225_v52, %v5449_v46  ;;  %v3151_v15 = vadd.f32 %v5360_v6, %v3112_v17  ;;  %v3066_v37 = vadd.f32 %v3056_v51, %v2950_v36  ;;  %v3328_v7 = vmul.f32 %v4223_v59, %v3263_v38 }
 0x574   : > { %4230 = vtanh.f32 %v5423_v45  ;;  %vm3271_vm13 = vweird.f32 %v4225_v52  ;;  %vm3285_vm4 = vweird.f32 %v3202_v0  ;;  %v3292_v23 = vor.u32 1.1754944e-38, %v3291_v1 }
 0x575   : > { %v3267_v31 = vsub.f32 1.0, %v3266_v56  ;;  %v3164_v18 = vadd.f32 %v5363_v42, %v3151_v15  ;;  %v3125_v5 = vadd.f32 %v5369_v63, %v3066_v37  ;;  %v3334_v24 = vpack.c.bf16 %v3328_v7, %v3327_v47  ;;  %v4063_v42 = vld [vmem:[%s5577_s14] sm:$0xff]  ;;  %vm3272_vm15 = vmor %vm3270_vm14, %vm3271_vm13 }
 0x576   : > { %3467 = vmatpush.bf16.msrb.mxu0 %v4063_v42  ;;  %vm3290_vm6 = vcmp.eq.f32.partialorder %v3289_v55, 8.507059e+37  ;;  %v3340_v55 = vld [vmem:[#allocation3 + $0x18] sm:$0xff] }
 0x577   : > { %v4227_v60 = vpop.eup %4226  ;;  %v4003_v12 = vmul.f32 -1.442695, %v3164_v18  ;;  %v3138_v53 = vadd.f32 %v5372_v29, %v3125_v5  ;;  %v3268_v25 = vmul.f32 %v4225_v52, %v3267_v31  ;;  %4012 = vmatmul.msk.bf16.gmra.mxu3 %vm696_vm2, %v3334_v24  ;;  %v4098_v5 = vld [vmem:[%s5576_s13 + $0x2] ss:$0 sm:$0xff] }
 0x578   : > { %v4229_v6 = vpop.eup %4228  ;;  %v3203_v27 = vadd.f32 1.0, %v4227_v60 }
 0x579   : > { %v3281_v63 = vmul.f32 %v4229_v6, %v3202_v0  ;;  %4232 = vpow2.f32 %v4003_v12  ;;  %v3269_v45 = vadd.f32 %v4225_v52, %v3268_v25  ;;  %vm3286_vm3 = vweird.f32 %v4229_v6  ;;  %v3338_v25 = vld [vmem:[#allocation3 + $0x8] sm:$0xff] }
 0x57a   : > { %4234 = vrcp.f32 %v3203_v27  ;;  %v4231_v26 = vpop.eup %4230  ;;  %vm3287_vm5 = vmor %vm3285_vm4, %vm3286_vm3  ;;  %v3306_v48 = vand.u32 2147483648, %v3203_v27  ;;  %v3304_v49 = vand.u32 2147483647, %v3203_v27  ;;  %vm3300_vm8 = vweird.f32 %v3203_v27 }
 0x57b   : > { %v3282_v29 = vsub.f32 1.0, %v3281_v63  ;;  %v3273_v34 = vsel %vm3272_vm15, %v4225_v52, %v3269_v45  ;;  %4236 = vtanh.f32 %v5444_v58  ;;  %v3339_v45 = vld [vmem:[#allocation3 + $0x10] sm:$0xff] }
 0x57c   : > { %v3278_v2 = vsel %vm3275_vm0, %v3277_v20, %v3273_v34  ;;  %v3307_v59 = vor.u32 1.1754944e-38, %v3306_v48  ;;  %vm3305_vm10 = vcmp.eq.f32.partialorder %v3304_v49, 8.507059e+37  ;;  %v3342_v48 = vld [vmem:[#allocation3 + $0x28] sm:$0xff] }
 0x57d   : > { %v3283_v19 = vmul.f32 %v4229_v6, %v3282_v29  ;;  %v3329_v3 = vmul.f32 %v4231_v26, %v3278_v2 }
 0x57f   : > { %v4233_v61 = vpop.eup %4232  ;;  %v3284_v8 = vadd.f32 %v4229_v6, %v3283_v19 }
 0x580   : > { %v4235_v46 = vpop.eup %4234  ;;  %v3204_v47 = vadd.f32 1.0, %v4233_v61 }
 0x581   : > { %v3296_v10 = vmul.f32 %v4235_v46, %v3203_v27  ;;  %v3288_v35 = vsel %vm3287_vm5, %v4229_v6, %v3284_v8  ;;  %v4237_v33 = vpop.eup %4236  ;;  %vm3301_vm7 = vweird.f32 %v4235_v46 }
 0x582   : > { %4238 = vrcp.f32 %v3204_v47  ;;  %v3293_v50 = vsel %vm3290_vm6, %v3292_v23, %v3288_v35  ;;  %vm3302_vm9 = vmor %vm3300_vm8, %vm3301_vm7  ;;  %v3319_v51 = vand.u32 2147483647, %v3204_v47  ;;  %vm3315_vm12 = vweird.f32 %v3204_v47 }
 0x583   : > { %v3297_v58 = vsub.f32 1.0, %v3296_v10  ;;  %v3330_v39 = vmul.f32 %v4237_v33, %v3293_v50  ;;  %4240 = vtanh.f32 %v5460_v16  ;;  %v3321_v16 = vand.u32 2147483648, %v3204_v47 }
 0x584   : > { %4242 = vtanh.f32 %v3138_v53  ;;  %vm3320_vm14 = vcmp.eq.f32.partialorder %v3319_v51, 8.507059e+37 }
 0x585   : > { %v3335_v41 = vpack.c.bf16 %v3330_v39, %v3329_v3  ;;  %v3298_v14 = vmul.f32 %v4235_v46, %v3297_v58  ;;  %v3322_v56 = vor.u32 1.1754944e-38, %v3321_v16  ;;  %v3344_v16 = vld [vmem:[#allocation3 + $0x38] sm:$0xff] }
 0x587   : > { %v3299_v57 = vadd.f32 %v4235_v46, %v3298_v14  ;;  %4013 = vmatmul.msk.bf16.gmra.mxu3 %vm696_vm2, %v3335_v41 }
 0x588   : > { %v4239_v44 = vpop.eup %4238 }
 0x589   : > { %v3311_v36 = vmul.f32 %v4239_v44, %v3204_v47  ;;  %v3303_v0 = vsel %vm3302_vm9, %v4235_v46, %v3299_v57  ;;  %v4241_v13 = vpop.eup %4240  ;;  %vm3316_vm11 = vweird.f32 %v4239_v44  ;;  %v3341_v46 = vld [vmem:[#allocation3 + $0x20] sm:$0xff]  ;;  %v3343_v57 = vld [vmem:[#allocation3 + $0x30] sm:$0xff] }
 0x58a   : > { %v3308_v43 = vsel %vm3305_vm10, %v3307_v59, %v3303_v0  ;;  %vm3317_vm13 = vmor %vm3315_vm12, %vm3316_vm11  ;;  %v4243_v37 = vpop.eup %4242 }
 0x58b   : > { %v3312_v17 = vsub.f32 1.0, %v3311_v36  ;;  %v3331_v21 = vmul.f32 %v4241_v13, %v3308_v43 }
 0x58d   : > { %v3313_v52 = vmul.f32 %v4239_v44, %v3312_v17 }
 0x58f   : > { %v3314_v38 = vadd.f32 %v4239_v44, %v3313_v52 }
 0x591   : > { %v3318_v15 = vsel %vm3317_vm13, %v4239_v44, %v3314_v38 }
 0x592   : > { %v3323_v7 = vsel %vm3320_vm14, %v3322_v56, %v3318_v15 }
 0x593   : > { %v3332_v31 = vmul.f32 %v4243_v37, %v3323_v7  ;;  %v3497_v7 = vlaneseq }
 0x595   : > { %v3336_v18 = vpack.c.bf16 %v3332_v31, %v3331_v21  ;;  %v3498_v31 = vand.u32 127, %v3497_v7 }
 0x597   : > { %4014 = vmatmul.msk.bf16.gmra.mxu3 %vm696_vm2, %v3336_v18  ;;  %v4099_v18 = vld [vmem:[%s5578_s15] ss:$0 sm:$0xff]  ;;  %vm3499_vm15 = vcmp.lt.s32.totalorder %v3498_v31, 4 }
 0x5ea   : > { %v3380_v24 = vpop.f32.mrf.mxu3 }
 0x5eb   : > { %v3381_v54 = vadd.f32 %v4098_v5, %v3380_v24  ;;  %v3500_v24 = vsel %vm3499_vm15, 1.0, %v4433_v28 }
 0x5ed   : > { %v3400_v60 = vadd.f32 %v3381_v54, %v3337_v11 }
 0x5ef   : > { %3408 = vst.msk [vmem:[#allocation3] sm:$0xff] %vm696_vm2, %v3400_v60  ;;  %v4245_v60 = vld [vmem:[%s4383_s27] sm:$0xff] }
 0x5f2   : > { %v3382_v12 = vpop.f32.mrf.mxu3 }
 0x5f3   : > { %v3383_v53 = vadd.f32 %v4098_v5, %v3382_v12  ;;  %v3508_v12 = vmul.f32 %v4245_v60, %v3500_v24 }
 0x5f5   : > { %v3401_v6 = vadd.f32 %v3383_v53, %v3338_v25 }
 0x5f6   : > { %v3416_v63 = vld [vmem:[#allocation3] sm:$0xff] }
 0x5f7   : > { %3409 = vst.msk [vmem:[#allocation3 + $0x8] sm:$0xff] %vm696_vm2, %v3401_v6  ;;  %v3424_v34 = vmul.f32 %v3416_v63, %v4433_v28  ;;  %v3501_v6 = vsel %vm3499_vm15, 1.0, %v4443_v32 }
 0x5fa   : > { %v3385_v27 = vpop.f32.mrf.mxu3 }
 0x5fb   : > { %v3386_v42 = vadd.f32 %v4098_v5, %v3385_v27 }
 0x5fd   : > { %v3402_v20 = vadd.f32 %v3386_v42, %v3339_v45  ;;  %v4246_v42 = vld [vmem:[%s4383_s27 + $0x8] sm:$0xff] }
 0x5fe   : > { %v3417_v29 = vld [vmem:[#allocation3 + $0x8] sm:$0xff]  ;;  %v3509_v63 = vmul.f32 %v4246_v42, %v3501_v6 }
 0x5ff   : > { %v3425_v26 = vmul.f32 %v3417_v29, %v4443_v32  ;;  %3410 = vst.msk [vmem:[#allocation3 + $0x10] sm:$0xff] %vm696_vm2, %v3402_v20  ;;  %v3502_v29 = vsel %vm3499_vm15, 1.0, %v4438_v30 }
 0x601   : > { %v3432_v2 = vpack.c.bf16 %v3425_v26, %v3424_v34 }
 0x602   : > { %v3387_v1 = vpop.f32.mrf.mxu3 }
 0x603   : > { %4019 = vmatmul.msk.bf16.vlgmr.msrb.gmra.mxu0 %vm696_vm2, %v3432_v2  ;;  %v3388_v19 = vadd.f32 %v4098_v5, %v3387_v1  ;;  %v4247_v2 = vld [vmem:[%s4383_s27 + $0x10] sm:$0xff] }
 0x604   : > { %v3510_v1 = vmul.f32 %v4247_v2, %v3502_v29 }
 0x605   : > { %v3403_v3 = vadd.f32 %v3388_v19, %v3340_v55  ;;  %v3503_v55 = vsel %vm3499_vm15, 1.0, %v4451_v40 }
 0x606   : > { %v3418_v47 = vld [vmem:[#allocation3 + $0x10] sm:$0xff] }
 0x607   : > { %3411 = vst.msk [vmem:[#allocation3 + $0x18] sm:$0xff] %vm696_vm2, %v3403_v3  ;;  %v3426_v35 = vmul.f32 %v3418_v47, %v4438_v30 }
 0x60a   : > { %v3390_v61 = vpop.f32.mrf.mxu3 }
 0x60b   : > { %v3391_v8 = vadd.f32 %v4098_v5, %v3390_v61 }
 0x60d   : > { %v3404_v23 = vadd.f32 %v3391_v8, %v3341_v46  ;;  %v4248_v8 = vld [vmem:[%s4383_s27 + $0x18] sm:$0xff] }
 0x60e   : > { %v3419_v10 = vld [vmem:[#allocation3 + $0x18] sm:$0xff]  ;;  %v3511_v46 = vmul.f32 %v4248_v8, %v3503_v55 }
 0x60f   : > { %3412 = vst.msk [vmem:[#allocation3 + $0x20] sm:$0xff] %vm696_vm2, %v3404_v23  ;;  %v3427_v33 = vmul.f32 %v3419_v10, %v4451_v40  ;;  %v3504_v23 = vsel %vm3499_vm15, 1.0, %v5610_v62 }
 0x611   : > { %v3433_v50 = vpack.c.bf16 %v3427_v33, %v3426_v35  ;;  %v4249_v33 = vld [vmem:[%s4383_s27 + $0x20] sm:$0xff] }
 0x612   : > { %v3392_v58 = vpop.f32.mrf.mxu3 }
 0x613   : > { %v3393_v39 = vadd.f32 %v4098_v5, %v3392_v58  ;;  %4020 = vmatmul.msk.bf16.gmra.mxu0 %vm696_vm2, %v3433_v50  ;;  %v3512_v50 = vmul.f32 %v4249_v33, %v3504_v23 }
 0x615   : > { %v3405_v41 = vadd.f32 %v3393_v39, %v3342_v48  ;;  %v3505_v39 = vsel %vm3499_vm15, 1.0, %v5612_v9 }
 0x616   : > { %v3420_v44 = vld [vmem:[#allocation3 + $0x20] sm:$0xff] }
 0x617   : > { %3413 = vst.msk [vmem:[#allocation3 + $0x28] sm:$0xff] %vm696_vm2, %v3405_v41  ;;  %v3428_v0 = vmul.f32 %v3420_v44, %v5610_v62  ;;  %v3506_v44 = vsel %vm3499_vm15, 1.0, %v5614_v22 }
 0x61a   : > { %v3395_v14 = vpop.f32.mrf.mxu3 }
 0x61b   : > { %v3396_v49 = vadd.f32 %v4098_v5, %v3395_v14  ;;  %v4250_v14 = vld [vmem:[%s4383_s27 + $0x28] sm:$0xff] }
 0x61d   : > { %v3406_v59 = vadd.f32 %v3396_v49, %v3343_v57  ;;  %v3513_v49 = vmul.f32 %v4250_v14, %v3505_v39 }
 0x61e   : > { %v3421_v36 = vld [vmem:[#allocation3 + $0x28] sm:$0xff] }
 0x61f   : > { %3414 = vst.msk [vmem:[#allocation3 + $0x30] sm:$0xff] %vm696_vm2, %v3406_v59  ;;  %v3429_v13 = vmul.f32 %v3421_v36, %v5612_v9 }
 0x621   : > { %v3434_v43 = vpack.c.bf16 %v3429_v13, %v3428_v0  ;;  %v4251_v0 = vld [vmem:[%s4383_s27 + $0x30] sm:$0xff] }
 0x622   : > { %v3397_v17 = vpop.f32.mrf.mxu3  ;;  %v3514_v13 = vmul.f32 %v4251_v0, %v3506_v44 }
 0x623   : > { %v3398_v21 = vadd.f32 %v4098_v5, %v3397_v17  ;;  %4021 = vmatmul.msk.bf16.gmra.mxu0 %vm696_vm2, %v3434_v43  ;;  %v3507_v17 = vsel %vm3499_vm15, 1.0, %v5615_v4 }
 0x625   : > { %v3407_v52 = vadd.f32 %v3398_v21, %v3344_v16 }
 0x626   : > { %v3422_v51 = vld [vmem:[#allocation3 + $0x30] sm:$0xff] }
 0x627   : > { %3415 = vst.msk [vmem:[#allocation3 + $0x38] sm:$0xff] %vm696_vm2, %v3407_v52  ;;  %v3430_v56 = vmul.f32 %v3422_v51, %v5614_v22  ;;  %v4252_v52 = vld [vmem:[%s4383_s27 + $0x38] sm:$0xff] }
 0x628   : > { %v3515_v51 = vmul.f32 %v4252_v52, %v3507_v17 }
 0x62e   : > { %v3423_v38 = vld [vmem:[#allocation3 + $0x38] sm:$0xff] }
 0x62f   : > { %v3431_v15 = vmul.f32 %v3423_v38, %v5615_v4 }
 0x631   : > { %v3435_v37 = vpack.c.bf16 %v3431_v15, %v3430_v56 }
 0x633   : > { %4022 = vmatmul.msk.bf16.gmra.mxu0 %vm696_vm2, %v3435_v37 }
 0x680   : > { %v3469_v5 = vpop.f32.mrf.mxu0 }
 0x681   : > { %v3470_v54 = vadd.f32 %v4099_v18, %v3469_v5 }
 0x683   : > { %v3489_v11 = vmul.f32 %v3470_v54, %v4433_v28 }
 0x685   : > { %v3516_v53 = vadd.f32 %v3508_v12, %v3489_v11 }
 0x687   : > { %3524 = vst.msk [vmem:[%s5514_s23] sm:$0xff] %vm602_vm1, %v3516_v53 }
 0x688   : > { %v3471_v25 = vpop.f32.mrf.mxu0 }
 0x689   : > { %v3472_v27 = vadd.f32 %v4099_v18, %v3471_v25 }
 0x68b   : > { %v3490_v28 = vmul.f32 %v3472_v27, %v4443_v32 }
 0x68d   : > { %v3517_v45 = vadd.f32 %v3509_v63, %v3490_v28 }
 0x68f   : > { %3525 = vst.msk [vmem:[%s5514_s23 + $0x8] sm:$0xff] %vm602_vm1, %v3517_v45 }
 0x690   : > { %v3474_v20 = vpop.f32.mrf.mxu0 }
 0x691   : > { %v3475_v34 = vadd.f32 %v4099_v18, %v3474_v20 }
 0x693   : > { %v3491_v26 = vmul.f32 %v3475_v34, %v4438_v30 }
 0x695   : > { %v3518_v19 = vadd.f32 %v3510_v1, %v3491_v26 }
 0x697   : > { %3526 = vst.msk [vmem:[%s5514_s23 + $0x10] sm:$0xff] %vm602_vm1, %v3518_v19 }
 0x698   : > { %v3476_v32 = vpop.f32.mrf.mxu0 }
 0x699   : > { %v3477_v3 = vadd.f32 %v4099_v18, %v3476_v32 }
 0x69b   : > { %v3492_v61 = vmul.f32 %v3477_v3, %v4451_v40 }
 0x69d   : > { %v3519_v47 = vadd.f32 %v3511_v46, %v3492_v61 }
 0x69f   : > { %3527 = vst.msk [vmem:[%s5514_s23 + $0x18] sm:$0xff] %vm602_vm1, %v3519_v47 }
 0x6a0   : > { %v3479_v30 = vpop.f32.mrf.mxu0 }
 0x6a1   : > { %v3480_v10 = vadd.f32 %v4099_v18, %v3479_v30 }
 0x6a3   : > { %v3493_v35 = vmul.f32 %v3480_v10, %v5610_v62 }
 0x6a5   : > { %v3520_v58 = vadd.f32 %v3512_v50, %v3493_v35 }
 0x6a7   : > { %3528 = vst.msk [vmem:[%s5514_s23 + $0x20] sm:$0xff] %vm602_vm1, %v3520_v58 }
 0x6a8   : > { %v3481_v40 = vpop.f32.mrf.mxu0 }
 0x6a9   : > { %v3482_v48 = vadd.f32 %v4099_v18, %v3481_v40 }
 0x6ab   : > { %v3494_v41 = vmul.f32 %v3482_v48, %v5612_v9 }
 0x6ad   : > { %v3521_v57 = vadd.f32 %v3513_v49, %v3494_v41 }
 0x6af   : > { %3529 = vst.msk [vmem:[%s5514_s23 + $0x28] sm:$0xff] %vm602_vm1, %v3521_v57 }
 0x6b0   : > { %v3484_v62 = vpop.f32.mrf.mxu0 }
 0x6b1   : > { %v3485_v59 = vadd.f32 %v4099_v18, %v3484_v62 }
 0x6b3   : > { %v3495_v36 = vmul.f32 %v3485_v59, %v5614_v22 }
 0x6b5   : > { %v3522_v43 = vadd.f32 %v3514_v13, %v3495_v36 }
 0x6b7   : > { %3530 = vst.msk [vmem:[%s5514_s23 + $0x30] sm:$0xff] %vm602_vm1, %v3522_v43 }
 0x6b8   : > { %v3486_v9 = vpop.f32.mrf.mxu0 }
 0x6b9   : > { %v3487_v21 = vadd.f32 %v4099_v18, %v3486_v9 }
 0x6bb   : > { %v3496_v16 = vmul.f32 %v3487_v21, %v5615_v4 }
 0x6bd   : > { %v3523_v38 = vadd.f32 %v3515_v51, %v3496_v16 }
 0x6bf   : > { %3531 = vst.msk [vmem:[%s5514_s23 + $0x38] sm:$0xff] %vm602_vm1, %v3523_v38 }
 0x6c0 PF: > { %s26_s21 = sadd.s32 1, %s4259_s21  }
 0x6c1   : > { %p23_p4 = scmp.ge.s32.totalorder %s26_s21, 4  }
 0x6c3   :  { %25 = sbr.rel (!%p23_p4) target bundleno = 2 (0x2), region = 165 }

</bundles_post_ra>
